<compile_context>
chip_gen: v5e
topology: v5e:2x2
jax: 0.10.0
libtpu: 0.0.40
codegen_flags: <defaults>
</compile_context>

<pallas_src>
import jax
import jax.numpy as jnp
from jax.experimental import pallas as pl
from jax.experimental.pallas import tpu as pltpu

LANES = 128


def fcvs_kernel(x_ref, w0_ref, b0_ref, w1_ref, b1_ref, w2_ref, b2_ref, o_ref):
    # Layer 1: Linear + ReLU (MXU matmul, f32 accumulate)
    h = jnp.dot(x_ref[...], w0_ref[...], preferred_element_type=jnp.float32)
    h = jnp.maximum(h + b0_ref[...], 0.0)
    # Layer 2: Linear + ReLU
    h = jnp.dot(h, w1_ref[...], preferred_element_type=jnp.float32)
    h = jnp.maximum(h + b1_ref[...], 0.0)
    # Output layer Linear(32 -> 1): VPU multiply + lane reduce instead of an
    # N=1 MXU matmul, then fold the per-row scalar into a lane-dense
    # (TB//128, 128) tile so stores are full-width instead of masked columns.
    v = jnp.sum(h * w2_ref[...], axis=-1)                               # (TB,)
    o_ref[...] = (v.reshape(o_ref.shape) + b2_ref[...]).astype(o_ref.dtype)


def fcvs_forward(x, params, *, block_b=1024):
    """x: (B, input_dim) float32 -> (B, 1) float32."""
    w0, b0, w1, b1, w2, b2 = (params["w0"], params["b0"],
                              params["w1"], params["b1"],
                              params["w2"], params["b2"])
    B, input_dim = x.shape
    tb = block_b
    assert tb % (8 * LANES) == 0, "batch tile must be a multiple of 1024"

    num_tiles = pl.cdiv(B, tb)
    b_pad = num_tiles * tb
    if b_pad != B:  # pad so the last tile is full; padded rows are discarded below
        x = jnp.pad(x, ((0, b_pad - B), (0, 0)))

    tile_rows = tb // LANES          # output tile sublane extent (multiple of 8)
    out_rows = b_pad // LANES

    def pinned(a):
        # Full-array block with a constant block index: DMA'd once, stays in VMEM.
        nd = a.ndim
        return pl.BlockSpec(a.shape, lambda i, _nd=nd: (0,) * _nd)

    out = pl.pallas_call(
        fcvs_kernel,
        out_shape=jax.ShapeDtypeStruct((out_rows, LANES), jnp.float32),
        grid=(num_tiles,),
        in_specs=[
            pl.BlockSpec((tb, input_dim), lambda i: (i, 0)),   # streamed batch tile
            pinned(w0), pinned(b0), pinned(w1), pinned(b1), pinned(w2), pinned(b2),
        ],
        out_specs=pl.BlockSpec((tile_rows, LANES), lambda i: (i, 0)),
        compiler_params=pltpu.CompilerParams(
            dimension_semantics=("parallel",)),   # shard batch axis across TCs (v7x)
    )(x, w0, b0, w1, b1, w2, b2)

    # Row-major flatten of the (out_rows, 128) lane-dense slab is batch order.
    return out.reshape(b_pad, 1)[:B]


def init_params(key, input_dim, hidden_dims=(32, 32)):
    """Deterministic synthetic init (shapes match the nn.Linear layers)."""
    k0, k1, k2, k3, k4, k5 = jax.random.split(key, 6)
    h0, h1 = hidden_dims
    return {
        # w0/w1 stored (in, out) so the kernel computes x @ W (== torch x @ W.T).
        "w0": jax.random.normal(k0, (input_dim, h0), jnp.float32) * 0.1,
        "b0": jax.random.normal(k1, (1, h0), jnp.float32) * 0.1,
        "w1": jax.random.normal(k2, (h0, h1), jnp.float32) * 0.1,
        "b1": jax.random.normal(k3, (1, h1), jnp.float32) * 0.1,
        # Output layer weight kept as a (1, h1) row (torch (out, in) layout).
        "w2": jax.random.normal(k4, (1, h1), jnp.float32) * 0.1,
        "b2": jax.random.normal(k5, (1, 1), jnp.float32) * 0.1,
    }


def fcvs_reference(x, params):
    """Pure-JAX reference of the same forward pass."""
    h = jnp.maximum(x @ params["w0"] + params["b0"], 0.0)
    h = jnp.maximum(h @ params["w1"] + params["b1"], 0.0)
    return h @ params["w2"].T + params["b2"]


if __name__ == "__main__":
    key = jax.random.PRNGKey(0)
    k_param, k_x1, k_x2 = jax.random.split(key, 3)

    input_dim = 16
    params = init_params(k_param, input_dim, hidden_dims=(32, 32))

    # Small batch consistent with the module (a batch of SAC states).
    x_small = jax.random.normal(k_x1, (8, input_dim), jnp.float32)
    out_small = jax.block_until_ready(fcvs_forward(x_small, params))
    assert out_small.shape == (8, 1)
    assert jnp.allclose(out_small, fcvs_reference(x_small, params),
                        atol=1e-5, rtol=1e-5)

    # Multi-tile batch: exercises the grid, padding and lane-dense writeback.
    x_big = jax.random.normal(k_x2, (2500, input_dim), jnp.float32)
    out_big = jax.block_until_ready(fcvs_forward(x_big, params))
    assert out_big.shape == (2500, 1)
    assert jnp.allclose(out_big, fcvs_reference(x_big, params),
                        atol=1e-5, rtol=1e-5)

    print("KERNEL_OK")
</pallas_src>

<mosaic_0001>
module attributes {stable_mosaic.version = 11 : i64} {
  func.func @fcvs_kernel(%arg0: i32, %arg1: memref<1024x16xf32, #tpu.memory_space<vmem>>, %arg2: memref<16x32xf32, #tpu.memory_space<vmem>>, %arg3: memref<1x32xf32, #tpu.memory_space<vmem>>, %arg4: memref<32x32xf32, #tpu.memory_space<vmem>>, %arg5: memref<1x32xf32, #tpu.memory_space<vmem>>, %arg6: memref<1x32xf32, #tpu.memory_space<vmem>>, %arg7: memref<1x1xf32, #tpu.memory_space<vmem>>, %arg8: memref<8x128xf32, #tpu.memory_space<vmem>>) attributes {dimension_semantics = [#tpu.dimension_semantics<parallel>], iteration_bounds = array<i64: 1>, scalar_prefetch = 0 : i64, scratch_operands = 0 : i64, tpu.core_type = #tpu.core_type<tc>, window_params = [{transform_indices = @transform_0, window_bounds = array<i64: 1024, 16>}, {pipeline_mode = #tpu.pipeline_mode<synchronous>, transform_indices = @transform_1, window_bounds = array<i64: 16, 32>}, {pipeline_mode = #tpu.pipeline_mode<synchronous>, transform_indices = @transform_2, window_bounds = array<i64: 1, 32>}, {pipeline_mode = #tpu.pipeline_mode<synchronous>, transform_indices = @transform_3, window_bounds = array<i64: 32, 32>}, {pipeline_mode = #tpu.pipeline_mode<synchronous>, transform_indices = @transform_4, window_bounds = array<i64: 1, 32>}, {pipeline_mode = #tpu.pipeline_mode<synchronous>, transform_indices = @transform_5, window_bounds = array<i64: 1, 32>}, {pipeline_mode = #tpu.pipeline_mode<synchronous>, transform_indices = @transform_6, window_bounds = array<i64: 1, 1>}, {transform_indices = @transform_7, window_bounds = array<i64: 8, 128>}]} {
    %c0 = arith.constant 0 : index
    %c0_0 = arith.constant 0 : index
    %0 = vector.load %arg1[%c0, %c0_0] : memref<1024x16xf32, #tpu.memory_space<vmem>>, vector<1024x16xf32>
    %c0_1 = arith.constant 0 : index
    %c0_2 = arith.constant 0 : index
    %1 = vector.load %arg2[%c0_1, %c0_2] : memref<16x32xf32, #tpu.memory_space<vmem>>, vector<16x32xf32>
    %cst = arith.constant dense<0.000000e+00> : vector<1024x32xf32>
    %2 = tpu.matmul %0, %1, %cst {dimension_numbers = #tpu.dot_dimension_numbers<[1], [0], [0], [1], [0, 0, 1, 1], [], []>} : vector<1024x16xf32>, vector<16x32xf32>, vector<1024x32xf32> -> vector<1024x32xf32>
    %c0_3 = arith.constant 0 : index
    %c0_4 = arith.constant 0 : index
    %3 = vector.load %arg3[%c0_3, %c0_4] : memref<1x32xf32, #tpu.memory_space<vmem>>, vector<1x32xf32>
    %4 = vector.broadcast %3 : vector<1x32xf32> to vector<1024x32xf32>
    %5 = arith.addf %2, %4 : vector<1024x32xf32>
    %cst_5 = arith.constant 0.000000e+00 : f32
    %6 = vector.broadcast %cst_5 : f32 to vector<1024x32xf32>
    %7 = arith.maximumf %5, %6 : vector<1024x32xf32>
    %c0_6 = arith.constant 0 : index
    %c0_7 = arith.constant 0 : index
    %8 = vector.load %arg4[%c0_6, %c0_7] : memref<32x32xf32, #tpu.memory_space<vmem>>, vector<32x32xf32>
    %cst_8 = arith.constant dense<0.000000e+00> : vector<1024x32xf32>
    %9 = tpu.matmul %7, %8, %cst_8 {dimension_numbers = #tpu.dot_dimension_numbers<[1], [0], [0], [1], [0, 0, 1, 1], [], []>} : vector<1024x32xf32>, vector<32x32xf32>, vector<1024x32xf32> -> vector<1024x32xf32>
    %c0_9 = arith.constant 0 : index
    %c0_10 = arith.constant 0 : index
    %10 = vector.load %arg5[%c0_9, %c0_10] : memref<1x32xf32, #tpu.memory_space<vmem>>, vector<1x32xf32>
    %11 = vector.broadcast %10 : vector<1x32xf32> to vector<1024x32xf32>
    %12 = arith.addf %9, %11 : vector<1024x32xf32>
    %cst_11 = arith.constant 0.000000e+00 : f32
    %13 = vector.broadcast %cst_11 : f32 to vector<1024x32xf32>
    %14 = arith.maximumf %12, %13 : vector<1024x32xf32>
    %c0_12 = arith.constant 0 : index
    %c0_13 = arith.constant 0 : index
    %15 = vector.load %arg6[%c0_12, %c0_13] : memref<1x32xf32, #tpu.memory_space<vmem>>, vector<1x32xf32>
    %16 = vector.broadcast %15 : vector<1x32xf32> to vector<1024x32xf32>
    %17 = arith.mulf %14, %16 : vector<1024x32xf32>
    %cst_14 = arith.constant dense<0.000000e+00> : vector<1024xf32>
    %18 = vector.multi_reduction <add>, %17, %cst_14 [1] : vector<1024x32xf32> to vector<1024xf32>
    %19 = vector.shape_cast %18 : vector<1024xf32> to vector<8x128xf32>
    %c0_15 = arith.constant 0 : index
    %c0_16 = arith.constant 0 : index
    %20 = vector.load %arg7[%c0_15, %c0_16] : memref<1x1xf32, #tpu.memory_space<vmem>>, vector<1x1xf32>
    %21 = vector.broadcast %20 : vector<1x1xf32> to vector<8x128xf32>
    %22 = arith.addf %19, %21 : vector<8x128xf32>
    %c0_17 = arith.constant 0 : index
    %c0_18 = arith.constant 0 : index
    %23 = vector.load %arg8[%c0_17, %c0_18] : memref<8x128xf32, #tpu.memory_space<vmem>>, vector<8x128xf32>
    tpu.vector_store %arg8[%c0_17, %c0_18], %22 {strides = array<i32>} : memref<8x128xf32, #tpu.memory_space<vmem>>, vector<8x128xf32>,
    return
  }
  func.func @transform_0(%arg0: i32) -> (i32, i32) {
    %c0_i32 = arith.constant 0 : i32
    %c0_i32_0 = arith.constant 0 : i32
    return %arg0, %c0_i32 : i32, i32
  }
  func.func @transform_1(%arg0: i32) -> (i32, i32) {
    %c0_i32 = arith.constant 0 : i32
    %c0_i32_0 = arith.constant 0 : i32
    %c0_i32_1 = arith.constant 0 : i32
    return %c0_i32, %c0_i32_0 : i32, i32
  }
  func.func @transform_2(%arg0: i32) -> (i32, i32) {
    %c0_i32 = arith.constant 0 : i32
    %c0_i32_0 = arith.constant 0 : i32
    %c0_i32_1 = arith.constant 0 : i32
    return %c0_i32, %c0_i32_0 : i32, i32
  }
  func.func @transform_3(%arg0: i32) -> (i32, i32) {
    %c0_i32 = arith.constant 0 : i32
    %c0_i32_0 = arith.constant 0 : i32
    %c0_i32_1 = arith.constant 0 : i32
    return %c0_i32, %c0_i32_0 : i32, i32
  }
  func.func @transform_4(%arg0: i32) -> (i32, i32) {
    %c0_i32 = arith.constant 0 : i32
    %c0_i32_0 = arith.constant 0 : i32
    %c0_i32_1 = arith.constant 0 : i32
    return %c0_i32, %c0_i32_0 : i32, i32
  }
  func.func @transform_5(%arg0: i32) -> (i32, i32) {
    %c0_i32 = arith.constant 0 : i32
    %c0_i32_0 = arith.constant 0 : i32
    %c0_i32_1 = arith.constant 0 : i32
    return %c0_i32, %c0_i32_0 : i32, i32
  }
  func.func @transform_6(%arg0: i32) -> (i32, i32) {
    %c0_i32 = arith.constant 0 : i32
    %c0_i32_0 = arith.constant 0 : i32
    %c0_i32_1 = arith.constant 0 : i32
    return %c0_i32, %c0_i32_0 : i32, i32
  }
  func.func @transform_7(%arg0: i32) -> (i32, i32) {
    %c0_i32 = arith.constant 0 : i32
    %c0_i32_0 = arith.constant 0 : i32
    return %arg0, %c0_i32 : i32, i32
  }
}

</mosaic_0001>

<bundles_post_ra>
// kernel: tpu_custom_call.1
= control target key start
LH: loop header
LB: loop body
LE: loop exit
PB: predicated region body
PF: predicated region fallthrough
CT: control target
= control target key end

     0   :  { %s5124_s0 = inlined_call_operand.vmem [shape: f32[1024,16], index: 0, kind: input, shape index: {}]   ;;  %s5125_s1 = inlined_call_operand.vmem [shape: f32[16,32], index: 1, kind: input, shape index: {}]   ;;  %s5126_s2 = inlined_call_operand.vmem [shape: f32[1,32], index: 2, kind: input, shape index: {}]   ;;  %s5127_s3 = inlined_call_operand.vmem [shape: f32[32,32], index: 3, kind: input, shape index: {}]   ;;  %s5128_s4 = inlined_call_operand.vmem [shape: f32[1,32], index: 4, kind: input, shape index: {}]   ;;  %s5129_s5 = inlined_call_operand.vmem [shape: f32[1,32], index: 5, kind: input, shape index: {}]   ;;  %s5130_s6 = inlined_call_operand.<no memory space> [shape: f32[1,1], index: 6, kind: input, shape index: {}]   ;;  %s5131_s7 = inlined_call_operand.hbm [shape: f32[8,128], index: 7, kind: output, shape index: {}]  }
   0x1   :  { %v12_v0 = vstv %s5130_s6 }
   0x2   :  { %13 = vst [vmem:[#allocation2] sm:$0x1] %v12_v0 }
   0x3   :  { %v158_v1 = vld [vmem:[%s5125_s1 + $0x8] sm:$0xff]  ;;  %v157_v2 = vld [vmem:[%s5125_s1] sm:$0xff]  ;;  %vm163_vm0 = vcmask 130048  }
   0x4   :  { %562 = vmatpush.msra.mxu0 %v158_v1  ;;  %v29_v3 = vld [vmem:[%s5124_s0] sm:$0xff]  ;;  %3346 = vmatpush.msra.mxu3 %v158_v1 }
   0x6   :  { %563 = vmatpush.msra.mxu0 %v157_v2  ;;  %3347 = vmatpush.msra.mxu3 %v157_v2 }
   0x7   :  { %14 = vsyncpa [#allocation4], 0  ;;  %3090 = vmatmul.msk.f32.vlgmr.msra.gmra.mxu0 %vm163_vm0, %v29_v3  ;;  %v30_v4 = vld [vmem:[%s5124_s0 + $0x8] sm:$0xff]  ;;  %v31_v5 = vld [vmem:[%s5124_s0 + $0x10] sm:$0xff]  ;;  %vm1085_vm1 = vcmask 261120   ;;  %v3394_v57 = vmov 0  }
   0x8   :  { %v32_v6 = vld [vmem:[%s5124_s0 + $0x18] sm:$0xff]  ;;  %v33_v7 = vld [vmem:[%s5124_s0 + $0x20] sm:$0xff]  ;;  %v34_v8 = vld [vmem:[%s5124_s0 + $0x28] sm:$0xff]  ;;  %3354 = vset.pattern.permute.xlu0 %v3394_v57  ;;  %vm2783_vm2 = vcmask 130112   ;;  %vm2787_vm3 = vcmask 195712   ;;  %vm2791_vm4 = vcmask 261312  }
   0x9   :  { %v35_v9 = vld [vmem:[%s5124_s0 + $0x30] sm:$0xff]  ;;  %v36_v10 = vld [vmem:[%s5124_s0 + $0x38] sm:$0xff]  ;;  %v37_v11 = vld [vmem:[%s5124_s0 + $0x40] sm:$0xff]  ;;  %vm2795_vm5 = vcmask 326912   ;;  %vm2799_vm6 = vcmask 392512   ;;  %vm2803_vm7 = vcmask 458112  }
   0xa   :  { %v38_v12 = vld [vmem:[%s5124_s0 + $0x48] sm:$0xff]  ;;  %v39_v13 = vld [vmem:[%s5124_s0 + $0x50] sm:$0xff]  ;;  %v40_v14 = vld [vmem:[%s5124_s0 + $0x58] sm:$0xff]  ;;  %vm2807_vm8 = vcmask 523712   ;;  %vm2811_vm9 = vcmask 589312   ;;  %vm2815_vm10 = vcmask 654912  }
   0xb   :  { %v1080_v15 = vld [vmem:[%s5127_s3 + $0x18] sm:$0xff]  ;;  %v1079_v16 = vld [vmem:[%s5127_s3 + $0x10] sm:$0xff]  ;;  %v41_v17 = vld [vmem:[%s5124_s0 + $0x60] sm:$0xff]  ;;  %vm2819_vm11 = vcmask 720512   ;;  %vm2823_vm12 = vcmask 786112   ;;  %vm5134_vm13 = vcmask 851712  }
   0xc   :  { %1482 = vmatpush.msra.mxu1 %v1080_v15  ;;  %3348 = vmatpush.msra.mxu2 %v1080_v15  ;;  %v1078_v18 = vld [vmem:[%s5127_s3 + $0x8] sm:$0xff]  ;;  %v1077_v19 = vld [vmem:[%s5127_s3] sm:$0xff]  ;;  %v43_v21 = vld [vmem:[%s5124_s0 + $0x70] sm:$0xff]  ;;  %vm5133_vm14 = vcmask 917312   ;;  %vm5132_vm15 = vcmask 982912   ;;  %s3081_s9 = sshll.u32 %s5131_s7, 4  ;;  %s3082_s9 = int_to_ptr.hbm [resolvable:$true] %s3081_s9 }
   0xd   :  { %v42_v20 = vld [vmem:[%s5124_s0 + $0x68] sm:$0xff]  ;;  %v44_v22 = vld [vmem:[%s5124_s0 + $0x78] sm:$0xff]  ;;  %v3524_v23 = vld [vmem:[%s5126_s2] ss:$0 sm:$0xff] }
   0xe   :  { %1483 = vmatpush.msra.mxu1 %v1079_v16  ;;  %3349 = vmatpush.msra.mxu2 %v1079_v16  ;;  %v45_v25 = vld [vmem:[%s5124_s0 + $0x80] sm:$0xff]  ;;  %v46_v29 = vld [vmem:[%s5124_s0 + $0x88] sm:$0xff]  ;;  %v47_v33 = vld [vmem:[%s5124_s0 + $0x90] sm:$0xff] }
   0xf   :  { %3091 = vmatmul.msk.f32.gmra.mxu0 %vm163_vm0, %v30_v4  ;;  %v48_v37 = vld [vmem:[%s5124_s0 + $0x98] sm:$0xff]  ;;  %v49_v41 = vld [vmem:[%s5124_s0 + $0xa0] sm:$0xff]  ;;  %v50_v45 = vld [vmem:[%s5124_s0 + $0xa8] sm:$0xff] }
  0x10   :  { %1484 = vmatpush.msra.mxu1 %v1078_v18  ;;  %3350 = vmatpush.msra.mxu2 %v1078_v18  ;;  %v51_v49 = vld [vmem:[%s5124_s0 + $0xb0] sm:$0xff]  ;;  %v52_v53 = vld [vmem:[%s5124_s0 + $0xb8] sm:$0xff]  ;;  %v3356_v56 = vld [vmem:[#allocation2] ss:$0 sm:$0xff] }
  0x11   :  { %2519 = vperm.xlu0 %3354, %v3356_v56   ;;  %v53_v59 = vld [vmem:[%s5124_s0 + $0xc0] sm:$0xff]  ;;  %v54_v63 = vld [vmem:[%s5124_s0 + $0xc8] sm:$0xff]  ;;  %v55_v3 = vld [vmem:[%s5124_s0 + $0xd0] sm:$0xff] }
  0x12   :  { %1485 = vmatpush.msra.mxu1 %v1077_v19  ;;  %3351 = vmatpush.msra.mxu2 %v1077_v19  ;;  %v58_v15 = vld [vmem:[%s5124_s0 + $0xe8] sm:$0xff]  ;;  %v59_v19 = vld [vmem:[%s5124_s0 + $0xf0] sm:$0xff]  ;;  %v64_v56 = vld [vmem:[%s5124_s0 + $0x118] sm:$0xff] }
  0x17   :  { %3092 = vmatmul.msk.f32.gmra.mxu0 %vm163_vm0, %v31_v5 }
  0x1f   :  { %3093 = vmatmul.msk.f32.gmra.mxu0 %vm163_vm0, %v32_v6 }
  0x27   :  { %3094 = vmatmul.msk.f32.gmra.mxu0 %vm163_vm0, %v33_v7  ;;  %v56_v7 = vld [vmem:[%s5124_s0 + $0xd8] sm:$0xff] }
  0x2f   :  { %3095 = vmatmul.msk.f32.gmra.mxu0 %vm163_vm0, %v34_v8 }
  0x37   :  { %3096 = vmatmul.msk.f32.gmra.mxu0 %vm163_vm0, %v35_v9 }
  0x3f   :  { %3097 = vmatmul.msk.f32.gmra.mxu0 %vm163_vm0, %v36_v10 }
  0x47   :  { %3098 = vmatmul.msk.f32.gmra.mxu0 %vm163_vm0, %v37_v11  ;;  %v57_v11 = vld [vmem:[%s5124_s0 + $0xe0] sm:$0xff] }
  0x4f   :  { %3099 = vmatmul.msk.f32.gmra.mxu0 %vm163_vm0, %v38_v12 }
  0x57   :  { %3100 = vmatmul.msk.f32.gmra.mxu0 %vm163_vm0, %v39_v13 }
  0x5f   :  { %3101 = vmatmul.msk.f32.gmra.mxu0 %vm163_vm0, %v40_v14 }
  0x67   :  { %3102 = vmatmul.msk.f32.gmra.mxu0 %vm163_vm0, %v41_v17 }
  0x6f   :  { %3103 = vmatmul.msk.f32.gmra.mxu0 %vm163_vm0, %v42_v20 }
  0x77   :  { %3104 = vmatmul.msk.f32.gmra.mxu0 %vm163_vm0, %v43_v21 }
  0x7f   :  { %3105 = vmatmul.msk.f32.gmra.mxu0 %vm163_vm0, %v44_v22 }
  0x84   :  { %v565_v24 = vpop.f32.mrf.mxu0 }
  0x85   :  { %v566_v26 = vadd.f32 %v3524_v23, %v565_v24  ;;  %v60_v24 = vld [vmem:[%s5124_s0 + $0xf8] sm:$0xff] }
  0x87   :  { %v949_v27 = vmax.f32 %v566_v26, 0.0  ;;  %3106 = vmatmul.msk.f32.gmra.mxu0 %vm163_vm0, %v45_v25 }
  0x89   :  { %3218 = vmatmul.msk.f32.vlgmr.msra.gmra.mxu1 %vm1085_vm1, %v949_v27  ;;  %v3625_v27 = vld [vmem:[%s5128_s4] ss:$0 sm:$0xff] }
  0x8c   :  { %v568_v28 = vpop.f32.mrf.mxu0 }
  0x8d   :  { %v569_v30 = vadd.f32 %v3524_v23, %v568_v28 }
  0x8f   :  { %v950_v31 = vmax.f32 %v569_v30, 0.0  ;;  %3107 = vmatmul.msk.f32.gmra.mxu0 %vm163_vm0, %v46_v29  ;;  %v61_v29 = vld [vmem:[%s5124_s0 + $0x100] sm:$0xff] }
  0x91   :  { %3219 = vmatmul.msk.f32.gmra.mxu1 %vm1085_vm1, %v950_v31 }
  0x94   :  { %v571_v32 = vpop.f32.mrf.mxu0 }
  0x95   :  { %v572_v34 = vadd.f32 %v3524_v23, %v571_v32 }
  0x97   :  { %v951_v35 = vmax.f32 %v572_v34, 0.0  ;;  %3108 = vmatmul.msk.f32.gmra.mxu0 %vm163_vm0, %v47_v33  ;;  %v3636_v34 = vld [vmem:[%s5129_s5] ss:$0 sm:$0xff] }
  0x99   :  { %3220 = vmatmul.msk.f32.gmra.mxu1 %vm1085_vm1, %v951_v35 }
  0x9c   :  { %v574_v36 = vpop.f32.mrf.mxu0 }
  0x9d   :  { %v575_v38 = vadd.f32 %v3524_v23, %v574_v36 }
  0x9f   :  { %v952_v39 = vmax.f32 %v575_v38, 0.0  ;;  %3109 = vmatmul.msk.f32.gmra.mxu0 %vm163_vm0, %v48_v37  ;;  %v62_v38 = vld [vmem:[%s5124_s0 + $0x108] sm:$0xff] }
  0xa1   :  { %3221 = vmatmul.msk.f32.gmra.mxu1 %vm1085_vm1, %v952_v39 }
  0xa4   :  { %v577_v40 = vpop.f32.mrf.mxu0 }
  0xa5   :  { %v578_v42 = vadd.f32 %v3524_v23, %v577_v40 }
  0xa7   :  { %v953_v43 = vmax.f32 %v578_v42, 0.0  ;;  %3110 = vmatmul.msk.f32.gmra.mxu0 %vm163_vm0, %v49_v41 }
  0xa9   :  { %3222 = vmatmul.msk.f32.gmra.mxu1 %vm1085_vm1, %v953_v43 }
  0xac   :  { %v580_v44 = vpop.f32.mrf.mxu0 }
  0xad   :  { %v581_v46 = vadd.f32 %v3524_v23, %v580_v44 }
  0xaf   :  { %v954_v47 = vmax.f32 %v581_v46, 0.0  ;;  %3111 = vmatmul.msk.f32.gmra.mxu0 %vm163_vm0, %v50_v45 }
  0xb1   :  { %3223 = vmatmul.msk.f32.gmra.mxu1 %vm1085_vm1, %v954_v47  ;;  %v63_v47 = vld [vmem:[%s5124_s0 + $0x110] sm:$0xff] }
  0xb4   :  { %v583_v48 = vpop.f32.mrf.mxu0 }
  0xb5   :  { %v584_v50 = vadd.f32 %v3524_v23, %v583_v48 }
  0xb7   :  { %v955_v51 = vmax.f32 %v584_v50, 0.0  ;;  %3112 = vmatmul.msk.f32.gmra.mxu0 %vm163_vm0, %v51_v49 }
  0xb9   :  { %3224 = vmatmul.msk.f32.gmra.mxu1 %vm1085_vm1, %v955_v51 }
  0xbc   :  { %v586_v52 = vpop.f32.mrf.mxu0 }
  0xbd   :  { %v587_v54 = vadd.f32 %v3524_v23, %v586_v52 }
  0xbf   :  { %v956_v55 = vmax.f32 %v587_v54, 0.0  ;;  %3113 = vmatmul.msk.f32.gmra.mxu0 %vm163_vm0, %v52_v53 }
  0xc1   :  { %3225 = vmatmul.msk.f32.gmra.mxu1 %vm1085_vm1, %v956_v55 }
  0xc4   :  { %v589_v58 = vpop.f32.mrf.mxu0 }
  0xc5   :  { %v590_v60 = vadd.f32 %v3524_v23, %v589_v58 }
  0xc7   :  { %v957_v61 = vmax.f32 %v590_v60, 0.0  ;;  %3114 = vmatmul.msk.f32.gmra.mxu0 %vm163_vm0, %v53_v59 }
  0xc9   :  { %3226 = vmatmul.msk.f32.gmra.mxu1 %vm1085_vm1, %v957_v61 }
  0xcc   :  { %v592_v62 = vpop.f32.mrf.mxu0 }
  0xcd   :  { %v593_v0 = vadd.f32 %v3524_v23, %v592_v62 }
  0xcf   :  { %v958_v1 = vmax.f32 %v593_v0, 0.0  ;;  %3115 = vmatmul.msk.f32.gmra.mxu0 %vm163_vm0, %v54_v63 }
  0xd1   :  { %3227 = vmatmul.msk.f32.gmra.mxu1 %vm1085_vm1, %v958_v1  ;;  %v65_v1 = vld [vmem:[%s5124_s0 + $0x120] sm:$0xff] }
  0xd4   :  { %v595_v2 = vpop.f32.mrf.mxu0 }
  0xd5   :  { %v596_v4 = vadd.f32 %v3524_v23, %v595_v2 }
  0xd7   :  { %v959_v5 = vmax.f32 %v596_v4, 0.0  ;;  %3116 = vmatmul.msk.f32.gmra.mxu0 %vm163_vm0, %v55_v3 }
  0xd9   :  { %3228 = vmatmul.msk.f32.gmra.mxu1 %vm1085_vm1, %v959_v5 }
  0xdc   :  { %v598_v6 = vpop.f32.mrf.mxu0 }
  0xdd   :  { %v599_v8 = vadd.f32 %v3524_v23, %v598_v6 }
  0xdf   :  { %v960_v9 = vmax.f32 %v599_v8, 0.0  ;;  %3117 = vmatmul.msk.f32.gmra.mxu0 %vm163_vm0, %v56_v7 }
  0xe1   :  { %3229 = vmatmul.msk.f32.gmra.mxu1 %vm1085_vm1, %v960_v9 }
  0xe4   :  { %v601_v10 = vpop.f32.mrf.mxu0 }
  0xe5   :  { %v602_v12 = vadd.f32 %v3524_v23, %v601_v10  ;;  %v66_v10 = vld [vmem:[%s5124_s0 + $0x128] sm:$0xff] }
  0xe7   :  { %v961_v13 = vmax.f32 %v602_v12, 0.0  ;;  %3118 = vmatmul.msk.f32.gmra.mxu0 %vm163_vm0, %v57_v11 }
  0xe9   :  { %3230 = vmatmul.msk.f32.gmra.mxu1 %vm1085_vm1, %v961_v13 }
  0xec   :  { %v604_v14 = vpop.f32.mrf.mxu0 }
  0xed   :  { %v605_v16 = vadd.f32 %v3524_v23, %v604_v14 }
  0xef   :  { %v962_v17 = vmax.f32 %v605_v16, 0.0  ;;  %3119 = vmatmul.msk.f32.gmra.mxu0 %vm163_vm0, %v58_v15 }
  0xf1   :  { %3231 = vmatmul.msk.f32.gmra.mxu1 %vm1085_vm1, %v962_v17 }
  0xf4   :  { %v607_v18 = vpop.f32.mrf.mxu0 }
  0xf5   :  { %v608_v20 = vadd.f32 %v3524_v23, %v607_v18 }
  0xf7   :  { %v963_v21 = vmax.f32 %v608_v20, 0.0  ;;  %3120 = vmatmul.msk.f32.gmra.mxu0 %vm163_vm0, %v59_v19  ;;  %v67_v19 = vld [vmem:[%s5124_s0 + $0x130] sm:$0xff] }
  0xf9   :  { %3232 = vmatmul.msk.f32.gmra.mxu1 %vm1085_vm1, %v963_v21 }
  0xfc   :  { %v610_v22 = vpop.f32.mrf.mxu0 }
  0xfd   :  { %v611_v25 = vadd.f32 %v3524_v23, %v610_v22 }
  0xff   :  { %v964_v26 = vmax.f32 %v611_v25, 0.0  ;;  %3121 = vmatmul.msk.f32.gmra.mxu0 %vm163_vm0, %v60_v24 }
 0x101   :  { %3233 = vmatmul.msk.f32.gmra.mxu1 %vm1085_vm1, %v964_v26 }
 0x104   :  { %v613_v28 = vpop.f32.mrf.mxu0 }
 0x105   :  { %v614_v30 = vadd.f32 %v3524_v23, %v613_v28 }
 0x106   :  { %v1487_v31 = vpop.f32.mrf.mxu1 }
 0x107   :  { %v965_v32 = vmax.f32 %v614_v30, 0.0  ;;  %v1488_v33 = vadd.f32 %v3625_v27, %v1487_v31  ;;  %3122 = vmatmul.msk.f32.gmra.mxu0 %vm163_vm0, %v61_v29  ;;  %v68_v30 = vld [vmem:[%s5124_s0 + $0x138] sm:$0xff] }
 0x109   :  { %v1871_v35 = vmax.f32 %v1488_v33, 0.0  ;;  %3234 = vmatmul.msk.f32.gmra.mxu1 %vm1085_vm1, %v965_v32 }
 0x10b   :  { %v2003_v36 = vmul.f32 %v3636_v34, %v1871_v35 }
 0x10c   :  { %v616_v37 = vpop.f32.mrf.mxu0 }
 0x10d   :  { %v617_v39 = vadd.f32 %v3524_v23, %v616_v37  ;;  %v2131_v40 = vsel %vm1085_vm1, %v2003_v36, 0.0 }
 0x10e   :  { %v1490_v41 = vpop.f32.mrf.mxu1  ;;  %2132 = vadd.xlane.f32.xlu0 %v2131_v40  ;;  %v69_v40 = vld [vmem:[%s5124_s0 + $0x140] sm:$0xff] }
 0x10f   :  { %v966_v42 = vmax.f32 %v617_v39, 0.0  ;;  %v1491_v43 = vadd.f32 %v3625_v27, %v1490_v41  ;;  %3123 = vmatmul.msk.f32.gmra.mxu0 %vm163_vm0, %v62_v38 }
 0x111   :  { %v1872_v44 = vmax.f32 %v1491_v43, 0.0  ;;  %3235 = vmatmul.msk.f32.gmra.mxu1 %vm1085_vm1, %v966_v42 }
 0x113   :  { %v2004_v45 = vmul.f32 %v3636_v34, %v1872_v44 }
 0x114   :  { %v619_v46 = vpop.f32.mrf.mxu0 }
 0x115   :  { %v620_v48 = vadd.f32 %v3524_v23, %v619_v46  ;;  %v2134_v49 = vsel %vm1085_vm1, %v2004_v45, 0.0 }
 0x116   :  { %v1493_v50 = vpop.f32.mrf.mxu1  ;;  %2135 = vadd.xlane.f32.xlu0 %v2134_v49  ;;  %v70_v49 = vld [vmem:[%s5124_s0 + $0x148] sm:$0xff] }
 0x117   :  { %v967_v51 = vmax.f32 %v620_v48, 0.0  ;;  %v1494_v52 = vadd.f32 %v3625_v27, %v1493_v50  ;;  %3124 = vmatmul.msk.f32.gmra.mxu0 %vm163_vm0, %v63_v47 }
 0x119   :  { %v1873_v53 = vmax.f32 %v1494_v52, 0.0  ;;  %3236 = vmatmul.msk.f32.gmra.mxu1 %vm1085_vm1, %v967_v51 }
 0x11b   :  { %v2005_v54 = vmul.f32 %v3636_v34, %v1873_v53 }
 0x11c   :  { %v622_v55 = vpop.f32.mrf.mxu0 }
 0x11d   :  { %v623_v57 = vadd.f32 %v3524_v23, %v622_v55  ;;  %v2137_v58 = vsel %vm1085_vm1, %v2005_v54, 0.0 }
 0x11e   :  { %v1496_v59 = vpop.f32.mrf.mxu1  ;;  %2138 = vadd.xlane.f32.xlu1 %v2137_v58  ;;  %v71_v58 = vld [vmem:[%s5124_s0 + $0x150] sm:$0xff] }
 0x11f   :  { %v968_v60 = vmax.f32 %v623_v57, 0.0  ;;  %v1497_v61 = vadd.f32 %v3625_v27, %v1496_v59  ;;  %3125 = vmatmul.msk.f32.gmra.mxu0 %vm163_vm0, %v64_v56 }
 0x121   :  { %v1874_v62 = vmax.f32 %v1497_v61, 0.0  ;;  %3237 = vmatmul.msk.f32.gmra.mxu1 %vm1085_vm1, %v968_v60 }
 0x123   :  { %v2006_v63 = vmul.f32 %v3636_v34, %v1874_v62 }
 0x124   :  { %v625_v0 = vpop.f32.mrf.mxu0 }
 0x125   :  { %v626_v2 = vadd.f32 %v3524_v23, %v625_v0  ;;  %v2140_v3 = vsel %vm1085_vm1, %v2006_v63, 0.0 }
 0x126   :  { %v1499_v4 = vpop.f32.mrf.mxu1  ;;  %2141 = vadd.xlane.f32.xlu1 %v2140_v3  ;;  %v72_v3 = vld [vmem:[%s5124_s0 + $0x158] sm:$0xff] }
 0x127   :  { %v969_v5 = vmax.f32 %v626_v2, 0.0  ;;  %v1500_v6 = vadd.f32 %v3625_v27, %v1499_v4  ;;  %3126 = vmatmul.msk.f32.gmra.mxu0 %vm163_vm0, %v65_v1 }
 0x129   :  { %v1875_v7 = vmax.f32 %v1500_v6, 0.0  ;;  %3238 = vmatmul.msk.f32.gmra.mxu1 %vm1085_vm1, %v969_v5 }
 0x12b   :  { %v2007_v8 = vmul.f32 %v3636_v34, %v1875_v7 }
 0x12c   :  { %v628_v9 = vpop.f32.mrf.mxu0 }
 0x12d   :  { %v629_v11 = vadd.f32 %v3524_v23, %v628_v9  ;;  %v2143_v12 = vsel %vm1085_vm1, %v2007_v8, 0.0 }
 0x12e   :  { %v1502_v13 = vpop.f32.mrf.mxu1  ;;  %2144 = vadd.xlane.f32.xlu2 %v2143_v12  ;;  %v73_v12 = vld [vmem:[%s5124_s0 + $0x160] sm:$0xff] }
 0x12f   :  { %v970_v14 = vmax.f32 %v629_v11, 0.0  ;;  %v1503_v15 = vadd.f32 %v3625_v27, %v1502_v13  ;;  %3127 = vmatmul.msk.f32.gmra.mxu0 %vm163_vm0, %v66_v10 }
 0x131   :  { %v1876_v16 = vmax.f32 %v1503_v15, 0.0  ;;  %3239 = vmatmul.msk.f32.gmra.mxu1 %vm1085_vm1, %v970_v14 }
 0x133   :  { %v2008_v17 = vmul.f32 %v3636_v34, %v1876_v16 }
 0x134   :  { %v631_v18 = vpop.f32.mrf.mxu0 }
 0x135   :  { %v632_v20 = vadd.f32 %v3524_v23, %v631_v18  ;;  %v2146_v21 = vsel %vm1085_vm1, %v2008_v17, 0.0 }
 0x136   :  { %v1505_v22 = vpop.f32.mrf.mxu1  ;;  %2147 = vadd.xlane.f32.xlu2 %v2146_v21  ;;  %v74_v21 = vld [vmem:[%s5124_s0 + $0x168] sm:$0xff] }
 0x137   :  { %v971_v24 = vmax.f32 %v632_v20, 0.0  ;;  %v1506_v25 = vadd.f32 %v3625_v27, %v1505_v22  ;;  %3128 = vmatmul.msk.f32.gmra.mxu0 %vm163_vm0, %v67_v19 }
 0x139   :  { %v1877_v26 = vmax.f32 %v1506_v25, 0.0  ;;  %3240 = vmatmul.msk.f32.gmra.mxu1 %vm1085_vm1, %v971_v24 }
 0x13b   :  { %v2009_v28 = vmul.f32 %v3636_v34, %v1877_v26 }
 0x13c   :  { %v634_v29 = vpop.f32.mrf.mxu0 }
 0x13d   :  { %v635_v31 = vadd.f32 %v3524_v23, %v634_v29  ;;  %v2149_v32 = vsel %vm1085_vm1, %v2009_v28, 0.0 }
 0x13e   :  { %v1508_v33 = vpop.f32.mrf.mxu1  ;;  %2150 = vadd.xlane.f32.xlu0 %v2149_v32  ;;  %v75_v32 = vld [vmem:[%s5124_s0 + $0x170] sm:$0xff] }
 0x13f   :  { %v972_v35 = vmax.f32 %v635_v31, 0.0  ;;  %v1509_v36 = vadd.f32 %v3625_v27, %v1508_v33  ;;  %3129 = vmatmul.msk.f32.gmra.mxu0 %vm163_vm0, %v68_v30 }
 0x141   :  { %v1878_v37 = vmax.f32 %v1509_v36, 0.0  ;;  %3241 = vmatmul.msk.f32.gmra.mxu1 %vm1085_vm1, %v972_v35 }
 0x143   :  { %v2010_v38 = vmul.f32 %v3636_v34, %v1878_v37 }
 0x144   :  { %v637_v39 = vpop.f32.mrf.mxu0 }
 0x145   :  { %v638_v41 = vadd.f32 %v3524_v23, %v637_v39  ;;  %v2152_v42 = vsel %vm1085_vm1, %v2010_v38, 0.0  ;;  %v3764_v39 = vpop.permute.xlu0 %2519 }
 0x146   :  { %v1511_v43 = vpop.f32.mrf.mxu1  ;;  %2153 = vadd.xlane.f32.xlu1 %v2152_v42 }
 0x147   :  { %v973_v44 = vmax.f32 %v638_v41, 0.0  ;;  %v1512_v45 = vadd.f32 %v3625_v27, %v1511_v43  ;;  %3130 = vmatmul.msk.f32.gmra.mxu0 %vm163_vm0, %v69_v40  ;;  %v76_v43 = vld [vmem:[%s5124_s0 + $0x178] sm:$0xff] }
 0x149   :  { %v1879_v46 = vmax.f32 %v1512_v45, 0.0  ;;  %3242 = vmatmul.msk.f32.gmra.mxu1 %vm1085_vm1, %v973_v44 }
 0x14b   :  { %v2011_v47 = vmul.f32 %v3636_v34, %v1879_v46 }
 0x14c   :  { %v640_v48 = vpop.f32.mrf.mxu0 }
 0x14d   :  { %v641_v50 = vadd.f32 %v3524_v23, %v640_v48  ;;  %v2155_v51 = vsel %vm1085_vm1, %v2011_v47, 0.0 }
 0x14e   :  { %v1514_v52 = vpop.f32.mrf.mxu1  ;;  %2156 = vadd.xlane.f32.xlu2 %v2155_v51  ;;  %v2778_v51 = vlaneseq }
 0x14f   :  { %v974_v53 = vmax.f32 %v641_v50, 0.0  ;;  %v1515_v54 = vadd.f32 %v3625_v27, %v1514_v52  ;;  %3131 = vmatmul.msk.f32.gmra.mxu0 %vm163_vm0, %v70_v49 }
 0x151   :  { %v1880_v55 = vmax.f32 %v1515_v54, 0.0  ;;  %3243 = vmatmul.msk.f32.gmra.mxu1 %vm1085_vm1, %v974_v53  ;;  %v77_v54 = vld [vmem:[%s5124_s0 + $0x180] sm:$0xff] }
 0x153   :  { %v2012_v56 = vmul.f32 %v3636_v34, %v1880_v55 }
 0x154   :  { %v643_v57 = vpop.f32.mrf.mxu0 }
 0x155   :  { %v644_v59 = vadd.f32 %v3524_v23, %v643_v57  ;;  %v2158_v60 = vsel %vm1085_vm1, %v2012_v56, 0.0  ;;  %v3782_v57 = vand.u32 127, %v2778_v51 }
 0x156   :  { %v1517_v61 = vpop.f32.mrf.mxu1  ;;  %2159 = vadd.xlane.f32.xlu0 %v2158_v60 }
 0x157   :  { %v975_v62 = vmax.f32 %v644_v59, 0.0  ;;  %v1518_v63 = vadd.f32 %v3625_v27, %v1517_v61  ;;  %3132 = vmatmul.msk.f32.gmra.mxu0 %vm163_vm0, %v71_v58 }
 0x159   :  { %v1881_v0 = vmax.f32 %v1518_v63, 0.0  ;;  %3244 = vmatmul.msk.f32.gmra.mxu1 %vm1085_vm1, %v975_v62  ;;  %v3788_v62 = vadd.s32 4294967288, %v3782_v57 }
 0x15b   :  { %v2013_v1 = vmul.f32 %v3636_v34, %v1881_v0 }
 0x15c   :  { %v646_v2 = vpop.f32.mrf.mxu0 }
 0x15d   :  { %v647_v4 = vadd.f32 %v3524_v23, %v646_v2  ;;  %v2161_v5 = vsel %vm1085_vm1, %v2013_v1, 0.0 }
 0x15e   :  { %v1520_v6 = vpop.f32.mrf.mxu1  ;;  %2162 = vadd.xlane.f32.xlu1 %v2161_v5 }
 0x15f   :  { %v976_v7 = vmax.f32 %v647_v4, 0.0  ;;  %v1521_v8 = vadd.f32 %v3625_v27, %v1520_v6  ;;  %3133 = vmatmul.msk.f32.gmra.mxu0 %vm163_vm0, %v72_v3  ;;  %v78_v6 = vld [vmem:[%s5124_s0 + $0x188] sm:$0xff] }
 0x161   :  { %v1882_v9 = vmax.f32 %v1521_v8, 0.0  ;;  %3245 = vmatmul.msk.f32.gmra.mxu1 %vm1085_vm1, %v976_v7 }
 0x163   :  { %v2014_v10 = vmul.f32 %v3636_v34, %v1882_v9 }
 0x164   :  { %v649_v11 = vpop.f32.mrf.mxu0 }
 0x165   :  { %v650_v13 = vadd.f32 %v3524_v23, %v649_v11  ;;  %v2164_v14 = vsel %vm1085_vm1, %v2014_v10, 0.0 }
 0x166   :  { %v1523_v15 = vpop.f32.mrf.mxu1  ;;  %2165 = vadd.xlane.f32.xlu2 %v2164_v14 }
 0x167   :  { %v977_v16 = vmax.f32 %v650_v13, 0.0  ;;  %v1524_v17 = vadd.f32 %v3625_v27, %v1523_v15  ;;  %3134 = vmatmul.msk.f32.gmra.mxu0 %vm163_vm0, %v73_v12  ;;  %v3804_v13 = vadd.s32 4294967280, %v3782_v57 }
 0x169   :  { %v1883_v18 = vmax.f32 %v1524_v17, 0.0  ;;  %3246 = vmatmul.msk.f32.gmra.mxu1 %vm1085_vm1, %v977_v16 }
 0x16b   :  { %v2015_v19 = vmul.f32 %v3636_v34, %v1883_v18 }
 0x16c   :  { %v652_v20 = vpop.f32.mrf.mxu0 }
 0x16d   :  { %v653_v22 = vadd.f32 %v3524_v23, %v652_v20  ;;  %v2167_v24 = vsel %vm1085_vm1, %v2015_v19, 0.0  ;;  %v79_v20 = vld [vmem:[%s5124_s0 + $0x190] sm:$0xff] }
 0x16e   :  { %v1526_v25 = vpop.f32.mrf.mxu1  ;;  %2168 = vadd.xlane.f32.xlu0 %v2167_v24 }
 0x16f   :  { %v978_v26 = vmax.f32 %v653_v22, 0.0  ;;  %v1527_v28 = vadd.f32 %v3625_v27, %v1526_v25  ;;  %3135 = vmatmul.msk.f32.gmra.mxu0 %vm163_vm0, %v74_v21 }
 0x171   :  { %v1884_v29 = vmax.f32 %v1527_v28, 0.0  ;;  %3247 = vmatmul.msk.f32.gmra.mxu1 %vm1085_vm1, %v978_v26 }
 0x173   :  { %v2016_v30 = vmul.f32 %v3636_v34, %v1884_v29  ;;  %v3819_v29 = vadd.s32 4294967272, %v3782_v57 }
 0x174   :  { %v655_v31 = vpop.f32.mrf.mxu0 }
 0x175   :  { %v656_v33 = vadd.f32 %v3524_v23, %v655_v31  ;;  %v2170_v35 = vsel %vm1085_vm1, %v2016_v30, 0.0 }
 0x176   :  { %v1529_v36 = vpop.f32.mrf.mxu1  ;;  %2171 = vadd.xlane.f32.xlu1 %v2170_v35 }
 0x177   :  { %v979_v37 = vmax.f32 %v656_v33, 0.0  ;;  %v1530_v38 = vadd.f32 %v3625_v27, %v1529_v36  ;;  %3136 = vmatmul.msk.f32.gmra.mxu0 %vm163_vm0, %v75_v32 }
 0x179   :  { %v1885_v40 = vmax.f32 %v1530_v38, 0.0  ;;  %3248 = vmatmul.msk.f32.gmra.mxu1 %vm1085_vm1, %v979_v37  ;;  %v80_v37 = vld [vmem:[%s5124_s0 + $0x198] sm:$0xff] }
 0x17b   :  { %v2017_v41 = vmul.f32 %v3636_v34, %v1885_v40 }
 0x17c   :  { %v658_v42 = vpop.f32.mrf.mxu0 }
 0x17d   :  { %v659_v44 = vadd.f32 %v3524_v23, %v658_v42  ;;  %v2173_v45 = vsel %vm1085_vm1, %v2017_v41, 0.0 }
 0x17e   :  { %v1532_v46 = vpop.f32.mrf.mxu1  ;;  %2174 = vadd.xlane.f32.xlu2 %v2173_v45  ;;  %v3834_v45 = vadd.s32 4294967264, %v3782_v57 }
 0x17f   :  { %v980_v47 = vmax.f32 %v659_v44, 0.0  ;;  %v1533_v48 = vadd.f32 %v3625_v27, %v1532_v46  ;;  %3137 = vmatmul.msk.f32.gmra.mxu0 %vm163_vm0, %v76_v43 }
 0x181   :  { %v1886_v49 = vmax.f32 %v1533_v48, 0.0  ;;  %3249 = vmatmul.msk.f32.gmra.mxu1 %vm1085_vm1, %v980_v47  ;;  %v2133_v50 = vpop.xlane.xlu0 %2132 }
 0x182   :  { %v2522_v61 = vadd.f32 %v3764_v39, %v2133_v50 }
 0x183   :  { %v2018_v52 = vmul.f32 %v3636_v34, %v1886_v49 }
 0x184   :  { %v661_v53 = vpop.f32.mrf.mxu0  ;;  %v2780_v3 = vperm.slane %v2522_v61, %v3782_v57 }
 0x185   :  { %v662_v55 = vadd.f32 %v3524_v23, %v661_v53  ;;  %v2176_v56 = vsel %vm1085_vm1, %v2018_v52, 0.0  ;;  %v81_v52 = vld [vmem:[%s5124_s0 + $0x1a0] sm:$0xff] }
 0x186   :  { %v1535_v58 = vpop.f32.mrf.mxu1  ;;  %2177 = vadd.xlane.f32.xlu0 %v2176_v56 }
 0x187   :  { %v981_v59 = vmax.f32 %v662_v55, 0.0  ;;  %v1536_v60 = vadd.f32 %v3625_v27, %v1535_v58  ;;  %3138 = vmatmul.msk.f32.gmra.mxu0 %vm163_vm0, %v77_v54 }
 0x189   :  { %v1887_v63 = vmax.f32 %v1536_v60, 0.0  ;;  %3250 = vmatmul.msk.f32.gmra.mxu1 %vm1085_vm1, %v981_v59  ;;  %v2136_v0 = vpop.xlane.xlu0 %2135  ;;  %v3849_v60 = vadd.s32 4294967256, %v3782_v57 }
 0x18a   :  { %v2523_v1 = vadd.f32 %v3764_v39, %v2136_v0 }
 0x18b   :  { %v2019_v2 = vmul.f32 %v3636_v34, %v1887_v63 }
 0x18c   :  { %v2782_v4 = vperm.slane %v2523_v1, %v3788_v62  ;;  %v664_v5 = vpop.f32.mrf.mxu0 }
 0x18d   :  { %v665_v7 = vadd.f32 %v3524_v23, %v664_v5  ;;  %v2179_v8 = vsel %vm1085_vm1, %v2019_v2, 0.0 }
 0x18e   :  { %v2784_v9 = vsel %vm2783_vm2, %v2782_v4, %v2780_v3  ;;  %v1538_v10 = vpop.f32.mrf.mxu1  ;;  %2180 = vadd.xlane.f32.xlu1 %v2179_v8  ;;  %v82_v4 = vld [vmem:[%s5124_s0 + $0x1a8] sm:$0xff] }
 0x18f   :  { %v982_v11 = vmax.f32 %v665_v7, 0.0  ;;  %v1539_v12 = vadd.f32 %v3625_v27, %v1538_v10  ;;  %3139 = vmatmul.msk.f32.gmra.mxu0 %vm163_vm0, %v78_v6 }
 0x191   :  { %v1888_v14 = vmax.f32 %v1539_v12, 0.0  ;;  %3251 = vmatmul.msk.f32.gmra.mxu1 %vm1085_vm1, %v982_v11  ;;  %v2139_v15 = vpop.xlane.xlu1 %2138  ;;  %v3864_v11 = vadd.s32 4294967248, %v3782_v57 }
 0x192   :  { %v2524_v16 = vadd.f32 %v3764_v39, %v2139_v15 }
 0x193   :  { %v2020_v17 = vmul.f32 %v3636_v34, %v1888_v14 }
 0x194   :  { %v2786_v18 = vperm.slane %v2524_v16, %v3804_v13  ;;  %v667_v19 = vpop.f32.mrf.mxu0 }
 0x195   :  { %v668_v21 = vadd.f32 %v3524_v23, %v667_v19  ;;  %v2182_v22 = vsel %vm1085_vm1, %v2020_v17, 0.0  ;;  %v83_v19 = vld [vmem:[%s5124_s0 + $0x1b0] sm:$0xff] }
 0x196   :  { %v2788_v24 = vsel %vm2787_vm3, %v2786_v18, %v2784_v9  ;;  %v1541_v25 = vpop.f32.mrf.mxu1  ;;  %2183 = vadd.xlane.f32.xlu2 %v2182_v22 }
 0x197   :  { %v983_v26 = vmax.f32 %v668_v21, 0.0  ;;  %v1542_v28 = vadd.f32 %v3625_v27, %v1541_v25  ;;  %3140 = vmatmul.msk.f32.gmra.mxu0 %vm163_vm0, %v79_v20 }
 0x199   :  { %v1889_v30 = vmax.f32 %v1542_v28, 0.0  ;;  %3252 = vmatmul.msk.f32.gmra.mxu1 %vm1085_vm1, %v983_v26  ;;  %v2142_v31 = vpop.xlane.xlu1 %2141  ;;  %v3879_v28 = vadd.s32 4294967240, %v3782_v57 }
 0x19a   :  { %v2525_v32 = vadd.f32 %v3764_v39, %v2142_v31 }
 0x19b   :  { %v2021_v33 = vmul.f32 %v3636_v34, %v1889_v30 }
 0x19c   :  { %v2790_v35 = vperm.slane %v2525_v32, %v3819_v29  ;;  %v670_v36 = vpop.f32.mrf.mxu0 }
 0x19d   :  { %v671_v38 = vadd.f32 %v3524_v23, %v670_v36  ;;  %v2185_v40 = vsel %vm1085_vm1, %v2021_v33, 0.0 }
 0x19e   :  { %v2792_v41 = vsel %vm2791_vm4, %v2790_v35, %v2788_v24  ;;  %v1544_v42 = vpop.f32.mrf.mxu1  ;;  %2186 = vadd.xlane.f32.xlu0 %v2185_v40 }
 0x19f   :  { %v984_v43 = vmax.f32 %v671_v38, 0.0  ;;  %v1545_v44 = vadd.f32 %v3625_v27, %v1544_v42  ;;  %3141 = vmatmul.msk.f32.gmra.mxu0 %vm163_vm0, %v80_v37  ;;  %v84_v37 = vld [vmem:[%s5124_s0 + $0x1b8] sm:$0xff] }
 0x1a1   :  { %v1890_v46 = vmax.f32 %v1545_v44, 0.0  ;;  %3253 = vmatmul.msk.f32.gmra.mxu1 %vm1085_vm1, %v984_v43  ;;  %v2145_v47 = vpop.xlane.xlu2 %2144 }
 0x1a2   :  { %v2526_v48 = vadd.f32 %v3764_v39, %v2145_v47 }
 0x1a3   :  { %v2022_v49 = vmul.f32 %v3636_v34, %v1890_v46  ;;  %v3894_v46 = vadd.s32 4294967232, %v3782_v57 }
 0x1a4   :  { %v2794_v50 = vperm.slane %v2526_v48, %v3834_v45  ;;  %v673_v51 = vpop.f32.mrf.mxu0 }
 0x1a5   :  { %v674_v53 = vadd.f32 %v3524_v23, %v673_v51  ;;  %v2188_v54 = vsel %vm1085_vm1, %v2022_v49, 0.0 }
 0x1a6   :  { %v2796_v55 = vsel %vm2795_vm5, %v2794_v50, %v2792_v41  ;;  %v1547_v56 = vpop.f32.mrf.mxu1  ;;  %2189 = vadd.xlane.f32.xlu1 %v2188_v54 }
 0x1a7   :  { %v985_v58 = vmax.f32 %v674_v53, 0.0  ;;  %v1548_v59 = vadd.f32 %v3625_v27, %v1547_v56  ;;  %3142 = vmatmul.msk.f32.gmra.mxu0 %vm163_vm0, %v81_v52  ;;  %v85_v53 = vld [vmem:[%s5124_s0 + $0x1c0] sm:$0xff] }
 0x1a9   :  { %v1891_v61 = vmax.f32 %v1548_v59, 0.0  ;;  %3254 = vmatmul.msk.f32.gmra.mxu1 %vm1085_vm1, %v985_v58  ;;  %v2148_v63 = vpop.xlane.xlu2 %2147 }
 0x1aa   :  { %v2527_v0 = vadd.f32 %v3764_v39, %v2148_v63  ;;  %v3909_v63 = vadd.s32 4294967224, %v3782_v57 }
 0x1ab   :  { %v2023_v1 = vmul.f32 %v3636_v34, %v1891_v61 }
 0x1ac   :  { %v2798_v2 = vperm.slane %v2527_v0, %v3849_v60  ;;  %v676_v3 = vpop.f32.mrf.mxu0 }
 0x1ad   :  { %v677_v5 = vadd.f32 %v3524_v23, %v676_v3  ;;  %v2191_v6 = vsel %vm1085_vm1, %v2023_v1, 0.0 }
 0x1ae   :  { %v2800_v7 = vsel %vm2799_vm6, %v2798_v2, %v2796_v55  ;;  %v1550_v8 = vpop.f32.mrf.mxu1  ;;  %2192 = vadd.xlane.f32.xlu2 %v2191_v6  ;;  %v86_v6 = vld [vmem:[%s5124_s0 + $0x1c8] sm:$0xff] }
 0x1af   :  { %v986_v9 = vmax.f32 %v677_v5, 0.0  ;;  %v1551_v10 = vadd.f32 %v3625_v27, %v1550_v8  ;;  %3143 = vmatmul.msk.f32.gmra.mxu0 %vm163_vm0, %v82_v4 }
 0x1b1   :  { %v1892_v12 = vmax.f32 %v1551_v10, 0.0  ;;  %3255 = vmatmul.msk.f32.gmra.mxu1 %vm1085_vm1, %v986_v9  ;;  %v2151_v14 = vpop.xlane.xlu0 %2150 }
 0x1b2   :  { %v2528_v15 = vadd.f32 %v3764_v39, %v2151_v14 }
 0x1b3   :  { %v2024_v16 = vmul.f32 %v3636_v34, %v1892_v12 }
 0x1b4   :  { %v2802_v17 = vperm.slane %v2528_v15, %v3864_v11  ;;  %v679_v18 = vpop.f32.mrf.mxu0  ;;  %v3924_v15 = vadd.s32 4294967216, %v3782_v57 }
 0x1b5   :  { %v680_v20 = vadd.f32 %v3524_v23, %v679_v18  ;;  %v2194_v21 = vsel %vm1085_vm1, %v2024_v16, 0.0 }
 0x1b6   :  { %v2804_v22 = vsel %vm2803_vm7, %v2802_v17, %v2800_v7  ;;  %v1553_v24 = vpop.f32.mrf.mxu1  ;;  %2195 = vadd.xlane.f32.xlu0 %v2194_v21 }
 0x1b7   :  { %v987_v25 = vmax.f32 %v680_v20, 0.0  ;;  %v1554_v26 = vadd.f32 %v3625_v27, %v1553_v24  ;;  %3144 = vmatmul.msk.f32.gmra.mxu0 %vm163_vm0, %v83_v19 }
 0x1b9   :  { %v1893_v30 = vmax.f32 %v1554_v26, 0.0  ;;  %3256 = vmatmul.msk.f32.gmra.mxu1 %vm1085_vm1, %v987_v25  ;;  %v2154_v31 = vpop.xlane.xlu1 %2153 }
 0x1ba   :  { %v2529_v32 = vadd.f32 %v3764_v39, %v2154_v31 }
 0x1bb   :  { %v2025_v33 = vmul.f32 %v3636_v34, %v1893_v30 }
 0x1bc   :  { %v2806_v35 = vperm.slane %v2529_v32, %v3879_v28  ;;  %v682_v36 = vpop.f32.mrf.mxu0 }
 0x1bd   :  { %v683_v38 = vadd.f32 %v3524_v23, %v682_v36  ;;  %v2197_v40 = vsel %vm1085_vm1, %v2025_v33, 0.0  ;;  %v3939_v33 = vadd.s32 4294967208, %v3782_v57 }
 0x1be   :  { %v2808_v41 = vsel %vm2807_vm8, %v2806_v35, %v2804_v22  ;;  %v1556_v42 = vpop.f32.mrf.mxu1  ;;  %2198 = vadd.xlane.f32.xlu1 %v2197_v40  ;;  %v87_v22 = vld [vmem:[%s5124_s0 + $0x1d0] sm:$0xff] }
 0x1bf   :  { %v988_v43 = vmax.f32 %v683_v38, 0.0  ;;  %v1557_v44 = vadd.f32 %v3625_v27, %v1556_v42  ;;  %3145 = vmatmul.msk.f32.gmra.mxu0 %vm163_vm0, %v84_v37  ;;  %v88_v42 = vld [vmem:[%s5124_s0 + $0x1d8] sm:$0xff] }
 0x1c1   :  { %v1894_v47 = vmax.f32 %v1557_v44, 0.0  ;;  %3257 = vmatmul.msk.f32.gmra.mxu1 %vm1085_vm1, %v988_v43  ;;  %v2157_v48 = vpop.xlane.xlu2 %2156 }
 0x1c2   :  { %v2530_v49 = vadd.f32 %v3764_v39, %v2157_v48 }
 0x1c3   :  { %v2026_v50 = vmul.f32 %v3636_v34, %v1894_v47 }
 0x1c4   :  { %v2810_v51 = vperm.slane %v2530_v49, %v3894_v46  ;;  %v685_v52 = vpop.f32.mrf.mxu0 }
 0x1c5   :  { %v686_v54 = vadd.f32 %v3524_v23, %v685_v52  ;;  %v2200_v55 = vsel %vm1085_vm1, %v2026_v50, 0.0 }
 0x1c6   :  { %v2812_v56 = vsel %vm2811_vm9, %v2810_v51, %v2808_v41  ;;  %v1559_v58 = vpop.f32.mrf.mxu1  ;;  %2201 = vadd.xlane.f32.xlu2 %v2200_v55  ;;  %v3954_v51 = vadd.s32 4294967200, %v3782_v57 }
 0x1c7   :  { %v989_v59 = vmax.f32 %v686_v54, 0.0  ;;  %v1560_v61 = vadd.f32 %v3625_v27, %v1559_v58  ;;  %3146 = vmatmul.msk.f32.gmra.mxu0 %vm163_vm0, %v85_v53  ;;  %v89_v58 = vld [vmem:[%s5124_s0 + $0x1e0] sm:$0xff] }
 0x1c9   :  { %v1895_v0 = vmax.f32 %v1560_v61, 0.0  ;;  %3258 = vmatmul.msk.f32.gmra.mxu1 %vm1085_vm1, %v989_v59  ;;  %v2160_v1 = vpop.xlane.xlu0 %2159  ;;  %v3966_v59 = vld [vmem:[%s5126_s2] ss:$0 sm:$0xff] }
 0x1ca   :  { %v2531_v2 = vadd.f32 %v3764_v39, %v2160_v1 }
 0x1cb   :  { %v2027_v3 = vmul.f32 %v3636_v34, %v1895_v0 }
 0x1cc   :  { %v2814_v4 = vperm.slane %v2531_v2, %v3909_v63  ;;  %v688_v5 = vpop.f32.mrf.mxu0 }
 0x1cd   :  { %v689_v7 = vadd.f32 %v3524_v23, %v688_v5  ;;  %v2203_v8 = vsel %vm1085_vm1, %v2027_v3, 0.0  ;;  %v3974_v5 = vadd.s32 4294967192, %v3782_v57 }
 0x1ce   :  { %v2816_v9 = vsel %vm2815_vm10, %v2814_v4, %v2812_v56  ;;  %v1562_v10 = vpop.f32.mrf.mxu1  ;;  %2204 = vadd.xlane.f32.xlu0 %v2203_v8 }
 0x1cf   :  { %v990_v12 = vmax.f32 %v689_v7, 0.0  ;;  %v1563_v14 = vadd.f32 %v3625_v27, %v1562_v10  ;;  %3147 = vmatmul.msk.f32.gmra.mxu0 %vm163_vm0, %v86_v6  ;;  %v94_v6 = vld [vmem:[%s5124_s0 + $0x208] sm:$0xff] }
 0x1d0   :  { %3155 = vmatmul.msk.f32.vlgmr.msra.gmra.mxu3 %vm163_vm0, %v94_v6 }
 0x1d1   :  { %v1896_v16 = vmax.f32 %v1563_v14, 0.0  ;;  %3259 = vmatmul.msk.f32.gmra.mxu1 %vm1085_vm1, %v990_v12  ;;  %v2163_v17 = vpop.xlane.xlu1 %2162 }
 0x1d2   :  { %v2532_v18 = vadd.f32 %v3764_v39, %v2163_v17 }
 0x1d3   :  { %v2028_v19 = vmul.f32 %v3636_v34, %v1896_v16  ;;  %v90_v16 = vld [vmem:[%s5124_s0 + $0x1e8] sm:$0xff] }
 0x1d4   :  { %v2818_v20 = vperm.slane %v2532_v18, %v3924_v15  ;;  %v691_v21 = vpop.f32.mrf.mxu0 }
 0x1d5   :  { %v692_v24 = vadd.f32 %v3524_v23, %v691_v21  ;;  %v2206_v25 = vsel %vm1085_vm1, %v2028_v19, 0.0 }
 0x1d6   :  { %v2820_v26 = vsel %vm2819_vm11, %v2818_v20, %v2816_v9  ;;  %v1565_v30 = vpop.f32.mrf.mxu1  ;;  %2207 = vadd.xlane.f32.xlu1 %v2206_v25  ;;  %v95_v25 = vld [vmem:[%s5124_s0 + $0x210] sm:$0xff] }
 0x1d7   :  { %v991_v31 = vmax.f32 %v692_v24, 0.0  ;;  %v1566_v32 = vadd.f32 %v3625_v27, %v1565_v30  ;;  %3148 = vmatmul.msk.f32.gmra.mxu0 %vm163_vm0, %v87_v22  ;;  %v3993_v24 = vadd.s32 4294967184, %v3782_v57 }
 0x1d8   :  { %3156 = vmatmul.msk.f32.gmra.mxu3 %vm163_vm0, %v95_v25 }
 0x1d9   :  { %v1897_v35 = vmax.f32 %v1566_v32, 0.0  ;;  %3260 = vmatmul.msk.f32.gmra.mxu1 %vm1085_vm1, %v991_v31  ;;  %v2166_v36 = vpop.xlane.xlu2 %2165 }
 0x1da   :  { %v2533_v37 = vadd.f32 %v3764_v39, %v2166_v36 }
 0x1db   :  { %v2029_v38 = vmul.f32 %v3636_v34, %v1897_v35 }
 0x1dc   :  { %v2822_v40 = vperm.slane %v2533_v37, %v3939_v33  ;;  %v694_v41 = vpop.f32.mrf.mxu0  ;;  %v91_v37 = vld [vmem:[%s5124_s0 + $0x1f0] sm:$0xff] }
 0x1dd   :  { %v695_v43 = vadd.f32 %v3524_v23, %v694_v41  ;;  %v2209_v44 = vsel %vm1085_vm1, %v2029_v38, 0.0 }
 0x1de   :  { %v2824_v47 = vsel %vm2823_vm12, %v2822_v40, %v2820_v26  ;;  %v1568_v48 = vpop.f32.mrf.mxu1  ;;  %2210 = vadd.xlane.f32.xlu2 %v2209_v44 }
 0x1df   :  { %v992_v49 = vmax.f32 %v695_v43, 0.0  ;;  %v1569_v50 = vadd.f32 %v3625_v27, %v1568_v48  ;;  %3149 = vmatmul.msk.f32.gmra.mxu0 %vm163_vm0, %v88_v42  ;;  %v96_v48 = vld [vmem:[%s5124_s0 + $0x218] sm:$0xff] }
 0x1e0   :  { %3157 = vmatmul.msk.f32.gmra.mxu3 %vm163_vm0, %v96_v48 }
 0x1e1   :  { %v1898_v52 = vmax.f32 %v1569_v50, 0.0  ;;  %3261 = vmatmul.msk.f32.gmra.mxu1 %vm1085_vm1, %v992_v49  ;;  %v2169_v53 = vpop.xlane.xlu0 %2168 }
 0x1e2   :  { %v2534_v23 = vadd.f32 %v3764_v39, %v2169_v53 }
 0x1e3   :  { %v2030_v54 = vmul.f32 %v3636_v34, %v1898_v52 }
 0x1e4   :  { %v2826_v55 = vperm.slane %v2534_v23, %v3954_v51  ;;  %v697_v56 = vpop.f32.mrf.mxu0 }
 0x1e5   :  { %v698_v61 = vadd.f32 %v3966_v59, %v697_v56  ;;  %v2212_v0 = vsel %vm1085_vm1, %v2030_v54, 0.0 }
 0x1e6   :  { %v2828_v1 = vsel %vm5134_vm13, %v2826_v55, %v2824_v47  ;;  %v1571_v2 = vpop.f32.mrf.mxu1  ;;  %2213 = vadd.xlane.f32.xlu0 %v2212_v0  ;;  %v4012_v47 = vadd.s32 4294967176, %v3782_v57  ;;  %v92_v55 = vld [vmem:[%s5124_s0 + $0x1f8] sm:$0xff] }
 0x1e7   :  { %v993_v3 = vmax.f32 %v698_v61, 0.0  ;;  %v1572_v4 = vadd.f32 %v3625_v27, %v1571_v2  ;;  %3150 = vmatmul.msk.f32.gmra.mxu0 %vm163_vm0, %v89_v58 }
 0x1e9   :  { %v1899_v7 = vmax.f32 %v1572_v4, 0.0  ;;  %3262 = vmatmul.msk.f32.gmra.mxu1 %vm1085_vm1, %v993_v3  ;;  %v2172_v8 = vpop.xlane.xlu1 %2171  ;;  %v97_v3 = vld [vmem:[%s5124_s0 + $0x220] sm:$0xff] }
 0x1ea   :  { %v2535_v9 = vadd.f32 %v3764_v39, %v2172_v8  ;;  %3158 = vmatmul.msk.f32.gmra.mxu3 %vm163_vm0, %v97_v3  ;;  %v93_v8 = vld [vmem:[%s5124_s0 + $0x200] sm:$0xff] }
 0x1eb   :  { %v2031_v10 = vmul.f32 %v3636_v34, %v1899_v7 }
 0x1ec   :  { %v2830_v12 = vperm.slane %v2535_v9, %v3974_v5  ;;  %v700_v14 = vpop.f32.mrf.mxu0 }
 0x1ed   :  { %v701_v17 = vadd.f32 %v3966_v59, %v700_v14  ;;  %v2215_v18 = vsel %vm1085_vm1, %v2031_v10, 0.0 }
 0x1ee   :  { %v2832_v19 = vsel %vm5133_vm14, %v2830_v12, %v2828_v1  ;;  %v1574_v20 = vpop.f32.mrf.mxu1  ;;  %2216 = vadd.xlane.f32.xlu1 %v2215_v18 }
 0x1ef   :  { %v994_v21 = vmax.f32 %v701_v17, 0.0  ;;  %v1575_v22 = vadd.f32 %v3625_v27, %v1574_v20  ;;  %3151 = vmatmul.msk.f32.gmra.mxu0 %vm163_vm0, %v90_v16 }
 0x1f1   :  { %v1900_v26 = vmax.f32 %v1575_v22, 0.0  ;;  %3263 = vmatmul.msk.f32.gmra.mxu1 %vm1085_vm1, %v994_v21  ;;  %v2175_v30 = vpop.xlane.xlu2 %2174 }
 0x1f2   :  { %v2536_v31 = vadd.f32 %v3764_v39, %v2175_v30 }
 0x1f3   :  { %v2032_v32 = vmul.f32 %v3636_v34, %v1900_v26 }
 0x1f4   :  { %v2834_v35 = vperm.slane %v2536_v31, %v3993_v24  ;;  %v703_v36 = vpop.f32.mrf.mxu0 }
 0x1f5   :  { %v704_v38 = vadd.f32 %v3966_v59, %v703_v36  ;;  %v2218_v40 = vsel %vm1085_vm1, %v2032_v32, 0.0 }
 0x1f6   :  { %v2836_v41 = vsel %vm5132_vm15, %v2834_v35, %v2832_v19  ;;  %v1577_v42 = vpop.f32.mrf.mxu1  ;;  %2219 = vadd.xlane.f32.xlu2 %v2218_v40  ;;  %vm2839_vm15 = vcmask 1048512   ;;  %v98_v19 = vld [vmem:[%s5124_s0 + $0x228] sm:$0xff]  ;;  %v99_v40 = vld [vmem:[%s5124_s0 + $0x230] sm:$0xff] }
 0x1f7   :  { %v995_v43 = vmax.f32 %v704_v38, 0.0  ;;  %v1578_v44 = vadd.f32 %v3625_v27, %v1577_v42  ;;  %3152 = vmatmul.msk.f32.gmra.mxu0 %vm163_vm0, %v91_v37  ;;  %3159 = vmatmul.msk.f32.gmra.mxu3 %vm163_vm0, %v98_v19  ;;  %v4061_v38 = vld [vmem:[%s5128_s4] ss:$0 sm:$0xff] }
 0x1f9   :  { %v1901_v49 = vmax.f32 %v1578_v44, 0.0  ;;  %3264 = vmatmul.msk.f32.gmra.mxu1 %vm1085_vm1, %v995_v43  ;;  %v2178_v50 = vpop.xlane.xlu0 %2177  ;;  %v4073_v44 = vld [vmem:[%s5129_s5] ss:$0 sm:$0xff] }
 0x1fa   :  { %v2537_v52 = vadd.f32 %v3764_v39, %v2178_v50 }
 0x1fb   :  { %v2033_v53 = vmul.f32 %v3636_v34, %v1901_v49 }
 0x1fc   :  { %v2838_v23 = vperm.slane %v2537_v52, %v4012_v47  ;;  %v706_v54 = vpop.f32.mrf.mxu0 }
 0x1fd   :  { %v707_v56 = vadd.f32 %v3966_v59, %v706_v54  ;;  %v2221_v58 = vsel %vm1085_vm1, %v2033_v53, 0.0 }
 0x1fe   :  { %v4028_v61 = vsel %vm2839_vm15, %v2838_v23, %v2836_v41  ;;  %v1580_v0 = vpop.f32.mrf.mxu1  ;;  %2222 = vadd.xlane.f32.xlu0 %v2221_v58  ;;  %v100_v58 = vld [vmem:[%s5124_s0 + $0x238] sm:$0xff] }
 0x1ff   :  { %v996_v1 = vmax.f32 %v707_v56, 0.0  ;;  %v1581_v2 = vadd.f32 %v3625_v27, %v1580_v0  ;;  %3153 = vmatmul.msk.f32.gmra.mxu0 %vm163_vm0, %v92_v55  ;;  %3160 = vmatmul.msk.f32.gmra.mxu3 %vm163_vm0, %v99_v40 }
 0x201   :  { %v1902_v4 = vmax.f32 %v1581_v2, 0.0  ;;  %3265 = vmatmul.msk.f32.gmra.mxu1 %vm1085_vm1, %v996_v1  ;;  %v2181_v9 = vpop.xlane.xlu1 %2180 }
 0x202   :  { %v2538_v18 = vadd.f32 %v3764_v39, %v2181_v9 }
 0x203   :  { %v2034_v6 = vmul.f32 %v3636_v34, %v1902_v4 }
 0x204   :  { %v709_v7 = vpop.f32.mrf.mxu0 }
 0x205   :  { %v710_v10 = vadd.f32 %v3966_v59, %v709_v7  ;;  %v2224_v12 = vsel %vm1085_vm1, %v2034_v6, 0.0 }
 0x206   :  { %v1583_v14 = vpop.f32.mrf.mxu1  ;;  %2225 = vadd.xlane.f32.xlu1 %v2224_v12 }
 0x207   :  { %v997_v16 = vmax.f32 %v710_v10, 0.0  ;;  %v1584_v17 = vadd.f32 %v3625_v27, %v1583_v14  ;;  %3154 = vmatmul.msk.f32.gmra.mxu0 %vm163_vm0, %v93_v8  ;;  %v2841_v27 = vperm.slane %v2538_v18, %v3782_v57  ;;  %3161 = vmatmul.msk.f32.gmra.mxu3 %vm163_vm0, %v100_v58 }
 0x209   :  { %v1903_v20 = vmax.f32 %v1584_v17, 0.0  ;;  %3266 = vmatmul.msk.f32.gmra.mxu1 %vm1085_vm1, %v997_v16  ;;  %v2184_v21 = vpop.xlane.xlu2 %2183  ;;  %v101_v16 = vld [vmem:[%s5124_s0 + $0x240] sm:$0xff] }
 0x20a   :  { %v2539_v22 = vadd.f32 %v3764_v39, %v2184_v21 }
 0x20b   :  { %v2035_v25 = vmul.f32 %v3636_v34, %v1903_v20 }
 0x20c   :  { %v2842_v26 = vperm.slane %v2539_v22, %v3788_v62  ;;  %v712_v30 = vpop.f32.mrf.mxu0 }
 0x20d   :  { %v713_v31 = vadd.f32 %v3966_v59, %v712_v30  ;;  %v2227_v32 = vsel %vm1085_vm1, %v2035_v25, 0.0 }
 0x20e   :  { %v2843_v35 = vsel %vm2783_vm2, %v2842_v26, %v2841_v27  ;;  %v1586_v36 = vpop.f32.mrf.mxu1  ;;  %2228 = vadd.xlane.f32.xlu2 %v2227_v32 }
 0x20f   :  { %v998_v37 = vmax.f32 %v713_v31, 0.0  ;;  %v1587_v34 = vadd.f32 %v4061_v38, %v1586_v36  ;;  %3162 = vmatmul.msk.f32.gmra.mxu3 %vm163_vm0, %v101_v16 }
 0x211   :  { %v1904_v41 = vmax.f32 %v1587_v34, 0.0  ;;  %3267 = vmatmul.msk.f32.gmra.mxu1 %vm1085_vm1, %v998_v37  ;;  %v2187_v42 = vpop.xlane.xlu0 %2186 }
 0x212   :  { %v2540_v43 = vadd.f32 %v3764_v39, %v2187_v42 }
 0x213   :  { %v2036_v48 = vmul.f32 %v4073_v44, %v1904_v41 }
 0x214   :  { %v2844_v49 = vperm.slane %v2540_v43, %v3804_v13  ;;  %v715_v50 = vpop.f32.mrf.mxu0 }
 0x215   :  { %v716_v52 = vadd.f32 %v3966_v59, %v715_v50  ;;  %v2230_v53 = vsel %vm1085_vm1, %v2036_v48, 0.0 }
 0x216   :  { %v2845_v23 = vsel %vm2787_vm3, %v2844_v49, %v2843_v35  ;;  %v1589_v54 = vpop.f32.mrf.mxu1  ;;  %2231 = vadd.xlane.f32.xlu0 %v2230_v53  ;;  %v102_v35 = vld [vmem:[%s5124_s0 + $0x248] sm:$0xff] }
 0x217   :  { %v999_v55 = vmax.f32 %v716_v52, 0.0  ;;  %v1590_v56 = vadd.f32 %v4061_v38, %v1589_v54  ;;  %3163 = vmatmul.msk.f32.gmra.mxu3 %vm163_vm0, %v102_v35 }
 0x219   :  { %v1905_v0 = vmax.f32 %v1590_v56, 0.0  ;;  %3268 = vmatmul.msk.f32.gmra.mxu1 %vm1085_vm1, %v999_v55  ;;  %v2190_v1 = vpop.xlane.xlu1 %2189 }
 0x21a   :  { %v2541_v2 = vadd.f32 %v3764_v39, %v2190_v1 }
 0x21b   :  { %v2037_v3 = vmul.f32 %v4073_v44, %v1905_v0 }
 0x21c   :  { %v2846_v4 = vperm.slane %v2541_v2, %v3819_v29  ;;  %v718_v6 = vpop.f32.mrf.mxu0 }
 0x21d   :  { %v719_v7 = vadd.f32 %v3966_v59, %v718_v6  ;;  %v2233_v8 = vsel %vm1085_vm1, %v2037_v3, 0.0 }
 0x21e   :  { %v2847_v9 = vsel %vm2791_vm4, %v2846_v4, %v2845_v23  ;;  %v1592_v10 = vpop.f32.mrf.mxu1  ;;  %2234 = vadd.xlane.f32.xlu1 %v2233_v8  ;;  %v103_v23 = vld [vmem:[%s5124_s0 + $0x250] sm:$0xff] }
 0x21f   :  { %v1000_v12 = vmax.f32 %v719_v7, 0.0  ;;  %v1593_v14 = vadd.f32 %v4061_v38, %v1592_v10  ;;  %3164 = vmatmul.msk.f32.gmra.mxu3 %vm163_vm0, %v103_v23 }
 0x221   :  { %v1906_v17 = vmax.f32 %v1593_v14, 0.0  ;;  %3269 = vmatmul.msk.f32.gmra.mxu1 %vm1085_vm1, %v1000_v12  ;;  %v2193_v18 = vpop.xlane.xlu2 %2192 }
 0x222   :  { %v2542_v19 = vadd.f32 %v3764_v39, %v2193_v18 }
 0x223   :  { %v2038_v20 = vmul.f32 %v4073_v44, %v1906_v17 }
 0x224   :  { %v2848_v21 = vperm.slane %v2542_v19, %v3834_v45  ;;  %v721_v22 = vpop.f32.mrf.mxu0 }
 0x225   :  { %v722_v25 = vadd.f32 %v3966_v59, %v721_v22  ;;  %v2236_v27 = vsel %vm1085_vm1, %v2038_v20, 0.0 }
 0x226   :  { %v2849_v26 = vsel %vm2795_vm5, %v2848_v21, %v2847_v9  ;;  %v1595_v30 = vpop.f32.mrf.mxu1  ;;  %2237 = vadd.xlane.f32.xlu2 %v2236_v27  ;;  %v104_v9 = vld [vmem:[%s5124_s0 + $0x258] sm:$0xff] }
 0x227   :  { %v1001_v31 = vmax.f32 %v722_v25, 0.0  ;;  %v1596_v32 = vadd.f32 %v4061_v38, %v1595_v30  ;;  %3165 = vmatmul.msk.f32.gmra.mxu3 %vm163_vm0, %v104_v9 }
 0x229   :  { %v1907_v36 = vmax.f32 %v1596_v32, 0.0  ;;  %3270 = vmatmul.msk.f32.gmra.mxu1 %vm1085_vm1, %v1001_v31  ;;  %v2196_v37 = vpop.xlane.xlu0 %2195 }
 0x22a   :  { %v2543_v34 = vadd.f32 %v3764_v39, %v2196_v37 }
 0x22b   :  { %v2039_v40 = vmul.f32 %v4073_v44, %v1907_v36 }
 0x22c   :  { %v2850_v41 = vperm.slane %v2543_v34, %v3849_v60  ;;  %v724_v42 = vpop.f32.mrf.mxu0 }
 0x22d   :  { %v725_v43 = vadd.f32 %v3966_v59, %v724_v42  ;;  %v2239_v48 = vsel %vm1085_vm1, %v2039_v40, 0.0 }
 0x22e   :  { %v2851_v49 = vsel %vm2799_vm6, %v2850_v41, %v2849_v26  ;;  %v1598_v50 = vpop.f32.mrf.mxu1  ;;  %2240 = vadd.xlane.f32.xlu0 %v2239_v48  ;;  %v105_v26 = vld [vmem:[%s5124_s0 + $0x260] sm:$0xff] }
 0x22f   :  { %v1002_v52 = vmax.f32 %v725_v43, 0.0  ;;  %v1599_v53 = vadd.f32 %v4061_v38, %v1598_v50  ;;  %3166 = vmatmul.msk.f32.gmra.mxu3 %vm163_vm0, %v105_v26 }
 0x231   :  { %v1908_v54 = vmax.f32 %v1599_v53, 0.0  ;;  %3271 = vmatmul.msk.f32.gmra.mxu1 %vm1085_vm1, %v1002_v52  ;;  %v2199_v55 = vpop.xlane.xlu1 %2198 }
 0x232   :  { %v2544_v56 = vadd.f32 %v3764_v39, %v2199_v55 }
 0x233   :  { %v2040_v58 = vmul.f32 %v4073_v44, %v1908_v54 }
 0x234   :  { %v2852_v0 = vperm.slane %v2544_v56, %v3864_v11  ;;  %v727_v1 = vpop.f32.mrf.mxu0 }
 0x235   :  { %v728_v2 = vadd.f32 %v3966_v59, %v727_v1  ;;  %v2242_v3 = vsel %vm1085_vm1, %v2040_v58, 0.0 }
 0x236   :  { %v2853_v4 = vsel %vm2803_vm7, %v2852_v0, %v2851_v49  ;;  %v1601_v6 = vpop.f32.mrf.mxu1  ;;  %2243 = vadd.xlane.f32.xlu1 %v2242_v3  ;;  %v106_v49 = vld [vmem:[%s5124_s0 + $0x268] sm:$0xff] }
 0x237   :  { %v1003_v7 = vmax.f32 %v728_v2, 0.0  ;;  %v1602_v8 = vadd.f32 %v4061_v38, %v1601_v6  ;;  %3167 = vmatmul.msk.f32.gmra.mxu3 %vm163_vm0, %v106_v49 }
 0x239   :  { %v1909_v10 = vmax.f32 %v1602_v8, 0.0  ;;  %3272 = vmatmul.msk.f32.gmra.mxu1 %vm1085_vm1, %v1003_v7  ;;  %v2202_v12 = vpop.xlane.xlu2 %2201 }
 0x23a   :  { %v2545_v14 = vadd.f32 %v3764_v39, %v2202_v12 }
 0x23b   :  { %v2041_v16 = vmul.f32 %v4073_v44, %v1909_v10 }
 0x23c   :  { %v2854_v17 = vperm.slane %v2545_v14, %v3879_v28  ;;  %v730_v18 = vpop.f32.mrf.mxu0 }
 0x23d   :  { %v731_v19 = vadd.f32 %v3966_v59, %v730_v18  ;;  %v2245_v20 = vsel %vm1085_vm1, %v2041_v16, 0.0 }
 0x23e   :  { %v2855_v21 = vsel %vm2807_vm8, %v2854_v17, %v2853_v4  ;;  %v1604_v22 = vpop.f32.mrf.mxu1  ;;  %2246 = vadd.xlane.f32.xlu2 %v2245_v20  ;;  %v107_v4 = vld [vmem:[%s5124_s0 + $0x270] sm:$0xff] }
 0x23f   :  { %v1004_v25 = vmax.f32 %v731_v19, 0.0  ;;  %v1605_v27 = vadd.f32 %v4061_v38, %v1604_v22  ;;  %3168 = vmatmul.msk.f32.gmra.mxu3 %vm163_vm0, %v107_v4 }
 0x241   :  { %v1910_v30 = vmax.f32 %v1605_v27, 0.0  ;;  %3273 = vmatmul.msk.f32.gmra.mxu1 %vm1085_vm1, %v1004_v25  ;;  %v2205_v31 = vpop.xlane.xlu0 %2204 }
 0x242   :  { %v2546_v32 = vadd.f32 %v3764_v39, %v2205_v31 }
 0x243   :  { %v2042_v35 = vmul.f32 %v4073_v44, %v1910_v30 }
 0x244   :  { %v2856_v36 = vperm.slane %v2546_v32, %v3894_v46  ;;  %v733_v37 = vpop.f32.mrf.mxu0 }
 0x245   :  { %v734_v34 = vadd.f32 %v3966_v59, %v733_v37  ;;  %v2248_v40 = vsel %vm1085_vm1, %v2042_v35, 0.0 }
 0x246   :  { %v2857_v41 = vsel %vm2811_vm9, %v2856_v36, %v2855_v21  ;;  %v1607_v42 = vpop.f32.mrf.mxu1  ;;  %2249 = vadd.xlane.f32.xlu0 %v2248_v40  ;;  %v108_v21 = vld [vmem:[%s5124_s0 + $0x278] sm:$0xff] }
 0x247   :  { %v1005_v43 = vmax.f32 %v734_v34, 0.0  ;;  %v1608_v48 = vadd.f32 %v4061_v38, %v1607_v42  ;;  %3169 = vmatmul.msk.f32.gmra.mxu3 %vm163_vm0, %v108_v21 }
 0x249   :  { %v1911_v50 = vmax.f32 %v1608_v48, 0.0  ;;  %3274 = vmatmul.msk.f32.gmra.mxu1 %vm1085_vm1, %v1005_v43  ;;  %v2208_v52 = vpop.xlane.xlu1 %2207 }
 0x24a   :  { %v2547_v53 = vadd.f32 %v3764_v39, %v2208_v52 }
 0x24b   :  { %v2043_v23 = vmul.f32 %v4073_v44, %v1911_v50 }
 0x24c   :  { %v2858_v54 = vperm.slane %v2547_v53, %v3909_v63  ;;  %v736_v55 = vpop.f32.mrf.mxu0 }
 0x24d   :  { %v737_v56 = vadd.f32 %v3966_v59, %v736_v55  ;;  %v2251_v58 = vsel %vm1085_vm1, %v2043_v23, 0.0 }
 0x24e   :  { %v2859_v0 = vsel %vm2815_vm10, %v2858_v54, %v2857_v41  ;;  %v1610_v1 = vpop.f32.mrf.mxu1  ;;  %2252 = vadd.xlane.f32.xlu1 %v2251_v58  ;;  %v109_v41 = vld [vmem:[%s5124_s0 + $0x280] sm:$0xff] }
 0x24f   :  { %v1006_v2 = vmax.f32 %v737_v56, 0.0  ;;  %v1611_v3 = vadd.f32 %v4061_v38, %v1610_v1  ;;  %3170 = vmatmul.msk.f32.gmra.mxu3 %vm163_vm0, %v109_v41 }
 0x251   :  { %v1912_v6 = vmax.f32 %v1611_v3, 0.0  ;;  %3275 = vmatmul.msk.f32.gmra.mxu1 %vm1085_vm1, %v1006_v2  ;;  %v2211_v7 = vpop.xlane.xlu2 %2210 }
 0x252   :  { %v2548_v8 = vadd.f32 %v3764_v39, %v2211_v7 }
 0x253   :  { %v2044_v9 = vmul.f32 %v4073_v44, %v1912_v6 }
 0x254   :  { %v2860_v10 = vperm.slane %v2548_v8, %v3924_v15  ;;  %v739_v12 = vpop.f32.mrf.mxu0  ;;  %v4209_v8 = vpop.f32.mrf.mxu3 }
 0x255   :  { %v740_v14 = vadd.f32 %v3966_v59, %v739_v12  ;;  %v2254_v16 = vsel %vm1085_vm1, %v2044_v9, 0.0 }
 0x256   :  { %v2861_v17 = vsel %vm2819_vm11, %v2860_v10, %v2859_v0  ;;  %v1613_v18 = vpop.f32.mrf.mxu1  ;;  %2255 = vadd.xlane.f32.xlu2 %v2254_v16  ;;  %v110_v0 = vld [vmem:[%s5124_s0 + $0x288] sm:$0xff] }
 0x257   :  { %v1007_v19 = vmax.f32 %v740_v14, 0.0  ;;  %v1614_v20 = vadd.f32 %v4061_v38, %v1613_v18  ;;  %3171 = vmatmul.msk.f32.gmra.mxu3 %vm163_vm0, %v110_v0  ;;  %v111_v18 = vld [vmem:[%s5124_s0 + $0x290] sm:$0xff]  ;;  %v113_v0 = vld [vmem:[%s5124_s0 + $0x2a0] sm:$0xff] }
 0x259   :  { %v1913_v22 = vmax.f32 %v1614_v20, 0.0  ;;  %3276 = vmatmul.msk.f32.gmra.mxu1 %vm1085_vm1, %v1007_v19  ;;  %v2214_v25 = vpop.xlane.xlu0 %2213 }
 0x25a   :  { %v2549_v27 = vadd.f32 %v3764_v39, %v2214_v25 }
 0x25b   :  { %v2045_v26 = vmul.f32 %v4073_v44, %v1913_v22 }
 0x25c   :  { %v2862_v30 = vperm.slane %v2549_v27, %v3939_v33  ;;  %v742_v31 = vpop.f32.mrf.mxu0 }
 0x25d   :  { %v743_v32 = vadd.f32 %v3966_v59, %v742_v31  ;;  %v2257_v35 = vsel %vm1085_vm1, %v2045_v26, 0.0  ;;  %v4223_v26 = vpop.f32.mrf.mxu3 }
 0x25e   :  { %v2863_v36 = vsel %vm2823_vm12, %v2862_v30, %v2861_v17  ;;  %v1616_v37 = vpop.f32.mrf.mxu1  ;;  %2258 = vadd.xlane.f32.xlu0 %v2257_v35 }
 0x25f   :  { %v1008_v34 = vmax.f32 %v743_v32, 0.0  ;;  %v1617_v40 = vadd.f32 %v4061_v38, %v1616_v37  ;;  %3172 = vmatmul.msk.f32.gmra.mxu3 %vm163_vm0, %v111_v18 }
 0x261   :  { %v1914_v42 = vmax.f32 %v1617_v40, 0.0  ;;  %3277 = vmatmul.msk.f32.gmra.mxu1 %vm1085_vm1, %v1008_v34  ;;  %v2217_v43 = vpop.xlane.xlu1 %2216  ;;  %v112_v34 = vld [vmem:[%s5124_s0 + $0x298] sm:$0xff] }
 0x262   :  { %v2550_v48 = vadd.f32 %v3764_v39, %v2217_v43 }
 0x263   :  { %v2046_v49 = vmul.f32 %v4073_v44, %v1914_v42 }
 0x264   :  { %v2864_v50 = vperm.slane %v2550_v48, %v3954_v51  ;;  %v745_v52 = vpop.f32.mrf.mxu0 }
 0x265   :  { %v746_v53 = vadd.f32 %v3966_v59, %v745_v52  ;;  %v2260_v23 = vsel %vm1085_vm1, %v2046_v49, 0.0 }
 0x266   :  { %v2865_v54 = vsel %vm5134_vm13, %v2864_v50, %v2863_v36  ;;  %v1619_v55 = vpop.f32.mrf.mxu1  ;;  %2261 = vadd.xlane.f32.xlu1 %v2260_v23  ;;  %v766_v50 = vpop.f32.mrf.mxu3 }
 0x267   :  { %v1009_v56 = vmax.f32 %v746_v53, 0.0  ;;  %v1620_v58 = vadd.f32 %v4061_v38, %v1619_v55  ;;  %3173 = vmatmul.msk.f32.gmra.mxu3 %vm163_vm0, %v112_v34 }
 0x269   :  { %v1915_v1 = vmax.f32 %v1620_v58, 0.0  ;;  %3278 = vmatmul.msk.f32.gmra.mxu1 %vm1085_vm1, %v1009_v56  ;;  %v2220_v2 = vpop.xlane.xlu2 %2219 }
 0x26a   :  { %v2551_v3 = vadd.f32 %v3764_v39, %v2220_v2 }
 0x26b   :  { %v2047_v4 = vmul.f32 %v4073_v44, %v1915_v1 }
 0x26c   :  { %v2866_v6 = vperm.slane %v2551_v3, %v3974_v5  ;;  %v748_v7 = vpop.f32.mrf.mxu0 }
 0x26d   :  { %v749_v9 = vadd.f32 %v3966_v59, %v748_v7  ;;  %v2263_v10 = vsel %vm1085_vm1, %v2047_v4, 0.0 }
 0x26e   :  { %v2867_v12 = vsel %vm5133_vm14, %v2866_v6, %v2865_v54  ;;  %v1622_v14 = vpop.f32.mrf.mxu1  ;;  %2264 = vadd.xlane.f32.xlu2 %v2263_v10  ;;  %vm5135_vm14 = vcmask 982912   ;;  %v769_v4 = vpop.f32.mrf.mxu3 }
 0x26f   :  { %v1010_v16 = vmax.f32 %v749_v9, 0.0  ;;  %v1623_v17 = vadd.f32 %v4061_v38, %v1622_v14  ;;  %3174 = vmatmul.msk.f32.gmra.mxu3 %vm163_vm0, %v113_v0  ;;  %v767_v0 = vadd.f32 %v3966_v59, %v766_v50  ;;  %v117_v50 = vld [vmem:[%s5124_s0 + $0x2c0] sm:$0xff] }
 0x271   :  { %v1916_v19 = vmax.f32 %v1623_v17, 0.0  ;;  %3279 = vmatmul.msk.f32.gmra.mxu1 %vm1085_vm1, %v1010_v16  ;;  %v2223_v20 = vpop.xlane.xlu0 %2222  ;;  %v114_v16 = vld [vmem:[%s5124_s0 + $0x2a8] sm:$0xff] }
 0x272   :  { %v2552_v21 = vadd.f32 %v3764_v39, %v2223_v20 }
 0x273   :  { %v2048_v22 = vmul.f32 %v4073_v44, %v1916_v19  ;;  %v761_v19 = vadd.f32 %v3966_v59, %v4209_v8 }
 0x274   :  { %v2868_v25 = vperm.slane %v2552_v21, %v3993_v24  ;;  %v751_v27 = vpop.f32.mrf.mxu0 }
 0x275   :  { %v752_v30 = vadd.f32 %v3966_v59, %v751_v27  ;;  %v2266_v31 = vsel %vm1085_vm1, %v2048_v22, 0.0 }
 0x276   :  { %v2869_v32 = vsel %vm5135_vm14, %v2868_v25, %v2867_v12  ;;  %v1625_v35 = vpop.f32.mrf.mxu1  ;;  %2267 = vadd.xlane.f32.xlu0 %v2266_v31  ;;  %vm3058_vm14 = vcmask 1041409  }
 0x277   :  { %v1011_v36 = vmax.f32 %v752_v30, 0.0  ;;  %v1626_v37 = vadd.f32 %v4061_v38, %v1625_v35  ;;  %3175 = vmatmul.msk.f32.gmra.mxu3 %vm163_vm0, %v114_v16  ;;  %v1014_v30 = vmax.f32 %v761_v19, 0.0 }
 0x279   :  { %v1917_v40 = vmax.f32 %v1626_v37, 0.0  ;;  %3280 = vmatmul.msk.f32.gmra.mxu1 %vm1085_vm1, %v1011_v36  ;;  %v2226_v41 = vpop.xlane.xlu1 %2225  ;;  %v115_v36 = vld [vmem:[%s5124_s0 + $0x2b0] sm:$0xff] }
 0x27a   :  { %v2553_v42 = vadd.f32 %v3764_v39, %v2226_v41  ;;  %v772_v27 = vpop.f32.mrf.mxu3 }
 0x27b   :  { %v2049_v43 = vmul.f32 %v4073_v44, %v1917_v40  ;;  %v764_v40 = vadd.f32 %v3966_v59, %v4223_v26  ;;  %v116_v26 = vld [vmem:[%s5124_s0 + $0x2b8] sm:$0xff] }
 0x27c   :  { %v2870_v48 = vperm.slane %v2553_v42, %v4012_v47  ;;  %v754_v49 = vpop.f32.mrf.mxu0 }
 0x27d   :  { %v755_v52 = vadd.f32 %v3966_v59, %v754_v49  ;;  %v2269_v53 = vsel %vm1085_vm1, %v2049_v43, 0.0  ;;  %v1015_v49 = vmax.f32 %v764_v40, 0.0 }
 0x27e   :  { %v2871_v23 = vsel %vm2839_vm15, %v2870_v48, %v2869_v32  ;;  %v1628_v54 = vpop.f32.mrf.mxu1  ;;  %2270 = vadd.xlane.f32.xlu1 %v2269_v53 }
 0x27f   :  { %v4241_v55 = vsel %vm3058_vm14, %v2871_v23, %v4028_v61  ;;  %v1012_v56 = vmax.f32 %v755_v52, 0.0  ;;  %v1629_v58 = vadd.f32 %v4061_v38, %v1628_v54  ;;  %3176 = vmatmul.msk.f32.gmra.mxu3 %vm163_vm0, %v115_v36  ;;  %v773_v36 = vadd.f32 %v3966_v59, %v772_v27  ;;  %v119_v27 = vld [vmem:[%s5124_s0 + $0x2d0] sm:$0xff] }
 0x280   :  { %vm5136_vm14 = vcmask 917312  }
 0x281   :  { %v1918_v1 = vmax.f32 %v1629_v58, 0.0  ;;  %3281 = vmatmul.msk.f32.gmra.mxu1 %vm1085_vm1, %v1012_v56  ;;  %v2229_v6 = vpop.xlane.xlu2 %2228 }
 0x282   :  { %v2554_v14 = vadd.f32 %v3764_v39, %v2229_v6  ;;  %v775_v48 = vpop.f32.mrf.mxu3 }
 0x283   :  { %v2050_v2 = vmul.f32 %v4073_v44, %v1918_v1 }
 0x284   :  { %v757_v3 = vpop.f32.mrf.mxu0  ;;  %v2872_v22 = vperm.slane %v2554_v14, %v3782_v57 }
 0x285   :  { %v758_v61 = vadd.f32 %v3966_v59, %v757_v3  ;;  %v2272_v7 = vsel %vm1085_vm1, %v2050_v2, 0.0 }
 0x286   :  { %v1631_v9 = vpop.f32.mrf.mxu1  ;;  %2273 = vadd.xlane.f32.xlu2 %v2272_v7 }
 0x287   :  { %v1013_v10 = vmax.f32 %v758_v61, 0.0  ;;  %v1632_v12 = vadd.f32 %v4061_v38, %v1631_v9  ;;  %3177 = vmatmul.msk.f32.gmra.mxu3 %vm163_vm0, %v116_v26  ;;  %v1016_v61 = vmax.f32 %v767_v0, 0.0  ;;  %v776_v26 = vadd.f32 %v3966_v59, %v775_v48  ;;  %v120_v48 = vld [vmem:[%s5124_s0 + $0x2d8] sm:$0xff] }
 0x289   :  { %v1919_v17 = vmax.f32 %v1632_v12, 0.0  ;;  %3282 = vmatmul.msk.f32.vlgmr.msra.gmra.mxu2 %vm1085_vm1, %v1013_v10  ;;  %v2232_v18 = vpop.xlane.xlu0 %2231 }
 0x28a   :  { %v2555_v20 = vadd.f32 %v3764_v39, %v2232_v18  ;;  %v778_v6 = vpop.f32.mrf.mxu3 }
 0x28b   :  { %v2051_v21 = vmul.f32 %v4073_v44, %v1919_v17  ;;  %v770_v17 = vadd.f32 %v3966_v59, %v769_v4  ;;  %v118_v4 = vld [vmem:[%s5124_s0 + $0x2c8] sm:$0xff] }
 0x28c   :  { %v2873_v25 = vperm.slane %v2555_v20, %v3788_v62 }
 0x28d   :  { %v2275_v31 = vsel %vm1085_vm1, %v2051_v21, 0.0 }
 0x28e   :  { %v2874_v32 = vsel %vm2783_vm2, %v2873_v25, %v2872_v22  ;;  %v1634_v35 = vpop.f32.mrf.mxu1  ;;  %2276 = vadd.xlane.f32.xlu0 %v2275_v31  ;;  %v1017_v22 = vmax.f32 %v770_v17, 0.0 }
 0x28f   :  { %v1635_v8 = vadd.f32 %v4061_v38, %v1634_v35  ;;  %3178 = vmatmul.msk.f32.gmra.mxu3 %vm163_vm0, %v117_v50  ;;  %v779_v50 = vadd.f32 %v3966_v59, %v778_v6  ;;  %v121_v6 = vld [vmem:[%s5124_s0 + $0x2e0] sm:$0xff] }
 0x291   :  { %v1920_v37 = vmax.f32 %v1635_v8, 0.0  ;;  %3283 = vmatmul.msk.f32.gmra.mxu2 %vm1085_vm1, %v1014_v30  ;;  %v2235_v34 = vpop.xlane.xlu1 %2234 }
 0x292   :  { %v2556_v41 = vadd.f32 %v3764_v39, %v2235_v34  ;;  %v781_v21 = vpop.f32.mrf.mxu3 }
 0x293   :  { %v2052_v42 = vmul.f32 %v4073_v44, %v1920_v37 }
 0x294   :  { %v2875_v43 = vperm.slane %v2556_v41, %v3804_v13 }
 0x295   :  { %v2278_v52 = vsel %vm1085_vm1, %v2052_v42, 0.0  ;;  %v1018_v42 = vmax.f32 %v773_v36, 0.0 }
 0x296   :  { %v2876_v53 = vsel %vm2787_vm3, %v2875_v43, %v2874_v32  ;;  %v1637_v23 = vpop.f32.mrf.mxu1  ;;  %2279 = vadd.xlane.f32.xlu1 %v2278_v52 }
 0x297   :  { %v1638_v54 = vadd.f32 %v4061_v38, %v1637_v23  ;;  %3179 = vmatmul.msk.f32.gmra.mxu3 %vm163_vm0, %v118_v4  ;;  %v782_v4 = vadd.f32 %v3966_v59, %v781_v21  ;;  %v122_v21 = vld [vmem:[%s5124_s0 + $0x2e8] sm:$0xff] }
 0x299   :  { %v1921_v56 = vmax.f32 %v1638_v54, 0.0  ;;  %3284 = vmatmul.msk.f32.gmra.mxu2 %vm1085_vm1, %v1015_v49  ;;  %v2238_v58 = vpop.xlane.xlu2 %2237 }
 0x29a   :  { %v2557_v1 = vadd.f32 %v3764_v39, %v2238_v58  ;;  %v784_v41 = vpop.f32.mrf.mxu3 }
 0x29b   :  { %v2053_v2 = vmul.f32 %v4073_v44, %v1921_v56 }
 0x29c   :  { %v2877_v3 = vperm.slane %v2557_v1, %v3819_v29 }
 0x29d   :  { %v2281_v7 = vsel %vm1085_vm1, %v2053_v2, 0.0  ;;  %v1019_v2 = vmax.f32 %v776_v26, 0.0 }
 0x29e   :  { %v2878_v9 = vsel %vm2791_vm4, %v2877_v3, %v2876_v53  ;;  %v1640_v10 = vpop.f32.mrf.mxu1  ;;  %2282 = vadd.xlane.f32.xlu2 %v2281_v7 }
 0x29f   :  { %v1641_v12 = vadd.f32 %v4061_v38, %v1640_v10  ;;  %3180 = vmatmul.msk.f32.gmra.mxu3 %vm163_vm0, %v119_v27  ;;  %v785_v27 = vadd.f32 %v3966_v59, %v784_v41  ;;  %v123_v41 = vld [vmem:[%s5124_s0 + $0x2f0] sm:$0xff] }
 0x2a1   :  { %v1922_v14 = vmax.f32 %v1641_v12, 0.0  ;;  %3285 = vmatmul.msk.f32.gmra.mxu2 %vm1085_vm1, %v1016_v61  ;;  %v2241_v16 = vpop.xlane.xlu0 %2240 }
 0x2a2   :  { %v2558_v18 = vadd.f32 %v3764_v39, %v2241_v16  ;;  %v787_v1 = vpop.f32.mrf.mxu3 }
 0x2a3   :  { %v2054_v19 = vmul.f32 %v4073_v44, %v1922_v14 }
 0x2a4   :  { %v2879_v20 = vperm.slane %v2558_v18, %v3834_v45 }
 0x2a5   :  { %v2284_v25 = vsel %vm1085_vm1, %v2054_v19, 0.0  ;;  %v1020_v19 = vmax.f32 %v779_v50, 0.0 }
 0x2a6   :  { %v2880_v30 = vsel %vm2795_vm5, %v2879_v20, %v2878_v9  ;;  %v1643_v31 = vpop.f32.mrf.mxu1  ;;  %2285 = vadd.xlane.f32.xlu0 %v2284_v25 }
 0x2a7   :  { %v1644_v32 = vadd.f32 %v4061_v38, %v1643_v31  ;;  %3181 = vmatmul.msk.f32.gmra.mxu3 %vm163_vm0, %v120_v48  ;;  %v788_v48 = vadd.f32 %v3966_v59, %v787_v1  ;;  %v124_v1 = vld [vmem:[%s5124_s0 + $0x2f8] sm:$0xff] }
 0x2a9   :  { %v1923_v35 = vmax.f32 %v1644_v32, 0.0  ;;  %3286 = vmatmul.msk.f32.gmra.mxu2 %vm1085_vm1, %v1017_v22  ;;  %v2244_v8 = vpop.xlane.xlu1 %2243 }
 0x2aa   :  { %v2559_v37 = vadd.f32 %v3764_v39, %v2244_v8  ;;  %v790_v18 = vpop.f32.mrf.mxu3 }
 0x2ab   :  { %v2055_v34 = vmul.f32 %v4073_v44, %v1923_v35 }
 0x2ac   :  { %v2881_v40 = vperm.slane %v2559_v37, %v3849_v60 }
 0x2ad   :  { %v2287_v43 = vsel %vm1085_vm1, %v2055_v34, 0.0  ;;  %v1021_v34 = vmax.f32 %v782_v4, 0.0 }
 0x2ae   :  { %v2882_v49 = vsel %vm2799_vm6, %v2881_v40, %v2880_v30  ;;  %v1646_v52 = vpop.f32.mrf.mxu1  ;;  %2288 = vadd.xlane.f32.xlu1 %v2287_v43 }
 0x2af   :  { %v1647_v53 = vadd.f32 %v4061_v38, %v1646_v52  ;;  %3182 = vmatmul.msk.f32.gmra.mxu3 %vm163_vm0, %v121_v6  ;;  %v791_v6 = vadd.f32 %v3966_v59, %v790_v18  ;;  %v125_v59 = vld [vmem:[%s5124_s0 + $0x300] sm:$0xff] }
 0x2b1   :  { %v1924_v23 = vmax.f32 %v1647_v53, 0.0  ;;  %3287 = vmatmul.msk.f32.gmra.mxu2 %vm1085_vm1, %v1018_v42  ;;  %v2247_v54 = vpop.xlane.xlu2 %2246 }
 0x2b2   :  { %v2560_v56 = vadd.f32 %v3764_v39, %v2247_v54  ;;  %v793_v37 = vpop.f32.mrf.mxu3 }
 0x2b3   :  { %v2056_v58 = vmul.f32 %v4073_v44, %v1924_v23 }
 0x2b4   :  { %v2883_v0 = vperm.slane %v2560_v56, %v3864_v11 }
 0x2b5   :  { %v2290_v3 = vsel %vm1085_vm1, %v2056_v58, 0.0  ;;  %v1022_v58 = vmax.f32 %v785_v27, 0.0 }
 0x2b6   :  { %v2884_v61 = vsel %vm2803_vm7, %v2883_v0, %v2882_v49  ;;  %v1649_v7 = vpop.f32.mrf.mxu1  ;;  %2291 = vadd.xlane.f32.xlu2 %v2290_v3 }
 0x2b7   :  { %v1650_v9 = vadd.f32 %v4061_v38, %v1649_v7  ;;  %3183 = vmatmul.msk.f32.gmra.mxu3 %vm163_vm0, %v122_v21 }
 0x2b9   :  { %v1925_v10 = vmax.f32 %v1650_v9, 0.0  ;;  %3288 = vmatmul.msk.f32.gmra.mxu2 %vm1085_vm1, %v1019_v2  ;;  %v2250_v12 = vpop.xlane.xlu0 %2249 }
 0x2ba   :  { %v2561_v14 = vadd.f32 %v3764_v39, %v2250_v12  ;;  %v796_v56 = vpop.f32.mrf.mxu3 }
 0x2bb   :  { %v2057_v16 = vmul.f32 %v4073_v44, %v1925_v10 }
 0x2bc   :  { %v2885_v17 = vperm.slane %v2561_v14, %v3879_v28 }
 0x2bd   :  { %v2293_v20 = vsel %vm1085_vm1, %v2057_v16, 0.0  ;;  %v1023_v16 = vmax.f32 %v788_v48, 0.0 }
 0x2be   :  { %v2886_v22 = vsel %vm2807_vm8, %v2885_v17, %v2884_v61  ;;  %v1652_v25 = vpop.f32.mrf.mxu1  ;;  %2294 = vadd.xlane.f32.xlu0 %v2293_v20 }
 0x2bf   :  { %v1653_v30 = vadd.f32 %v4061_v38, %v1652_v25  ;;  %3184 = vmatmul.msk.f32.gmra.mxu3 %vm163_vm0, %v123_v41 }
 0x2c1   :  { %v1926_v31 = vmax.f32 %v1653_v30, 0.0  ;;  %3289 = vmatmul.msk.f32.gmra.mxu2 %vm1085_vm1, %v1020_v19  ;;  %v2253_v32 = vpop.xlane.xlu1 %2252 }
 0x2c2   :  { %v2562_v35 = vadd.f32 %v3764_v39, %v2253_v32  ;;  %v799_v14 = vpop.f32.mrf.mxu3 }
 0x2c3   :  { %v2058_v8 = vmul.f32 %v4073_v44, %v1926_v31 }
 0x2c4   :  { %v2887_v36 = vperm.slane %v2562_v35, %v3894_v46 }
 0x2c5   :  { %v2296_v40 = vsel %vm1085_vm1, %v2058_v8, 0.0  ;;  %v1024_v8 = vmax.f32 %v791_v6, 0.0 }
 0x2c6   :  { %v2888_v42 = vsel %vm2811_vm9, %v2887_v36, %v2886_v22  ;;  %v1655_v43 = vpop.f32.mrf.mxu1  ;;  %2297 = vadd.xlane.f32.xlu1 %v2296_v40 }
 0x2c7   :  { %v1656_v49 = vadd.f32 %v4061_v38, %v1655_v43  ;;  %3185 = vmatmul.msk.f32.gmra.mxu3 %vm163_vm0, %v124_v1 }
 0x2c9   :  { %v1927_v52 = vmax.f32 %v1656_v49, 0.0  ;;  %3290 = vmatmul.msk.f32.gmra.mxu2 %vm1085_vm1, %v1021_v34  ;;  %v2256_v53 = vpop.xlane.xlu2 %2255  ;;  %v4396_v49 = vld [vmem:[%s5126_s2] ss:$0 sm:$0xff] }
 0x2ca   :  { %v2563_v23 = vadd.f32 %v3764_v39, %v2256_v53  ;;  %v802_v35 = vpop.f32.mrf.mxu3  ;;  %v794_v21 = vadd.f32 %v4396_v49, %v793_v37  ;;  %v126_v37 = vld [vmem:[%s5124_s0 + $0x308] sm:$0xff]  ;;  %v797_v41 = vadd.f32 %v4396_v49, %v796_v56  ;;  %v127_v56 = vld [vmem:[%s5124_s0 + $0x310] sm:$0xff]  ;;  %v800_v1 = vadd.f32 %v4396_v49, %v799_v14  ;;  %v128_v14 = vld [vmem:[%s5124_s0 + $0x318] sm:$0xff] }
 0x2cb   :  { %v2059_v54 = vmul.f32 %v4073_v44, %v1927_v52 }
 0x2cc   :  { %v2889_v26 = vperm.slane %v2563_v23, %v3909_v63 }
 0x2cd   :  { %v2299_v0 = vsel %vm1085_vm1, %v2059_v54, 0.0  ;;  %v1025_v54 = vmax.f32 %v794_v21, 0.0 }
 0x2ce   :  { %v2890_v2 = vsel %vm2815_vm10, %v2889_v26, %v2888_v42  ;;  %v1658_v3 = vpop.f32.mrf.mxu1  ;;  %2300 = vadd.xlane.f32.xlu2 %v2299_v0 }
 0x2cf   :  { %v1659_v61 = vadd.f32 %v4061_v38, %v1658_v3  ;;  %3186 = vmatmul.msk.f32.gmra.mxu3 %vm163_vm0, %v125_v59  ;;  %v803_v59 = vadd.f32 %v4396_v49, %v802_v35 }
 0x2d1   :  { %v1928_v7 = vmax.f32 %v1659_v61, 0.0  ;;  %3291 = vmatmul.msk.f32.gmra.mxu2 %vm1085_vm1, %v1022_v58  ;;  %v2259_v9 = vpop.xlane.xlu0 %2258 }
 0x2d2   :  { %v2564_v10 = vadd.f32 %v3764_v39, %v2259_v9  ;;  %v805_v23 = vpop.f32.mrf.mxu3 }
 0x2d3   :  { %v2060_v12 = vmul.f32 %v4073_v44, %v1928_v7 }
 0x2d4   :  { %v2891_v50 = vperm.slane %v2564_v10, %v3924_v15 }
 0x2d5   :  { %v2302_v17 = vsel %vm1085_vm1, %v2060_v12, 0.0  ;;  %v1026_v12 = vmax.f32 %v797_v41, 0.0 }
 0x2d6   :  { %v2892_v19 = vsel %vm2819_vm11, %v2891_v50, %v2890_v2  ;;  %v1661_v20 = vpop.f32.mrf.mxu1  ;;  %2303 = vadd.xlane.f32.xlu0 %v2302_v17 }
 0x2d7   :  { %v1662_v22 = vadd.f32 %v4061_v38, %v1661_v20  ;;  %3187 = vmatmul.msk.f32.gmra.mxu3 %vm163_vm0, %v126_v37 }
 0x2d9   :  { %v1929_v25 = vmax.f32 %v1662_v22, 0.0  ;;  %3292 = vmatmul.msk.f32.gmra.mxu2 %vm1085_vm1, %v1023_v16  ;;  %v2262_v30 = vpop.xlane.xlu1 %2261 }
 0x2da   :  { %v2565_v31 = vadd.f32 %v3764_v39, %v2262_v30  ;;  %v808_v10 = vpop.f32.mrf.mxu3 }
 0x2db   :  { %v2061_v32 = vmul.f32 %v4073_v44, %v1929_v25 }
 0x2dc   :  { %v2893_v4 = vperm.slane %v2565_v31, %v3939_v33 }
 0x2dd   :  { %v2305_v36 = vsel %vm1085_vm1, %v2061_v32, 0.0  ;;  %v1027_v32 = vmax.f32 %v800_v1, 0.0 }
 0x2de   :  { %v2894_v34 = vsel %vm2823_vm12, %v2893_v4, %v2892_v19  ;;  %v1664_v40 = vpop.f32.mrf.mxu1  ;;  %2306 = vadd.xlane.f32.xlu1 %v2305_v36 }
 0x2df   :  { %v1665_v42 = vadd.f32 %v4061_v38, %v1664_v40  ;;  %3188 = vmatmul.msk.f32.gmra.mxu3 %vm163_vm0, %v127_v56 }
 0x2e1   :  { %v1930_v18 = vmax.f32 %v1665_v42, 0.0  ;;  %3293 = vmatmul.msk.f32.gmra.mxu2 %vm1085_vm1, %v1024_v8  ;;  %v2265_v43 = vpop.xlane.xlu2 %2264 }
 0x2e2   :  { %v2566_v52 = vadd.f32 %v3764_v39, %v2265_v43  ;;  %v811_v31 = vpop.f32.mrf.mxu3 }
 0x2e3   :  { %v2062_v53 = vmul.f32 %v4073_v44, %v1930_v18 }
 0x2e4   :  { %v2895_v27 = vperm.slane %v2566_v52, %v3954_v51 }
 0x2e5   :  { %v2308_v26 = vsel %vm1085_vm1, %v2062_v53, 0.0  ;;  %v1028_v53 = vmax.f32 %v803_v59, 0.0  ;;  %v132_v59 = vld [vmem:[%s5124_s0 + $0x338] sm:$0xff] }
 0x2e6   :  { %v2896_v58 = vsel %vm5134_vm13, %v2895_v27, %v2894_v34  ;;  %v1667_v0 = vpop.f32.mrf.mxu1  ;;  %2309 = vadd.xlane.f32.xlu2 %v2308_v26 }
 0x2e7   :  { %v1668_v2 = vadd.f32 %v4061_v38, %v1667_v0  ;;  %3189 = vmatmul.msk.f32.gmra.mxu3 %vm163_vm0, %v128_v14  ;;  %v129_v0 = vld [vmem:[%s5124_s0 + $0x320] sm:$0xff] }
 0x2e9   :  { %v1931_v3 = vmax.f32 %v1668_v2, 0.0  ;;  %3294 = vmatmul.msk.f32.gmra.mxu2 %vm1085_vm1, %v1025_v54  ;;  %v2268_v61 = vpop.xlane.xlu0 %2267  ;;  %v806_v2 = vadd.f32 %v4396_v49, %v805_v23  ;;  %v809_v23 = vadd.f32 %v4396_v49, %v808_v10  ;;  %v131_v10 = vld [vmem:[%s5124_s0 + $0x330] sm:$0xff] }
 0x2ea   :  { %v2567_v7 = vadd.f32 %v3764_v39, %v2268_v61  ;;  %v814_v52 = vpop.f32.mrf.mxu3 }
 0x2eb   :  { %v2063_v9 = vmul.f32 %v4073_v44, %v1931_v3 }
 0x2ec   :  { %v2897_v48 = vperm.slane %v2567_v7, %v3974_v5  ;;  %v1029_v7 = vmax.f32 %v806_v2, 0.0 }
 0x2ed   :  { %v2311_v50 = vsel %vm1085_vm1, %v2063_v9, 0.0  ;;  %v130_v9 = vld [vmem:[%s5124_s0 + $0x328] sm:$0xff] }
 0x2ee   :  { %v2898_v16 = vsel %vm5136_vm14, %v2897_v48, %v2896_v58  ;;  %v1670_v17 = vpop.f32.mrf.mxu1  ;;  %2312 = vadd.xlane.f32.xlu0 %v2311_v50  ;;  %vm5137_vm14 = vcmask 982912  }
 0x2ef   :  { %v1671_v19 = vadd.f32 %v4061_v38, %v1670_v17  ;;  %3190 = vmatmul.msk.f32.gmra.mxu3 %vm163_vm0, %v129_v0 }
 0x2f1   :  { %v1932_v20 = vmax.f32 %v1671_v19, 0.0  ;;  %3295 = vmatmul.msk.f32.gmra.mxu2 %vm1085_vm1, %v1026_v12  ;;  %v2271_v22 = vpop.xlane.xlu1 %2270 }
 0x2f2   :  { %v2568_v25 = vadd.f32 %v3764_v39, %v2271_v22  ;;  %v817_v61 = vpop.f32.mrf.mxu3 }
 0x2f3   :  { %v2064_v30 = vmul.f32 %v4073_v44, %v1932_v20  ;;  %v1030_v20 = vmax.f32 %v809_v23, 0.0 }
 0x2f4   :  { %v2899_v6 = vperm.slane %v2568_v25, %v3993_v24 }
 0x2f5   :  { %v2314_v4 = vsel %vm1085_vm1, %v2064_v30, 0.0 }
 0x2f6   :  { %v2900_v8 = vsel %vm5137_vm14, %v2899_v6, %v2898_v16  ;;  %v1673_v36 = vpop.f32.mrf.mxu1  ;;  %2315 = vadd.xlane.f32.xlu1 %v2314_v4  ;;  %vm3060_vm14 = vcmask 1042434   ;;  %v812_v6 = vadd.f32 %v4396_v49, %v811_v31 }
 0x2f7   :  { %v1674_v34 = vadd.f32 %v4061_v38, %v1673_v36  ;;  %3191 = vmatmul.msk.f32.gmra.mxu3 %vm163_vm0, %v130_v9 }
 0x2f8   :  { %v1031_v14 = vmax.f32 %v812_v6, 0.0 }
 0x2f9   :  { %v1933_v40 = vmax.f32 %v1674_v34, 0.0  ;;  %3296 = vmatmul.msk.f32.gmra.mxu2 %vm1085_vm1, %v1027_v32  ;;  %v2274_v42 = vpop.xlane.xlu2 %2273 }
 0x2fa   :  { %v2569_v18 = vadd.f32 %v3764_v39, %v2274_v42  ;;  %v820_v56 = vpop.f32.mrf.mxu3 }
 0x2fb   :  { %v2065_v43 = vmul.f32 %v4073_v44, %v1933_v40  ;;  %v4478_v40 = vld [vmem:[%s5128_s4] ss:$0 sm:$0xff] }
 0x2fc   :  { %v2901_v21 = vperm.slane %v2569_v18, %v4012_v47 }
 0x2fd   :  { %v2317_v27 = vsel %vm1085_vm1, %v2065_v43, 0.0  ;;  %v815_v43 = vadd.f32 %v4396_v49, %v814_v52 }
 0x2fe   :  { %v2902_v54 = vsel %vm2839_vm15, %v2901_v21, %v2900_v8  ;;  %v1676_v26 = vpop.f32.mrf.mxu1  ;;  %2318 = vadd.xlane.f32.xlu2 %v2317_v27  ;;  %v4490_v21 = vld [vmem:[%s5129_s5] ss:$0 sm:$0xff] }
 0x2ff   :  { %v4442_v58 = vsel %vm3060_vm14, %v2902_v54, %v4241_v55  ;;  %v1677_v35 = vadd.f32 %v4061_v38, %v1676_v26  ;;  %3192 = vmatmul.msk.f32.gmra.mxu3 %vm163_vm0, %v131_v10  ;;  %vm5138_vm14 = vcmask 917312  }
 0x301   :  { %v1934_v37 = vmax.f32 %v1677_v35, 0.0  ;;  %3297 = vmatmul.msk.f32.gmra.mxu2 %vm1085_vm1, %v1028_v53  ;;  %v2277_v41 = vpop.xlane.xlu0 %2276 }
 0x302   :  { %v2570_v48 = vadd.f32 %v3764_v39, %v2277_v41  ;;  %v823_v34 = vpop.f32.mrf.mxu3  ;;  %v133_v41 = vld [vmem:[%s5124_s0 + $0x340] sm:$0xff] }
 0x303   :  { %v2066_v3 = vmul.f32 %v4073_v44, %v1934_v37  ;;  %v1032_v37 = vmax.f32 %v815_v43, 0.0 }
 0x304   :  { %v2903_v16 = vperm.slane %v2570_v48, %v3782_v57 }
 0x305   :  { %v2320_v55 = vsel %vm1085_vm1, %v2066_v3, 0.0 }
 0x306   :  { %2321 = vadd.xlane.f32.xlu0 %v2320_v55  ;;  %v818_v55 = vadd.f32 %v4396_v49, %v817_v61  ;;  %v134_v61 = vld [vmem:[%s5124_s0 + $0x348] sm:$0xff] }
 0x307   :  { %3193 = vmatmul.msk.f32.gmra.mxu3 %vm163_vm0, %v132_v59 }
 0x309   :  { %3298 = vmatmul.msk.f32.gmra.mxu2 %vm1085_vm1, %v1029_v7  ;;  %v2280_v12 = vpop.xlane.xlu1 %2279 }
 0x30a   :  { %v2571_v50 = vadd.f32 %v3764_v39, %v2280_v12  ;;  %v826_v0 = vpop.f32.mrf.mxu3 }
 0x30c   :  { %v2904_v17 = vperm.slane %v2571_v50, %v3788_v62  ;;  %v1679_v19 = vpop.f32.mrf.mxu2 }
 0x30d   :  { %v1680_v22 = vadd.f32 %v4061_v38, %v1679_v19 }
 0x30e   :  { %v2905_v1 = vsel %vm2783_vm2, %v2904_v17, %v2903_v16  ;;  %v1033_v17 = vmax.f32 %v818_v55, 0.0 }
 0x30f   :  { %v1935_v25 = vmax.f32 %v1680_v22, 0.0  ;;  %3194 = vmatmul.msk.f32.gmra.mxu3 %vm163_vm0, %v133_v41 }
 0x311   :  { %3299 = vmatmul.msk.f32.gmra.mxu2 %vm1085_vm1, %v1030_v20  ;;  %v2283_v30 = vpop.xlane.xlu2 %2282  ;;  %v2067_v32 = vmul.f32 %v4073_v44, %v1935_v25  ;;  %v821_v25 = vadd.f32 %v4396_v49, %v820_v56  ;;  %v135_v56 = vld [vmem:[%s5124_s0 + $0x350] sm:$0xff] }
 0x312   :  { %v2572_v4 = vadd.f32 %v3764_v39, %v2283_v30  ;;  %v829_v16 = vpop.f32.mrf.mxu3 }
 0x313   :  { %v2323_v38 = vsel %vm1085_vm1, %v2067_v32, 0.0 }
 0x314   :  { %v2906_v8 = vperm.slane %v2572_v4, %v3804_v13  ;;  %v1682_v36 = vpop.f32.mrf.mxu2  ;;  %2324 = vadd.xlane.f32.xlu1 %v2323_v38 }
 0x315   :  { %v1683_v31 = vadd.f32 %v4478_v40, %v1682_v36 }
 0x316   :  { %v2907_v44 = vsel %vm2787_vm3, %v2906_v8, %v2905_v1  ;;  %v1034_v8 = vmax.f32 %v821_v25, 0.0 }
 0x317   :  { %v1936_v42 = vmax.f32 %v1683_v31, 0.0  ;;  %3195 = vmatmul.msk.f32.gmra.mxu3 %vm163_vm0, %v134_v61 }
 0x319   :  { %3300 = vmatmul.msk.f32.gmra.mxu2 %vm1085_vm1, %v1031_v14  ;;  %v2286_v18 = vpop.xlane.xlu0 %2285  ;;  %v2068_v53 = vmul.f32 %v4490_v21, %v1936_v42  ;;  %v824_v42 = vadd.f32 %v4396_v49, %v823_v34  ;;  %v136_v34 = vld [vmem:[%s5124_s0 + $0x358] sm:$0xff] }
 0x31a   :  { %v2573_v27 = vadd.f32 %v3764_v39, %v2286_v18  ;;  %v832_v38 = vpop.f32.mrf.mxu3 }
 0x31b   :  { %v2326_v54 = vsel %vm1085_vm1, %v2068_v53, 0.0 }
 0x31c   :  { %v2908_v26 = vperm.slane %v2573_v27, %v3819_v29  ;;  %v1685_v35 = vpop.f32.mrf.mxu2  ;;  %2327 = vadd.xlane.f32.xlu2 %v2326_v54 }
 0x31d   :  { %v1686_v52 = vadd.f32 %v4478_v40, %v1685_v35 }
 0x31e   :  { %v2909_v2 = vsel %vm2791_vm4, %v2908_v26, %v2907_v44  ;;  %v1035_v26 = vmax.f32 %v824_v42, 0.0 }
 0x31f   :  { %v1937_v3 = vmax.f32 %v1686_v52, 0.0  ;;  %3196 = vmatmul.msk.f32.gmra.mxu3 %vm163_vm0, %v135_v56 }
 0x321   :  { %3301 = vmatmul.msk.f32.gmra.mxu2 %vm1085_vm1, %v1032_v37  ;;  %v2289_v7 = vpop.xlane.xlu1 %2288  ;;  %v2069_v9 = vmul.f32 %v4490_v21, %v1937_v3  ;;  %v827_v3 = vadd.f32 %v4396_v49, %v826_v0  ;;  %v137_v0 = vld [vmem:[%s5124_s0 + $0x360] sm:$0xff] }
 0x322   :  { %v2574_v48 = vadd.f32 %v3764_v39, %v2289_v7  ;;  %v835_v54 = vpop.f32.mrf.mxu3 }
 0x323   :  { %v2329_v12 = vsel %vm1085_vm1, %v2069_v9, 0.0 }
 0x324   :  { %v2910_v23 = vperm.slane %v2574_v48, %v3834_v45  ;;  %v1688_v50 = vpop.f32.mrf.mxu2  ;;  %2330 = vadd.xlane.f32.xlu0 %v2329_v12 }
 0x325   :  { %v1689_v19 = vadd.f32 %v4478_v40, %v1688_v50 }
 0x326   :  { %v2911_v20 = vsel %vm2795_vm5, %v2910_v23, %v2909_v2  ;;  %v1036_v23 = vmax.f32 %v827_v3, 0.0 }
 0x327   :  { %v1938_v22 = vmax.f32 %v1689_v19, 0.0  ;;  %3197 = vmatmul.msk.f32.gmra.mxu3 %vm163_vm0, %v136_v34 }
 0x329   :  { %3302 = vmatmul.msk.f32.gmra.mxu2 %vm1085_vm1, %v1033_v17  ;;  %v2292_v1 = vpop.xlane.xlu2 %2291  ;;  %v2070_v10 = vmul.f32 %v4490_v21, %v1938_v22  ;;  %v830_v22 = vadd.f32 %v4396_v49, %v829_v16  ;;  %v138_v16 = vld [vmem:[%s5124_s0 + $0x368] sm:$0xff] }
 0x32a   :  { %v2575_v30 = vadd.f32 %v3764_v39, %v2292_v1  ;;  %v838_v12 = vpop.f32.mrf.mxu3 }
 0x32b   :  { %v2332_v6 = vsel %vm1085_vm1, %v2070_v10, 0.0 }
 0x32c   :  { %v2912_v32 = vperm.slane %v2575_v30, %v3849_v60  ;;  %v1691_v4 = vpop.f32.mrf.mxu2  ;;  %2333 = vadd.xlane.f32.xlu1 %v2332_v6 }
 0x32d   :  { %v1692_v36 = vadd.f32 %v4478_v40, %v1691_v4 }
 0x32e   :  { %v2913_v14 = vsel %vm2799_vm6, %v2912_v32, %v2911_v20  ;;  %v1037_v32 = vmax.f32 %v830_v22, 0.0 }
 0x32f   :  { %v1939_v31 = vmax.f32 %v1692_v36, 0.0  ;;  %3198 = vmatmul.msk.f32.gmra.mxu3 %vm163_vm0, %v137_v0 }
 0x331   :  { %3303 = vmatmul.msk.f32.gmra.mxu2 %vm1085_vm1, %v1034_v8  ;;  %v2295_v44 = vpop.xlane.xlu0 %2294  ;;  %v2071_v59 = vmul.f32 %v4490_v21, %v1939_v31  ;;  %v833_v31 = vadd.f32 %v4396_v49, %v832_v38  ;;  %v139_v38 = vld [vmem:[%s5124_s0 + $0x370] sm:$0xff] }
 0x332   :  { %v2576_v18 = vadd.f32 %v3764_v39, %v2295_v44  ;;  %v841_v6 = vpop.f32.mrf.mxu3 }
 0x333   :  { %v2335_v43 = vsel %vm1085_vm1, %v2071_v59, 0.0 }
 0x334   :  { %v2914_v53 = vperm.slane %v2576_v18, %v3864_v11  ;;  %v1694_v27 = vpop.f32.mrf.mxu2  ;;  %2336 = vadd.xlane.f32.xlu2 %v2335_v43 }
 0x335   :  { %v1695_v35 = vadd.f32 %v4478_v40, %v1694_v27 }
 0x336   :  { %v2915_v37 = vsel %vm2803_vm7, %v2914_v53, %v2913_v14  ;;  %v1038_v53 = vmax.f32 %v833_v31, 0.0 }
 0x337   :  { %v1940_v52 = vmax.f32 %v1695_v35, 0.0  ;;  %3199 = vmatmul.msk.f32.gmra.mxu3 %vm163_vm0, %v138_v16 }
 0x339   :  { %3304 = vmatmul.msk.f32.gmra.mxu2 %vm1085_vm1, %v1035_v26  ;;  %v2298_v2 = vpop.xlane.xlu1 %2297  ;;  %v2072_v41 = vmul.f32 %v4490_v21, %v1940_v52  ;;  %v836_v52 = vadd.f32 %v4396_v49, %v835_v54  ;;  %v140_v54 = vld [vmem:[%s5124_s0 + $0x378] sm:$0xff] }
 0x33a   :  { %v2577_v7 = vadd.f32 %v3764_v39, %v2298_v2  ;;  %v844_v43 = vpop.f32.mrf.mxu3 }
 0x33b   :  { %v2338_v55 = vsel %vm1085_vm1, %v2072_v41, 0.0 }
 0x33c   :  { %v2916_v9 = vperm.slane %v2577_v7, %v3879_v28  ;;  %v1697_v48 = vpop.f32.mrf.mxu2  ;;  %2339 = vadd.xlane.f32.xlu0 %v2338_v55 }
 0x33d   :  { %v1698_v50 = vadd.f32 %v4478_v40, %v1697_v48 }
 0x33e   :  { %v2917_v17 = vsel %vm2807_vm8, %v2916_v9, %v2915_v37  ;;  %v1039_v9 = vmax.f32 %v836_v52, 0.0 }
 0x33f   :  { %v1941_v19 = vmax.f32 %v1698_v50, 0.0  ;;  %3200 = vmatmul.msk.f32.gmra.mxu3 %vm163_vm0, %v139_v38 }
 0x341   :  { %3305 = vmatmul.msk.f32.gmra.mxu2 %vm1085_vm1, %v1036_v23  ;;  %v2301_v20 = vpop.xlane.xlu2 %2300  ;;  %v2073_v61 = vmul.f32 %v4490_v21, %v1941_v19  ;;  %v839_v19 = vadd.f32 %v4396_v49, %v838_v12  ;;  %v141_v12 = vld [vmem:[%s5124_s0 + $0x380] sm:$0xff] }
 0x342   :  { %v2578_v1 = vadd.f32 %v3764_v39, %v2301_v20  ;;  %v847_v55 = vpop.f32.mrf.mxu3 }
 0x343   :  { %v2341_v25 = vsel %vm1085_vm1, %v2073_v61, 0.0 }
 0x344   :  { %v2918_v10 = vperm.slane %v2578_v1, %v3894_v46  ;;  %v1700_v30 = vpop.f32.mrf.mxu2  ;;  %2342 = vadd.xlane.f32.xlu1 %v2341_v25 }
 0x345   :  { %v1701_v4 = vadd.f32 %v4478_v40, %v1700_v30 }
 0x346   :  { %v2919_v8 = vsel %vm2811_vm9, %v2918_v10, %v2917_v17  ;;  %v1040_v10 = vmax.f32 %v839_v19, 0.0 }
 0x347   :  { %v1942_v36 = vmax.f32 %v1701_v4, 0.0  ;;  %3201 = vmatmul.msk.f32.gmra.mxu3 %vm163_vm0, %v140_v54 }
 0x349   :  { %3306 = vmatmul.msk.f32.gmra.mxu2 %vm1085_vm1, %v1037_v32  ;;  %v2304_v14 = vpop.xlane.xlu0 %2303  ;;  %v2074_v56 = vmul.f32 %v4490_v21, %v1942_v36  ;;  %v842_v36 = vadd.f32 %v4396_v49, %v841_v6  ;;  %v142_v6 = vld [vmem:[%s5124_s0 + $0x388] sm:$0xff] }
 0x34a   :  { %v2579_v44 = vadd.f32 %v3764_v39, %v2304_v14  ;;  %v850_v25 = vpop.f32.mrf.mxu3 }
 0x34b   :  { %v2344_v42 = vsel %vm1085_vm1, %v2074_v56, 0.0 }
 0x34c   :  { %v2920_v59 = vperm.slane %v2579_v44, %v3909_v63  ;;  %v1703_v18 = vpop.f32.mrf.mxu2  ;;  %2345 = vadd.xlane.f32.xlu2 %v2344_v42 }
 0x34d   :  { %v1704_v27 = vadd.f32 %v4478_v40, %v1703_v18 }
 0x34e   :  { %v2921_v26 = vsel %vm2815_vm10, %v2920_v59, %v2919_v8  ;;  %v1041_v59 = vmax.f32 %v842_v36, 0.0 }
 0x34f   :  { %v1943_v35 = vmax.f32 %v1704_v27, 0.0  ;;  %3202 = vmatmul.msk.f32.gmra.mxu3 %vm163_vm0, %v141_v12 }
 0x351   :  { %3307 = vmatmul.msk.f32.gmra.mxu2 %vm1085_vm1, %v1038_v53  ;;  %v2307_v37 = vpop.xlane.xlu1 %2306  ;;  %v2075_v34 = vmul.f32 %v4490_v21, %v1943_v35  ;;  %v845_v35 = vadd.f32 %v4396_v49, %v844_v43  ;;  %v143_v43 = vld [vmem:[%s5124_s0 + $0x390] sm:$0xff] }
 0x352   :  { %v2580_v2 = vadd.f32 %v3764_v39, %v2307_v37  ;;  %v853_v42 = vpop.f32.mrf.mxu3 }
 0x353   :  { %v2347_v3 = vsel %vm1085_vm1, %v2075_v34, 0.0 }
 0x354   :  { %v2922_v41 = vperm.slane %v2580_v2, %v3924_v15  ;;  %v1706_v7 = vpop.f32.mrf.mxu2  ;;  %2348 = vadd.xlane.f32.xlu0 %v2347_v3 }
 0x355   :  { %v1707_v48 = vadd.f32 %v4478_v40, %v1706_v7 }
 0x356   :  { %v2923_v23 = vsel %vm2819_vm11, %v2922_v41, %v2921_v26  ;;  %v1042_v41 = vmax.f32 %v845_v35, 0.0 }
 0x357   :  { %v1944_v50 = vmax.f32 %v1707_v48, 0.0  ;;  %3203 = vmatmul.msk.f32.gmra.mxu3 %vm163_vm0, %v142_v6 }
 0x359   :  { %3308 = vmatmul.msk.f32.gmra.mxu2 %vm1085_vm1, %v1039_v9  ;;  %v2310_v17 = vpop.xlane.xlu2 %2309  ;;  %v2076_v0 = vmul.f32 %v4490_v21, %v1944_v50  ;;  %v848_v50 = vadd.f32 %v4396_v49, %v847_v55  ;;  %v144_v55 = vld [vmem:[%s5124_s0 + $0x398] sm:$0xff] }
 0x35a   :  { %v2581_v20 = vadd.f32 %v3764_v39, %v2310_v17  ;;  %v856_v3 = vpop.f32.mrf.mxu3 }
 0x35b   :  { %v2350_v22 = vsel %vm1085_vm1, %v2076_v0, 0.0 }
 0x35c   :  { %v2924_v61 = vperm.slane %v2581_v20, %v3939_v33  ;;  %v1709_v1 = vpop.f32.mrf.mxu2  ;;  %2351 = vadd.xlane.f32.xlu1 %v2350_v22 }
 0x35d   :  { %v1710_v30 = vadd.f32 %v4478_v40, %v1709_v1 }
 0x35e   :  { %v2925_v32 = vsel %vm2823_vm12, %v2924_v61, %v2923_v23  ;;  %v1043_v61 = vmax.f32 %v848_v50, 0.0 }
 0x35f   :  { %v1945_v4 = vmax.f32 %v1710_v30, 0.0  ;;  %3204 = vmatmul.msk.f32.gmra.mxu3 %vm163_vm0, %v143_v43 }
 0x361   :  { %3309 = vmatmul.msk.f32.gmra.mxu2 %vm1085_vm1, %v1040_v10  ;;  %v2313_v8 = vpop.xlane.xlu0 %2312  ;;  %v2077_v16 = vmul.f32 %v4490_v21, %v1945_v4  ;;  %v851_v4 = vadd.f32 %v4396_v49, %v850_v25 }
 0x362   :  { %v2582_v14 = vadd.f32 %v3764_v39, %v2313_v8  ;;  %v859_v22 = vpop.f32.mrf.mxu3 }
 0x363   :  { %v2353_v31 = vsel %vm1085_vm1, %v2077_v16, 0.0 }
 0x364   :  { %v2926_v56 = vperm.slane %v2582_v14, %v3954_v51  ;;  %v1712_v44 = vpop.f32.mrf.mxu2  ;;  %2354 = vadd.xlane.f32.xlu2 %v2353_v31 }
 0x365   :  { %v1713_v18 = vadd.f32 %v4478_v40, %v1712_v44 }
 0x366   :  { %v2927_v53 = vsel %vm5134_vm13, %v2926_v56, %v2925_v32  ;;  %vm3062_vm13 = vcmask 1043459   ;;  %v1044_v56 = vmax.f32 %v851_v4, 0.0 }
 0x367   :  { %v1946_v27 = vmax.f32 %v1713_v18, 0.0  ;;  %3205 = vmatmul.msk.f32.gmra.mxu3 %vm163_vm0, %v144_v55 }
 0x369   :  { %3310 = vmatmul.msk.f32.gmra.mxu2 %vm1085_vm1, %v1041_v59  ;;  %v2316_v26 = vpop.xlane.xlu1 %2315  ;;  %v2078_v38 = vmul.f32 %v4490_v21, %v1946_v27  ;;  %v854_v27 = vadd.f32 %v4396_v49, %v853_v42  ;;  %v857_v42 = vadd.f32 %v4396_v49, %v856_v3  ;;  %v147_v3 = vld [vmem:[%s5124_s0 + $0x3b0] sm:$0xff] }
 0x36a   :  { %v2583_v37 = vadd.f32 %v3764_v39, %v2316_v26  ;;  %v862_v31 = vpop.f32.mrf.mxu3 }
 0x36b   :  { %v2356_v52 = vsel %vm1085_vm1, %v2078_v38, 0.0  ;;  %v1046_v43 = vmax.f32 %v857_v42, 0.0 }
 0x36c   :  { %v2928_v34 = vperm.slane %v2583_v37, %v3974_v5  ;;  %v1715_v2 = vpop.f32.mrf.mxu2  ;;  %2357 = vadd.xlane.f32.xlu0 %v2356_v52 }
 0x36d   :  { %v1716_v7 = vadd.f32 %v4478_v40, %v1715_v2 }
 0x36e   :  { %v2929_v9 = vsel %vm5138_vm14, %v2928_v34, %v2927_v53  ;;  %vm5139_vm14 = vcmask 982912   ;;  %v145_v53 = vld [vmem:[%s5124_s0 + $0x3a0] sm:$0xff]  ;;  %v146_v34 = vld [vmem:[%s5124_s0 + $0x3a8] sm:$0xff] }
 0x36f   :  { %v1947_v48 = vmax.f32 %v1716_v7, 0.0  ;;  %3206 = vmatmul.msk.f32.gmra.mxu3 %vm163_vm0, %v145_v53 }
 0x371   :  { %3311 = vmatmul.msk.f32.gmra.mxu2 %vm1085_vm1, %v1042_v41  ;;  %v2319_v23 = vpop.xlane.xlu2 %2318  ;;  %v2079_v54 = vmul.f32 %v4490_v21, %v1947_v48 }
 0x372   :  { %v2584_v17 = vadd.f32 %v3764_v39, %v2319_v23  ;;  %v865_v38 = vpop.f32.mrf.mxu3 }
 0x373   :  { %v2359_v19 = vsel %vm1085_vm1, %v2079_v54, 0.0 }
 0x374   :  { %v2930_v0 = vperm.slane %v2584_v17, %v3993_v24  ;;  %v1718_v20 = vpop.f32.mrf.mxu2  ;;  %2360 = vadd.xlane.f32.xlu1 %v2359_v19 }
 0x375   :  { %v1719_v1 = vadd.f32 %v4478_v40, %v1718_v20 }
 0x376   :  { %v2931_v10 = vsel %vm5139_vm14, %v2930_v0, %v2929_v9  ;;  %v860_v0 = vadd.f32 %v4396_v49, %v859_v22 }
 0x377   :  { %v1948_v30 = vmax.f32 %v1719_v1, 0.0  ;;  %3207 = vmatmul.msk.f32.gmra.mxu3 %vm163_vm0, %v146_v34 }
 0x378   :  { %v1047_v4 = vmax.f32 %v860_v0, 0.0 }
 0x379   :  { %3312 = vmatmul.msk.f32.gmra.mxu2 %vm1085_vm1, %v1043_v61  ;;  %v2322_v32 = vpop.xlane.xlu0 %2321  ;;  %v2080_v12 = vmul.f32 %v4490_v21, %v1948_v30 }
 0x37a   :  { %v2585_v8 = vadd.f32 %v3764_v39, %v2322_v32  ;;  %v868_v48 = vpop.f32.mrf.mxu3 }
 0x37b   :  { %v2362_v36 = vsel %vm1085_vm1, %v2080_v12, 0.0 }
 0x37c   :  { %v2932_v16 = vperm.slane %v2585_v8, %v4012_v47  ;;  %v1721_v14 = vpop.f32.mrf.mxu2  ;;  %2363 = vadd.xlane.f32.xlu2 %v2362_v36 }
 0x37d   :  { %v1722_v44 = vadd.f32 %v4478_v40, %v1721_v14  ;;  %v863_v14 = vadd.f32 %v4396_v49, %v862_v31 }
 0x37e   :  { %v2933_v59 = vsel %vm2839_vm15, %v2932_v16, %v2931_v10  ;;  %v148_v16 = vld [vmem:[%s5124_s0 + $0x3b8] sm:$0xff] }
 0x37f   :  { %v4644_v25 = vsel %vm3062_vm13, %v2933_v59, %v4442_v58  ;;  %v1949_v18 = vmax.f32 %v1722_v44, 0.0  ;;  %v1045_v58 = vmax.f32 %v854_v27, 0.0  ;;  %3208 = vmatmul.msk.f32.gmra.mxu3 %vm163_vm0, %v147_v3  ;;  %vm5141_vm13 = vcmask 917312  }
 0x381   :  { %3313 = vmatmul.msk.f32.gmra.mxu2 %vm1085_vm1, %v1044_v56  ;;  %v2081_v6 = vmul.f32 %v4490_v21, %v1949_v18 }
 0x382   :  { %v871_v32 = vpop.f32.mrf.mxu3 }
 0x383   :  { %v2365_v26 = vsel %vm1085_vm1, %v2081_v6, 0.0  ;;  %v1048_v6 = vmax.f32 %v863_v14, 0.0 }
 0x384   :  { %v1724_v35 = vpop.f32.mrf.mxu2  ;;  %2366 = vadd.xlane.f32.xlu0 %v2365_v26 }
 0x385   :  { %v1725_v37 = vadd.f32 %v4478_v40, %v1724_v35 }
 0x387   :  { %v1950_v52 = vmax.f32 %v1725_v37, 0.0  ;;  %v2325_v41 = vpop.xlane.xlu1 %2324  ;;  %3209 = vmatmul.msk.f32.gmra.mxu3 %vm163_vm0, %v148_v16  ;;  %v149_v37 = vld [vmem:[%s5124_s0 + $0x3c0] sm:$0xff] }
 0x388   :  { %v2586_v50 = vadd.f32 %v3764_v39, %v2325_v41 }
 0x389   :  { %3314 = vmatmul.msk.f32.gmra.mxu2 %vm1085_vm1, %v1045_v58  ;;  %v2082_v2 = vmul.f32 %v4490_v21, %v1950_v52  ;;  %v866_v52 = vadd.f32 %v4396_v49, %v865_v38 }
 0x38a   :  { %v2934_v61 = vperm.slane %v2586_v50, %v3782_v57  ;;  %v874_v27 = vpop.f32.mrf.mxu3 }
 0x38b   :  { %v2368_v7 = vsel %vm1085_vm1, %v2082_v2, 0.0 }
 0x38c   :  { %v1727_v9 = vpop.f32.mrf.mxu2  ;;  %2369 = vadd.xlane.f32.xlu1 %v2368_v7 }
 0x38d   :  { %v1728_v23 = vadd.f32 %v4478_v40, %v1727_v9 }
 0x38f   :  { %v1951_v54 = vmax.f32 %v1728_v23, 0.0  ;;  %v2328_v17 = vpop.xlane.xlu2 %2327  ;;  %3210 = vmatmul.msk.f32.gmra.mxu3 %vm163_vm0, %v149_v37 }
 0x390   :  { %v2587_v19 = vadd.f32 %v3764_v39, %v2328_v17  ;;  %v150_v17 = vld [vmem:[%s5124_s0 + $0x3c8] sm:$0xff] }
 0x391   :  { %3315 = vmatmul.msk.f32.gmra.mxu2 %vm1085_vm1, %v1046_v43  ;;  %v2083_v20 = vmul.f32 %v4490_v21, %v1951_v54  ;;  %v1049_v43 = vmax.f32 %v866_v52, 0.0 }
 0x392   :  { %v2935_v1 = vperm.slane %v2587_v19, %v3788_v62  ;;  %v877_v9 = vpop.f32.mrf.mxu3  ;;  %v869_v19 = vadd.f32 %v4396_v49, %v868_v48 }
 0x393   :  { %v2371_v10 = vsel %vm1085_vm1, %v2083_v20, 0.0 }
 0x394   :  { %v2936_v30 = vsel %vm2783_vm2, %v2935_v1, %v2934_v61  ;;  %v1730_v55 = vpop.f32.mrf.mxu2  ;;  %2372 = vadd.xlane.f32.xlu2 %v2371_v10 }
 0x395   :  { %v1731_v12 = vadd.f32 %v4478_v40, %v1730_v55 }
 0x397   :  { %v1952_v8 = vmax.f32 %v1731_v12, 0.0  ;;  %v2331_v22 = vpop.xlane.xlu0 %2330  ;;  %3211 = vmatmul.msk.f32.gmra.mxu3 %vm163_vm0, %v150_v17 }
 0x398   :  { %v2588_v36 = vadd.f32 %v3764_v39, %v2331_v22  ;;  %v872_v22 = vadd.f32 %v4396_v49, %v871_v32 }
 0x399   :  { %3316 = vmatmul.msk.f32.gmra.mxu2 %vm1085_vm1, %v1047_v4  ;;  %v2084_v56 = vmul.f32 %v4490_v21, %v1952_v8  ;;  %v151_v8 = vld [vmem:[%s5124_s0 + $0x3d0] sm:$0xff] }
 0x39a   :  { %v2937_v44 = vperm.slane %v2588_v36, %v3804_v13  ;;  %v880_v10 = vpop.f32.mrf.mxu3 }
 0x39b   :  { %v2374_v59 = vsel %vm1085_vm1, %v2084_v56, 0.0 }
 0x39c   :  { %v2938_v18 = vsel %vm2787_vm3, %v2937_v44, %v2936_v30  ;;  %v1733_v53 = vpop.f32.mrf.mxu2  ;;  %2375 = vadd.xlane.f32.xlu0 %v2374_v59  ;;  %v1050_v30 = vmax.f32 %v869_v19, 0.0 }
 0x39d   :  { %v1734_v26 = vadd.f32 %v4478_v40, %v1733_v53 }
 0x39f   :  { %v1953_v35 = vmax.f32 %v1734_v26, 0.0  ;;  %v2334_v58 = vpop.xlane.xlu1 %2333  ;;  %3212 = vmatmul.msk.f32.gmra.mxu3 %vm163_vm0, %v151_v8 }
 0x3a0   :  { %v2589_v31 = vadd.f32 %v3764_v39, %v2334_v58  ;;  %v875_v58 = vadd.f32 %v4396_v49, %v874_v27 }
 0x3a1   :  { %3317 = vmatmul.msk.f32.gmra.mxu2 %vm1085_vm1, %v1048_v6  ;;  %v2085_v34 = vmul.f32 %v4490_v21, %v1953_v35  ;;  %v152_v35 = vld [vmem:[%s5124_s0 + $0x3d8] sm:$0xff] }
 0x3a2   :  { %v2939_v42 = vperm.slane %v2589_v31, %v3819_v29  ;;  %v883_v59 = vpop.f32.mrf.mxu3 }
 0x3a3   :  { %v2377_v2 = vsel %vm1085_vm1, %v2085_v34, 0.0 }
 0x3a4   :  { %v2940_v41 = vsel %vm2791_vm4, %v2939_v42, %v2938_v18  ;;  %v1736_v7 = vpop.f32.mrf.mxu2  ;;  %2378 = vadd.xlane.f32.xlu1 %v2377_v2  ;;  %v1051_v18 = vmax.f32 %v872_v22, 0.0 }
 0x3a5   :  { %v1737_v23 = vadd.f32 %v4478_v40, %v1736_v7 }
 0x3a7   :  { %v1954_v50 = vmax.f32 %v1737_v23, 0.0  ;;  %v2337_v54 = vpop.xlane.xlu2 %2336  ;;  %3213 = vmatmul.msk.f32.gmra.mxu3 %vm163_vm0, %v152_v35 }
 0x3a8   :  { %v2590_v38 = vadd.f32 %v3764_v39, %v2337_v54  ;;  %v878_v54 = vadd.f32 %v4396_v49, %v877_v9 }
 0x3a9   :  { %3318 = vmatmul.msk.f32.gmra.mxu2 %vm1085_vm1, %v1049_v43  ;;  %v2086_v3 = vmul.f32 %v4490_v21, %v1954_v50  ;;  %v153_v50 = vld [vmem:[%s5124_s0 + $0x3e0] sm:$0xff] }
 0x3aa   :  { %v2941_v0 = vperm.slane %v2590_v38, %v3834_v45  ;;  %v886_v2 = vpop.f32.mrf.mxu3 }
 0x3ab   :  { %v2380_v20 = vsel %vm1085_vm1, %v2086_v3, 0.0 }
 0x3ac   :  { %v2942_v61 = vsel %vm2795_vm5, %v2941_v0, %v2940_v41  ;;  %v1739_v1 = vpop.f32.mrf.mxu2  ;;  %2381 = vadd.xlane.f32.xlu2 %v2380_v20  ;;  %v1052_v41 = vmax.f32 %v875_v58, 0.0 }
 0x3ad   :  { %v1740_v55 = vadd.f32 %v4478_v40, %v1739_v1 }
 0x3af   :  { %v1955_v4 = vmax.f32 %v1740_v55, 0.0  ;;  %v2340_v12 = vpop.xlane.xlu0 %2339  ;;  %3214 = vmatmul.msk.f32.gmra.mxu3 %vm163_vm0, %v153_v50 }
 0x3b0   :  { %v2591_v48 = vadd.f32 %v3764_v39, %v2340_v12  ;;  %v881_v12 = vadd.f32 %v4396_v49, %v880_v10 }
 0x3b1   :  { %3319 = vmatmul.msk.f32.gmra.mxu2 %vm1085_vm1, %v1050_v30  ;;  %v2087_v36 = vmul.f32 %v4490_v21, %v1955_v4  ;;  %v154_v4 = vld [vmem:[%s5124_s0 + $0x3e8] sm:$0xff] }
 0x3b2   :  { %v2943_v16 = vperm.slane %v2591_v48, %v3849_v60  ;;  %v889_v20 = vpop.f32.mrf.mxu3 }
 0x3b3   :  { %v2383_v14 = vsel %vm1085_vm1, %v2087_v36, 0.0 }
 0x3b4   :  { %v2944_v56 = vsel %vm2799_vm6, %v2943_v16, %v2942_v61  ;;  %v1742_v44 = vpop.f32.mrf.mxu2  ;;  %2384 = vadd.xlane.f32.xlu0 %v2383_v14  ;;  %v1053_v61 = vmax.f32 %v878_v54, 0.0 }
 0x3b5   :  { %v1743_v53 = vadd.f32 %v4478_v40, %v1742_v44 }
 0x3b7   :  { %v1956_v6 = vmax.f32 %v1743_v53, 0.0  ;;  %v2343_v26 = vpop.xlane.xlu1 %2342  ;;  %3215 = vmatmul.msk.f32.gmra.mxu3 %vm163_vm0, %v154_v4 }
 0x3b8   :  { %v2592_v32 = vadd.f32 %v3764_v39, %v2343_v26  ;;  %v884_v26 = vadd.f32 %v4396_v49, %v883_v59 }
 0x3b9   :  { %3320 = vmatmul.msk.f32.gmra.mxu2 %vm1085_vm1, %v1051_v18  ;;  %v2088_v31 = vmul.f32 %v4490_v21, %v1956_v6  ;;  %v155_v6 = vld [vmem:[%s5124_s0 + $0x3f0] sm:$0xff] }
 0x3ba   :  { %v2945_v37 = vperm.slane %v2592_v32, %v3864_v11  ;;  %v892_v14 = vpop.f32.mrf.mxu3 }
 0x3bb   :  { %v2386_v52 = vsel %vm1085_vm1, %v2088_v31, 0.0 }
 0x3bc   :  { %v2946_v34 = vsel %vm2803_vm7, %v2945_v37, %v2944_v56  ;;  %v1745_v42 = vpop.f32.mrf.mxu2  ;;  %2387 = vadd.xlane.f32.xlu1 %v2386_v52  ;;  %v1054_v56 = vmax.f32 %v881_v12, 0.0 }
 0x3bd   :  { %v1746_v7 = vadd.f32 %v4478_v40, %v1745_v42 }
 0x3bf   :  { %v1957_v43 = vmax.f32 %v1746_v7, 0.0  ;;  %v2346_v23 = vpop.xlane.xlu2 %2345  ;;  %3216 = vmatmul.msk.f32.gmra.mxu3 %vm163_vm0, %v155_v6 }
 0x3c0   :  { %v2593_v27 = vadd.f32 %v3764_v39, %v2346_v23  ;;  %v887_v23 = vadd.f32 %v4396_v49, %v886_v2 }
 0x3c1   :  { %3321 = vmatmul.msk.f32.gmra.mxu2 %vm1085_vm1, %v1052_v41  ;;  %v2089_v38 = vmul.f32 %v4490_v21, %v1957_v43  ;;  %v156_v43 = vld [vmem:[%s5124_s0 + $0x3f8] sm:$0xff] }
 0x3c2   :  { %v2947_v17 = vperm.slane %v2593_v27, %v3879_v28  ;;  %v895_v52 = vpop.f32.mrf.mxu3 }
 0x3c3   :  { %v2389_v19 = vsel %vm1085_vm1, %v2089_v38, 0.0 }
 0x3c4   :  { %v2948_v3 = vsel %vm2807_vm8, %v2947_v17, %v2946_v34  ;;  %v1748_v0 = vpop.f32.mrf.mxu2  ;;  %2390 = vadd.xlane.f32.xlu2 %v2389_v19  ;;  %v1055_v34 = vmax.f32 %v884_v26, 0.0 }
 0x3c5   :  { %v1749_v1 = vadd.f32 %v4478_v40, %v1748_v0 }
 0x3c7   :  { %v1958_v30 = vmax.f32 %v1749_v1, 0.0  ;;  %v2349_v55 = vpop.xlane.xlu0 %2348  ;;  %3217 = vmatmul.msk.f32.gmra.mxu3 %vm163_vm0, %v156_v43  ;;  %vm5140_vm0 = vcmask 851712  }
 0x3c8   :  { %v2594_v9 = vadd.f32 %v3764_v39, %v2349_v55 }
 0x3c9   :  { %3322 = vmatmul.msk.f32.gmra.mxu2 %vm1085_vm1, %v1053_v61  ;;  %v2090_v48 = vmul.f32 %v4490_v21, %v1958_v30  ;;  %v890_v30 = vadd.f32 %v4396_v49, %v889_v20  ;;  %v4799_v49 = vld [vmem:[%s5126_s2] ss:$0 sm:$0xff] }
 0x3ca   :  { %v2949_v8 = vperm.slane %v2594_v9, %v3894_v46  ;;  %v898_v19 = vpop.f32.mrf.mxu3  ;;  %v893_v20 = vadd.f32 %v4799_v49, %v892_v14  ;;  %v896_v14 = vadd.f32 %v4799_v49, %v895_v52 }
 0x3cb   :  { %v2392_v22 = vsel %vm1085_vm1, %v2090_v48, 0.0  ;;  %v899_v52 = vadd.f32 %v4799_v49, %v898_v19 }
 0x3cc   :  { %v2950_v36 = vsel %vm2811_vm9, %v2949_v8, %v2948_v3  ;;  %v1751_v16 = vpop.f32.mrf.mxu2  ;;  %2393 = vadd.xlane.f32.xlu0 %v2392_v22  ;;  %v1056_v3 = vmax.f32 %v887_v23, 0.0  ;;  %v1057_v22 = vmax.f32 %v890_v30, 0.0 }
 0x3cd   :  { %v1752_v44 = vadd.f32 %v4478_v40, %v1751_v16  ;;  %v1060_v30 = vmax.f32 %v899_v52, 0.0 }
 0x3cf   :  { %v1959_v18 = vmax.f32 %v1752_v44, 0.0  ;;  %v2352_v53 = vpop.xlane.xlu1 %2351 }
 0x3d0   :  { %v2595_v10 = vadd.f32 %v3764_v39, %v2352_v53 }
 0x3d1   :  { %3323 = vmatmul.msk.f32.gmra.mxu2 %vm1085_vm1, %v1054_v56  ;;  %v2091_v32 = vmul.f32 %v4490_v21, %v1959_v18 }
 0x3d2   :  { %v2951_v35 = vperm.slane %v2595_v10, %v3909_v63  ;;  %v901_v8 = vpop.f32.mrf.mxu3 }
 0x3d3   :  { %v2395_v58 = vsel %vm1085_vm1, %v2091_v32, 0.0  ;;  %v902_v19 = vadd.f32 %v4799_v49, %v901_v8 }
 0x3d4   :  { %v2952_v31 = vsel %vm2815_vm10, %v2951_v35, %v2950_v36  ;;  %v1754_v37 = vpop.f32.mrf.mxu2  ;;  %2396 = vadd.xlane.f32.xlu1 %v2395_v58  ;;  %v1058_v35 = vmax.f32 %v893_v20, 0.0 }
 0x3d5   :  { %v1755_v42 = vadd.f32 %v4478_v40, %v1754_v37 }
 0x3d7   :  { %v1960_v41 = vmax.f32 %v1755_v42, 0.0  ;;  %v2355_v7 = vpop.xlane.xlu2 %2354 }
 0x3d8   :  { %v2596_v59 = vadd.f32 %v3764_v39, %v2355_v7 }
 0x3d9   :  { %3324 = vmatmul.msk.f32.gmra.mxu2 %vm1085_vm1, %v1055_v34  ;;  %v2092_v27 = vmul.f32 %v4490_v21, %v1960_v41 }
 0x3da   :  { %v2953_v50 = vperm.slane %v2596_v59, %v3924_v15  ;;  %v904_v32 = vpop.f32.mrf.mxu3 }
 0x3db   :  { %v2398_v54 = vsel %vm1085_vm1, %v2092_v27, 0.0  ;;  %v1059_v27 = vmax.f32 %v896_v14, 0.0  ;;  %v905_v8 = vadd.f32 %v4799_v49, %v904_v32 }
 0x3dc   :  { %v2954_v38 = vsel %vm2819_vm11, %v2953_v50, %v2952_v31  ;;  %v1757_v17 = vpop.f32.mrf.mxu2  ;;  %2399 = vadd.xlane.f32.xlu2 %v2398_v54 }
 0x3dd   :  { %v1758_v0 = vadd.f32 %v4478_v40, %v1757_v17 }
 0x3df   :  { %v1961_v61 = vmax.f32 %v1758_v0, 0.0  ;;  %v2358_v1 = vpop.xlane.xlu0 %2357 }
 0x3e0   :  { %v2597_v2 = vadd.f32 %v3764_v39, %v2358_v1 }
 0x3e1   :  { %3325 = vmatmul.msk.f32.gmra.mxu2 %vm1085_vm1, %v1056_v3  ;;  %v2093_v55 = vmul.f32 %v4490_v21, %v1961_v61 }
 0x3e2   :  { %v2955_v9 = vperm.slane %v2597_v2, %v3939_v33  ;;  %v907_v23 = vpop.f32.mrf.mxu3 }
 0x3e3   :  { %v2401_v4 = vsel %vm1085_vm1, %v2093_v55, 0.0  ;;  %v908_v32 = vadd.f32 %v4799_v49, %v907_v23 }
 0x3e4   :  { %v2956_v12 = vsel %vm2823_vm12, %v2955_v9, %v2954_v38  ;;  %v1760_v48 = vpop.f32.mrf.mxu2  ;;  %2402 = vadd.xlane.f32.xlu0 %v2401_v4 }
 0x3e5   :  { %v1761_v36 = vadd.f32 %v4478_v40, %v1760_v48 }
 0x3e7   :  { %v1962_v16 = vmax.f32 %v1761_v36, 0.0  ;;  %v2361_v56 = vpop.xlane.xlu1 %2360 }
 0x3e8   :  { %v2598_v44 = vadd.f32 %v3764_v39, %v2361_v56 }
 0x3e9   :  { %3326 = vmatmul.msk.f32.gmra.mxu2 %vm1085_vm1, %v1057_v22  ;;  %v2094_v18 = vmul.f32 %v4490_v21, %v1962_v16 }
 0x3ea   :  { %v2957_v53 = vperm.slane %v2598_v44, %v3954_v51  ;;  %v910_v9 = vpop.f32.mrf.mxu3 }
 0x3eb   :  { %v2404_v10 = vsel %vm1085_vm1, %v2094_v18, 0.0  ;;  %v1061_v18 = vmax.f32 %v902_v19, 0.0 }
 0x3ec   :  { %v2958_v6 = vsel %vm5140_vm0, %v2957_v53, %v2956_v12  ;;  %v1763_v26 = vpop.f32.mrf.mxu2  ;;  %2405 = vadd.xlane.f32.xlu1 %v2404_v10  ;;  %vm3064_vm0 = vcmask 1044484  }
 0x3ed   :  { %v1764_v58 = vadd.f32 %v4478_v40, %v1763_v26 }
 0x3ef   :  { %v1963_v31 = vmax.f32 %v1764_v58, 0.0  ;;  %v2364_v37 = vpop.xlane.xlu2 %2363 }
 0x3f0   :  { %v2599_v34 = vadd.f32 %v3764_v39, %v2364_v37  ;;  %v1062_v37 = vmax.f32 %v905_v8, 0.0 }
 0x3f1   :  { %3327 = vmatmul.msk.f32.gmra.mxu2 %vm1085_vm1, %v1058_v35  ;;  %v2095_v42 = vmul.f32 %v4490_v21, %v1963_v31 }
 0x3f2   :  { %v2959_v41 = vperm.slane %v2599_v34, %v3974_v5 }
 0x3f3   :  { %v2407_v7 = vsel %vm1085_vm1, %v2095_v42, 0.0 }
 0x3f4   :  { %v2960_v59 = vsel %vm5141_vm13, %v2959_v41, %v2958_v6  ;;  %v1766_v43 = vpop.f32.mrf.mxu2  ;;  %2408 = vadd.xlane.f32.xlu2 %v2407_v7  ;;  %v913_v6 = vpop.f32.mrf.mxu3  ;;  %vm5142_vm13 = vcmask 851712  }
 0x3f5   :  { %v1767_v50 = vadd.f32 %v4478_v40, %v1766_v43 }
 0x3f7   :  { %v1964_v54 = vmax.f32 %v1767_v50, 0.0  ;;  %v2367_v38 = vpop.xlane.xlu0 %2366 }
 0x3f8   :  { %v2600_v17 = vadd.f32 %v3764_v39, %v2367_v38 }
 0x3f9   :  { %3328 = vmatmul.msk.f32.gmra.mxu2 %vm1085_vm1, %v1059_v27  ;;  %v2096_v3 = vmul.f32 %v4490_v21, %v1964_v54 }
 0x3fa   :  { %v2961_v0 = vperm.slane %v2600_v17, %v3993_v24  ;;  %v1063_v17 = vmax.f32 %v908_v32, 0.0 }
 0x3fb   :  { %v2410_v61 = vsel %vm1085_vm1, %v2096_v3, 0.0 }
 0x3fc   :  { %v2962_v1 = vsel %vm5139_vm14, %v2961_v0, %v2960_v59  ;;  %v1769_v2 = vpop.f32.mrf.mxu2  ;;  %2411 = vadd.xlane.f32.xlu0 %v2410_v61  ;;  %v916_v27 = vpop.f32.mrf.mxu3  ;;  %v911_v61 = vadd.f32 %v4799_v49, %v910_v9  ;;  %v914_v9 = vadd.f32 %v4799_v49, %v913_v6  ;;  %vm5143_vm14 = vcmask 917312  }
 0x3fd   :  { %v1770_v55 = vadd.f32 %v4478_v40, %v1769_v2 }
 0x3fe   :  { %v1065_v8 = vmax.f32 %v914_v9, 0.0 }
 0x3ff   :  { %v1965_v4 = vmax.f32 %v1770_v55, 0.0  ;;  %v2370_v12 = vpop.xlane.xlu1 %2369 }
 0x400   :  { %v2601_v48 = vadd.f32 %v3764_v39, %v2370_v12 }
 0x401   :  { %3329 = vmatmul.msk.f32.gmra.mxu2 %vm1085_vm1, %v1060_v30  ;;  %v2097_v22 = vmul.f32 %v4490_v21, %v1965_v4 }
 0x402   :  { %v2963_v36 = vperm.slane %v2601_v48, %v4012_v47  ;;  %v1064_v48 = vmax.f32 %v911_v61, 0.0 }
 0x403   :  { %v2413_v16 = vsel %vm1085_vm1, %v2097_v22, 0.0 }
 0x404   :  { %v2964_v56 = vsel %vm2839_vm15, %v2963_v36, %v2962_v1  ;;  %v1772_v44 = vpop.f32.mrf.mxu2  ;;  %2414 = vadd.xlane.f32.xlu1 %v2413_v16  ;;  %v919_v12 = vpop.f32.mrf.mxu3 }
 0x405   :  { %v4831_v20 = vsel %vm3064_vm0, %v2964_v56, %v4644_v25  ;;  %v1773_v53 = vadd.f32 %v4478_v40, %v1772_v44  ;;  %vm5144_vm0 = vcmask 982912  }
 0x407   :  { %v1966_v10 = vmax.f32 %v1773_v53, 0.0  ;;  %v2373_v35 = vpop.xlane.xlu2 %2372 }
 0x408   :  { %v2602_v34 = vadd.f32 %v3764_v39, %v2373_v35 }
 0x409   :  { %3330 = vmatmul.msk.f32.gmra.mxu2 %vm1085_vm1, %v1061_v18  ;;  %v2098_v26 = vmul.f32 %v4490_v21, %v1966_v10 }
 0x40a   :  { %v2965_v59 = vperm.slane %v2602_v34, %v3782_v57 }
 0x40b   :  { %v2416_v58 = vsel %vm1085_vm1, %v2098_v26, 0.0 }
 0x40c   :  { %v1775_v31 = vpop.f32.mrf.mxu2  ;;  %2417 = vadd.xlane.f32.xlu2 %v2416_v58  ;;  %v922_v35 = vpop.f32.mrf.mxu3 }
 0x40d   :  { %v1776_v25 = vadd.f32 %v4478_v40, %v1775_v31  ;;  %v917_v31 = vadd.f32 %v4799_v49, %v916_v27 }
 0x40f   :  { %v1967_v14 = vmax.f32 %v1776_v25, 0.0  ;;  %v2376_v42 = vpop.xlane.xlu0 %2375  ;;  %v1066_v32 = vmax.f32 %v917_v31, 0.0 }
 0x410   :  { %v2603_v41 = vadd.f32 %v3764_v39, %v2376_v42 }
 0x411   :  { %3331 = vmatmul.msk.f32.gmra.mxu2 %vm1085_vm1, %v1062_v37  ;;  %v2099_v7 = vmul.f32 %v4490_v21, %v1967_v14  ;;  %v4876_v37 = vld [vmem:[%s5129_s5] ss:$0 sm:$0xff] }
 0x412   :  { %v2966_v43 = vperm.slane %v2603_v41, %v3788_v62 }
 0x413   :  { %v2419_v50 = vsel %vm1085_vm1, %v2099_v7, 0.0 }
 0x414   :  { %v2967_v54 = vsel %vm2783_vm2, %v2966_v43, %v2965_v59  ;;  %v1778_v38 = vpop.f32.mrf.mxu2  ;;  %2420 = vadd.xlane.f32.xlu0 %v2419_v50  ;;  %v925_v50 = vpop.f32.mrf.mxu3 }
 0x415   :  { %v1779_v52 = vadd.f32 %v4478_v40, %v1778_v38 }
 0x417   :  { %v1968_v3 = vmax.f32 %v1779_v52, 0.0  ;;  %v2379_v0 = vpop.xlane.xlu1 %2378 }
 0x418   :  { %v2604_v23 = vadd.f32 %v3764_v39, %v2379_v0 }
 0x419   :  { %3332 = vmatmul.msk.f32.gmra.mxu2 %vm1085_vm1, %v1063_v17  ;;  %v2100_v1 = vmul.f32 %v4490_v21, %v1968_v3 }
 0x41a   :  { %v2968_v2 = vperm.slane %v2604_v23, %v3804_v13 }
 0x41b   :  { %v2422_v30 = vsel %vm1085_vm1, %v2100_v1, 0.0 }
 0x41c   :  { %v2969_v55 = vsel %vm2787_vm3, %v2968_v2, %v2967_v54  ;;  %v1781_v4 = vpop.f32.mrf.mxu2  ;;  %2423 = vadd.xlane.f32.xlu1 %v2422_v30  ;;  %v920_v54 = vadd.f32 %v4799_v49, %v919_v12 }
 0x41d   :  { %v1782_v19 = vadd.f32 %v4478_v40, %v1781_v4  ;;  %v4867_v40 = vld [vmem:[%s5128_s4] ss:$0 sm:$0xff]  ;;  %s3395_s4 = smov [#allocation3]  }
 0x41e   :  { %v1067_v23 = vmax.f32 %v920_v54, 0.0  ;;  %s3079_s5 = sshll.u32 %s3395_s4, 4  ;;  %s3080_s5 = int_to_ptr.vmem [resolvable:$true] %s3079_s5 }
 0x41f   :  { %v1969_v22 = vmax.f32 %v1782_v19, 0.0  ;;  %v2382_v36 = vpop.xlane.xlu2 %2381 }
 0x420   :  { %v2605_v16 = vadd.f32 %v3764_v39, %v2382_v36 }
 0x421   :  { %3333 = vmatmul.msk.f32.gmra.mxu2 %vm1085_vm1, %v1064_v48  ;;  %v2101_v56 = vmul.f32 %v4490_v21, %v1969_v22  ;;  %v928_v48 = vpop.f32.mrf.mxu3 }
 0x422   :  { %v2970_v44 = vperm.slane %v2605_v16, %v3819_v29 }
 0x423   :  { %v2425_v18 = vsel %vm1085_vm1, %v2101_v56, 0.0 }
 0x424   :  { %v2971_v53 = vsel %vm2791_vm4, %v2970_v44, %v2969_v55  ;;  %v1784_v10 = vpop.f32.mrf.mxu2  ;;  %2426 = vadd.xlane.f32.xlu2 %v2425_v18  ;;  %v923_v55 = vadd.f32 %v4799_v49, %v922_v35  ;;  %v926_v18 = vadd.f32 %v4799_v49, %v925_v50 }
 0x425   :  { %v1785_v26 = vadd.f32 %v4867_v40, %v1784_v10 }
 0x426   :  { %v1068_v16 = vmax.f32 %v923_v55, 0.0 }
 0x427   :  { %v1970_v6 = vmax.f32 %v1785_v26, 0.0  ;;  %v2385_v58 = vpop.xlane.xlu0 %2384 }
 0x428   :  { %v2606_v21 = vadd.f32 %v3764_v39, %v2385_v58 }
 0x429   :  { %3334 = vmatmul.msk.f32.gmra.mxu2 %vm1085_vm1, %v1065_v8  ;;  %v2102_v25 = vmul.f32 %v4876_v37, %v1970_v6  ;;  %v931_v35 = vpop.f32.mrf.mxu3  ;;  %v1069_v6 = vmax.f32 %v926_v18, 0.0 }
 0x42a   :  { %v2972_v34 = vperm.slane %v2606_v21, %v3834_v45 }
 0x42b   :  { %v2428_v14 = vsel %vm1085_vm1, %v2102_v25, 0.0 }
 0x42c   :  { %v2973_v42 = vsel %vm2795_vm5, %v2972_v34, %v2971_v53  ;;  %v1787_v41 = vpop.f32.mrf.mxu2  ;;  %2429 = vadd.xlane.f32.xlu0 %v2428_v14  ;;  %v929_v14 = vadd.f32 %v4799_v49, %v928_v48 }
 0x42d   :  { %v1788_v7 = vadd.f32 %v4867_v40, %v1787_v41 }
 0x42f   :  { %v1971_v59 = vmax.f32 %v1788_v7, 0.0  ;;  %v2388_v43 = vpop.xlane.xlu1 %2387 }
 0x430   :  { %v2607_v27 = vadd.f32 %v3764_v39, %v2388_v43 }
 0x431   :  { %3335 = vmatmul.msk.f32.gmra.mxu2 %vm1085_vm1, %v1066_v32  ;;  %v2103_v38 = vmul.f32 %v4876_v37, %v1971_v59  ;;  %v934_v54 = vpop.f32.mrf.mxu3 }
 0x432   :  { %v2974_v17 = vperm.slane %v2607_v27, %v3849_v60  ;;  %v1070_v27 = vmax.f32 %v929_v14, 0.0 }
 0x433   :  { %v2431_v52 = vsel %vm1085_vm1, %v2103_v38, 0.0 }
 0x434   :  { %v2975_v3 = vsel %vm2799_vm6, %v2974_v17, %v2973_v42  ;;  %v1790_v0 = vpop.f32.mrf.mxu2  ;;  %2432 = vadd.xlane.f32.xlu1 %v2431_v52 }
 0x435   :  { %v1791_v61 = vadd.f32 %v4867_v40, %v1790_v0 }
 0x437   :  { %v1972_v1 = vmax.f32 %v1791_v61, 0.0  ;;  %v2391_v2 = vpop.xlane.xlu2 %2390 }
 0x438   :  { %v2608_v30 = vadd.f32 %v3764_v39, %v2391_v2 }
 0x439   :  { %3336 = vmatmul.msk.f32.gmra.mxu2 %vm1085_vm1, %v1067_v23  ;;  %v2104_v4 = vmul.f32 %v4876_v37, %v1972_v1  ;;  %v937_v48 = vpop.f32.mrf.mxu3 }
 0x43a   :  { %v2976_v12 = vperm.slane %v2608_v30, %v3864_v11 }
 0x43b   :  { %v2434_v19 = vsel %vm1085_vm1, %v2104_v4, 0.0 }
 0x43c   :  { %v2977_v22 = vsel %vm2803_vm7, %v2976_v12, %v2975_v3  ;;  %v1793_v36 = vpop.f32.mrf.mxu2  ;;  %2435 = vadd.xlane.f32.xlu2 %v2434_v19  ;;  %v932_v3 = vadd.f32 %v4799_v49, %v931_v35  ;;  %v935_v19 = vadd.f32 %v4799_v49, %v934_v54 }
 0x43d   :  { %v1794_v9 = vadd.f32 %v4867_v40, %v1793_v36 }
 0x43e   :  { %v1071_v30 = vmax.f32 %v932_v3, 0.0 }
 0x43f   :  { %v1973_v56 = vmax.f32 %v1794_v9, 0.0  ;;  %v2394_v44 = vpop.xlane.xlu0 %2393 }
 0x440   :  { %v2609_v10 = vadd.f32 %v3764_v39, %v2394_v44 }
 0x441   :  { %3337 = vmatmul.msk.f32.gmra.mxu2 %vm1085_vm1, %v1068_v16  ;;  %v2105_v53 = vmul.f32 %v4876_v37, %v1973_v56  ;;  %v1072_v56 = vmax.f32 %v935_v19, 0.0 }
 0x442   :  { %v2978_v21 = vperm.slane %v2609_v10, %v3879_v28 }
 0x443   :  { %v2437_v8 = vsel %vm1085_vm1, %v2105_v53, 0.0 }
 0x444   :  { %v1796_v26 = vpop.f32.mrf.mxu2  ;;  %2438 = vadd.xlane.f32.xlu0 %v2437_v8  ;;  %v2979_v32 = vsel %vm2807_vm8, %v2978_v21, %v2977_v22 }
 0x445   :  { %v1797_v58 = vadd.f32 %v4867_v40, %v1796_v26  ;;  %v938_v26 = vadd.f32 %v4799_v49, %v937_v48 }
 0x447   :  { %v1974_v31 = vmax.f32 %v1797_v58, 0.0  ;;  %v2397_v25 = vpop.xlane.xlu1 %2396  ;;  %v940_v58 = vpop.f32.mrf.mxu3  ;;  %v1073_v14 = vmax.f32 %v938_v26, 0.0 }
 0x448   :  { %v2610_v34 = vadd.f32 %v3764_v39, %v2397_v25 }
 0x449   :  { %3338 = vmatmul.msk.f32.gmra.mxu2 %vm1085_vm1, %v1069_v6  ;;  %v2106_v42 = vmul.f32 %v4876_v37, %v1974_v31 }
 0x44a   :  { %v2980_v41 = vperm.slane %v2610_v34, %v3894_v46 }
 0x44b   :  { %v2440_v7 = vsel %vm1085_vm1, %v2106_v42, 0.0 }
 0x44c   :  { %v2981_v59 = vsel %vm2811_vm9, %v2980_v41, %v2979_v32  ;;  %v1799_v43 = vpop.f32.mrf.mxu2  ;;  %2441 = vadd.xlane.f32.xlu1 %v2440_v7 }
 0x44d   :  { %v1800_v50 = vadd.f32 %v4867_v40, %v1799_v43 }
 0x44f   :  { %v1975_v38 = vmax.f32 %v1800_v50, 0.0  ;;  %v2400_v17 = vpop.xlane.xlu2 %2399 }
 0x450   :  { %v2611_v52 = vadd.f32 %v3764_v39, %v2400_v17  ;;  %v943_v17 = vpop.f32.mrf.mxu3 }
 0x451   :  { %3339 = vmatmul.msk.f32.gmra.mxu2 %vm1085_vm1, %v1070_v27  ;;  %v2107_v0 = vmul.f32 %v4876_v37, %v1975_v38 }
 0x452   :  { %v2982_v23 = vperm.slane %v2611_v52, %v3909_v63 }
 0x453   :  { %v2443_v61 = vsel %vm1085_vm1, %v2107_v0, 0.0 }
 0x454   :  { %v2983_v1 = vsel %vm2815_vm10, %v2982_v23, %v2981_v59  ;;  %v1802_v2 = vpop.f32.mrf.mxu2  ;;  %2444 = vadd.xlane.f32.xlu2 %v2443_v61  ;;  %v941_v59 = vadd.f32 %v4799_v49, %v940_v58  ;;  %v944_v61 = vadd.f32 %v4799_v49, %v943_v17 }
 0x455   :  { %v1803_v55 = vadd.f32 %v4867_v40, %v1802_v2 }
 0x456   :  { %v1074_v52 = vmax.f32 %v941_v59, 0.0 }
 0x457   :  { %v1976_v4 = vmax.f32 %v1803_v55, 0.0  ;;  %v2403_v12 = vpop.xlane.xlu0 %2402 }
 0x458   :  { %v2612_v36 = vadd.f32 %v3764_v39, %v2403_v12  ;;  %v946_v48 = vpop.f32.mrf.mxu3 }
 0x459   :  { %3340 = vmatmul.msk.f32.gmra.mxu2 %vm1085_vm1, %v1071_v30  ;;  %v2108_v22 = vmul.f32 %v4876_v37, %v1976_v4  ;;  %v1075_v4 = vmax.f32 %v944_v61, 0.0 }
 0x45a   :  { %v2984_v18 = vperm.slane %v2612_v36, %v3924_v15 }
 0x45b   :  { %v2446_v16 = vsel %vm1085_vm1, %v2108_v22, 0.0 }
 0x45c   :  { %v1805_v9 = vpop.f32.mrf.mxu2  ;;  %2447 = vadd.xlane.f32.xlu0 %v2446_v16  ;;  %v2985_v21 = vsel %vm2819_vm11, %v2984_v18, %v2983_v1 }
 0x45d   :  { %v1806_v44 = vadd.f32 %v4867_v40, %v1805_v9  ;;  %v947_v9 = vadd.f32 %v4799_v49, %v946_v48 }
 0x45f   :  { %v1977_v53 = vmax.f32 %v1806_v44, 0.0  ;;  %v2406_v10 = vpop.xlane.xlu1 %2405  ;;  %v1076_v26 = vmax.f32 %v947_v9, 0.0 }
 0x460   :  { %v2613_v8 = vadd.f32 %v3764_v39, %v2406_v10 }
 0x461   :  { %3341 = vmatmul.msk.f32.gmra.mxu2 %vm1085_vm1, %v1072_v56  ;;  %v2109_v35 = vmul.f32 %v4876_v37, %v1977_v53 }
 0x462   :  { %v2986_v6 = vperm.slane %v2613_v8, %v3939_v33 }
 0x463   :  { %v2449_v31 = vsel %vm1085_vm1, %v2109_v35, 0.0 }
 0x464   :  { %v2987_v25 = vsel %vm2823_vm12, %v2986_v6, %v2985_v21  ;;  %v1808_v34 = vpop.f32.mrf.mxu2  ;;  %2450 = vadd.xlane.f32.xlu1 %v2449_v31 }
 0x465   :  { %v1809_v42 = vadd.f32 %v4867_v40, %v1808_v34 }
 0x467   :  { %v1978_v41 = vmax.f32 %v1809_v42, 0.0  ;;  %v2409_v32 = vpop.xlane.xlu2 %2408 }
 0x468   :  { %v2614_v7 = vadd.f32 %v3764_v39, %v2409_v32 }
 0x469   :  { %3342 = vmatmul.msk.f32.gmra.mxu2 %vm1085_vm1, %v1073_v14  ;;  %v2110_v43 = vmul.f32 %v4876_v37, %v1978_v41 }
 0x46a   :  { %v2988_v27 = vperm.slane %v2614_v7, %v3954_v51 }
 0x46b   :  { %v2452_v50 = vsel %vm1085_vm1, %v2110_v43, 0.0 }
 0x46c   :  { %v2989_v54 = vsel %vm5142_vm13, %v2988_v27, %v2987_v25  ;;  %v1811_v38 = vpop.f32.mrf.mxu2  ;;  %2453 = vadd.xlane.f32.xlu2 %v2452_v50  ;;  %vm3066_vm13 = vcmask 1045509  }
 0x46d   :  { %v1812_v3 = vadd.f32 %v4867_v40, %v1811_v38 }
 0x46f   :  { %v1979_v0 = vmax.f32 %v1812_v3, 0.0  ;;  %v2412_v23 = vpop.xlane.xlu0 %2411 }
 0x470   :  { %v2615_v2 = vadd.f32 %v3764_v39, %v2412_v23 }
 0x471   :  { %3343 = vmatmul.msk.f32.gmra.mxu2 %vm1085_vm1, %v1074_v52  ;;  %v2111_v1 = vmul.f32 %v4876_v37, %v1979_v0 }
 0x472   :  { %v2990_v19 = vperm.slane %v2615_v2, %v3974_v5 }
 0x473   :  { %v2455_v30 = vsel %vm1085_vm1, %v2111_v1, 0.0 }
 0x474   :  { %v1814_v55 = vpop.f32.mrf.mxu2  ;;  %2456 = vadd.xlane.f32.xlu0 %v2455_v30  ;;  %v2991_v18 = vsel %vm5143_vm14, %v2990_v19, %v2989_v54 }
 0x475   :  { %v1815_v12 = vadd.f32 %v4867_v40, %v1814_v55 }
 0x477   :  { %v1980_v22 = vmax.f32 %v1815_v12, 0.0  ;;  %v2415_v36 = vpop.xlane.xlu1 %2414 }
 0x478   :  { %v2616_v16 = vadd.f32 %v3764_v39, %v2415_v36 }
 0x479   :  { %3344 = vmatmul.msk.f32.gmra.mxu2 %vm1085_vm1, %v1075_v4  ;;  %v2112_v56 = vmul.f32 %v4876_v37, %v1980_v22 }
 0x47a   :  { %v2992_v44 = vperm.slane %v2616_v16, %v3993_v24 }
 0x47b   :  { %v2458_v53 = vsel %vm1085_vm1, %v2112_v56, 0.0 }
 0x47c   :  { %v2993_v10 = vsel %vm5144_vm0, %v2992_v44, %v2991_v18  ;;  %v1817_v8 = vpop.f32.mrf.mxu2  ;;  %2459 = vadd.xlane.f32.xlu1 %v2458_v53  ;;  %vm3068_vm0 = vcmask 1046534  }
 0x47d   :  { %v1818_v35 = vadd.f32 %v4867_v40, %v1817_v8 }
 0x47f   :  { %v1981_v6 = vmax.f32 %v1818_v35, 0.0  ;;  %v2418_v58 = vpop.xlane.xlu2 %2417 }
 0x480   :  { %v2617_v21 = vadd.f32 %v3764_v39, %v2418_v58 }
 0x481   :  { %3345 = vmatmul.msk.f32.gmra.mxu2 %vm1085_vm1, %v1076_v26  ;;  %v2113_v49 = vmul.f32 %v4876_v37, %v1981_v6 }
 0x482   :  { %v2994_v31 = vperm.slane %v2617_v21, %v4012_v47 }
 0x483   :  { %v2461_v25 = vsel %vm1085_vm1, %v2113_v49, 0.0 }
 0x484   :  { %v2995_v34 = vsel %vm2839_vm15, %v2994_v31, %v2993_v10  ;;  %v4969_v14 = vpop.f32.mrf.mxu2  ;;  %2462 = vadd.xlane.f32.xlu2 %v2461_v25 }
 0x485   :  { %v4972_v42 = vsel %vm3066_vm13, %v2995_v34, %v4831_v20  ;;  %vm5146_vm13 = vcmask 982912  }
 0x487   :  { %v2421_v27 = vpop.xlane.xlu0 %2420 }
 0x488   :  { %v2618_v17 = vadd.f32 %v3764_v39, %v2421_v27 }
 0x48a   :  { %v2996_v61 = vperm.slane %v2618_v17, %v3782_v57 }
 0x48c   :  { %v1823_v41 = vpop.f32.mrf.mxu2 }
 0x48d   :  { %v1824_v32 = vadd.f32 %v4867_v40, %v1823_v41 }
 0x48f   :  { %v1983_v7 = vmax.f32 %v1824_v32, 0.0  ;;  %v2424_v59 = vpop.xlane.xlu1 %2423 }
 0x490   :  { %v2619_v50 = vadd.f32 %v3764_v39, %v2424_v59 }
 0x491   :  { %v2115_v43 = vmul.f32 %v4876_v37, %v1983_v7 }
 0x492   :  { %v2997_v20 = vperm.slane %v2619_v50, %v3788_v62 }
 0x493   :  { %v2467_v54 = vsel %vm1085_vm1, %v2115_v43, 0.0 }
 0x494   :  { %v1826_v38 = vpop.f32.mrf.mxu2  ;;  %2468 = vadd.xlane.f32.xlu1 %v2467_v54  ;;  %v2998_v30 = vsel %vm2783_vm2, %v2997_v20, %v2996_v61 }
 0x495   :  { %v1827_v52 = vadd.f32 %v4867_v40, %v1826_v38 }
 0x497   :  { %v1984_v3 = vmax.f32 %v1827_v52, 0.0  ;;  %v2427_v0 = vpop.xlane.xlu2 %2426 }
 0x498   :  { %v2620_v23 = vadd.f32 %v3764_v39, %v2427_v0 }
 0x499   :  { %v2116_v1 = vmul.f32 %v4876_v37, %v1984_v3 }
 0x49a   :  { %v2999_v2 = vperm.slane %v2620_v23, %v3804_v13 }
 0x49b   :  { %v2470_v55 = vsel %vm1085_vm1, %v2116_v1, 0.0 }
 0x49c   :  { %v3000_v4 = vsel %vm2787_vm3, %v2999_v2, %v2998_v30  ;;  %v1829_v12 = vpop.f32.mrf.mxu2  ;;  %2471 = vadd.xlane.f32.xlu2 %v2470_v55 }
 0x49d   :  { %v1830_v48 = vadd.f32 %v4867_v40, %v1829_v12 }
 0x49f   :  { %v1985_v19 = vmax.f32 %v1830_v48, 0.0  ;;  %v2430_v22 = vpop.xlane.xlu0 %2429 }
 0x4a0   :  { %v2621_v16 = vadd.f32 %v3764_v39, %v2430_v22 }
 0x4a1   :  { %v2117_v36 = vmul.f32 %v4876_v37, %v1985_v19 }
 0x4a2   :  { %v3001_v18 = vperm.slane %v2621_v16, %v3819_v29 }
 0x4a3   :  { %v2473_v9 = vsel %vm1085_vm1, %v2117_v36, 0.0 }
 0x4a4   :  { %v1832_v56 = vpop.f32.mrf.mxu2  ;;  %2474 = vadd.xlane.f32.xlu1 %v2473_v9  ;;  %v3002_v6 = vsel %vm2791_vm4, %v3001_v18, %v3000_v4 }
 0x4a5   :  { %v1833_v44 = vadd.f32 %v4867_v40, %v1832_v56 }
 0x4a7   :  { %v1986_v53 = vmax.f32 %v1833_v44, 0.0  ;;  %v2433_v10 = vpop.xlane.xlu1 %2432 }
 0x4a8   :  { %v2622_v8 = vadd.f32 %v3764_v39, %v2433_v10 }
 0x4a9   :  { %v2118_v26 = vmul.f32 %v4876_v37, %v1986_v53 }
 0x4aa   :  { %v3003_v35 = vperm.slane %v2622_v8, %v3834_v45 }
 0x4ab   :  { %v2476_v58 = vsel %vm1085_vm1, %v2118_v26, 0.0 }
 0x4ac   :  { %v3004_v21 = vsel %vm2795_vm5, %v3003_v35, %v3002_v6  ;;  %v1835_v49 = vpop.f32.mrf.mxu2  ;;  %2477 = vadd.xlane.f32.xlu2 %v2476_v58 }
 0x4ad   :  { %v1836_v31 = vadd.f32 %v4867_v40, %v1835_v49 }
 0x4af   :  { %v1987_v25 = vmax.f32 %v1836_v31, 0.0  ;;  %v2436_v34 = vpop.xlane.xlu2 %2435 }
 0x4b0   :  { %v2623_v41 = vadd.f32 %v3764_v39, %v2436_v34 }
 0x4b1   :  { %v2119_v32 = vmul.f32 %v4876_v37, %v1987_v25  ;;  %v1821_v25 = vadd.f32 %v4867_v40, %v4969_v14 }
 0x4b2   :  { %v3005_v7 = vperm.slane %v2623_v41, %v3849_v60 }
 0x4b3   :  { %v2479_v59 = vsel %vm1085_vm1, %v2119_v32, 0.0 }
 0x4b4   :  { %v3006_v43 = vsel %vm2799_vm6, %v3005_v7, %v3004_v21  ;;  %v1838_v27 = vpop.f32.mrf.mxu2  ;;  %2480 = vadd.xlane.f32.xlu1 %v2479_v59 }
 0x4b5   :  { %v1839_v50 = vadd.f32 %v4867_v40, %v1838_v27  ;;  %v1982_v27 = vmax.f32 %v1821_v25, 0.0 }
 0x4b7   :  { %v1988_v54 = vmax.f32 %v1839_v50, 0.0  ;;  %v2439_v38 = vpop.xlane.xlu0 %2438 }
 0x4b8   :  { %v2624_v52 = vadd.f32 %v3764_v39, %v2439_v38 }
 0x4b9   :  { %v2120_v17 = vmul.f32 %v4876_v37, %v1988_v54 }
 0x4ba   :  { %v3007_v23 = vperm.slane %v2624_v52, %v3864_v11 }
 0x4bb   :  { %v2482_v20 = vsel %vm1085_vm1, %v2120_v17, 0.0 }
 0x4bc   :  { %v1841_v3 = vpop.f32.mrf.mxu2  ;;  %2483 = vadd.xlane.f32.xlu2 %v2482_v20  ;;  %v3008_v4 = vsel %vm2803_vm7, %v3007_v23, %v3006_v43 }
 0x4bd   :  { %v1842_v0 = vadd.f32 %v4867_v40, %v1841_v3  ;;  %v2114_v3 = vmul.f32 %v4876_v37, %v1982_v27 }
 0x4bf   :  { %v1989_v61 = vmax.f32 %v1842_v0, 0.0  ;;  %v2442_v1 = vpop.xlane.xlu1 %2441 }
 0x4c0   :  { %v2625_v2 = vadd.f32 %v3764_v39, %v2442_v1  ;;  %v2464_v1 = vsel %vm1085_vm1, %v2114_v3, 0.0 }
 0x4c1   :  { %v2121_v30 = vmul.f32 %v4876_v37, %v1989_v61 }
 0x4c2   :  { %v3009_v55 = vperm.slane %v2625_v2, %v3879_v28 }
 0x4c3   :  { %v2485_v12 = vsel %vm1085_vm1, %v2121_v30, 0.0 }
 0x4c4   :  { %v3010_v48 = vsel %vm2807_vm8, %v3009_v55, %v3008_v4  ;;  %v1844_v19 = vpop.f32.mrf.mxu2  ;;  %2486 = vadd.xlane.f32.xlu1 %v2485_v12 }
 0x4c5   :  { %v1845_v22 = vadd.f32 %v4867_v40, %v1844_v19 }
 0x4c7   :  { %v1990_v36 = vmax.f32 %v1845_v22, 0.0  ;;  %v2445_v16 = vpop.xlane.xlu2 %2444 }
 0x4c8   :  { %v2626_v9 = vadd.f32 %v3764_v39, %v2445_v16 }
 0x4c9   :  { %v2122_v56 = vmul.f32 %v4876_v37, %v1990_v36 }
 0x4ca   :  { %v3011_v44 = vperm.slane %v2626_v9, %v3894_v46 }
 0x4cb   :  { %v2488_v18 = vsel %vm1085_vm1, %v2122_v56, 0.0 }
 0x4cc   :  { %v3012_v53 = vsel %vm2811_vm9, %v3011_v44, %v3010_v48  ;;  %v1847_v10 = vpop.f32.mrf.mxu2  ;;  %2489 = vadd.xlane.f32.xlu2 %v2488_v18 }
 0x4cd   :  { %v1848_v8 = vadd.f32 %v4867_v40, %v1847_v10 }
 0x4cf   :  { %v1991_v26 = vmax.f32 %v1848_v8, 0.0  ;;  %v2448_v35 = vpop.xlane.xlu0 %2447 }
 0x4d0   :  { %v2627_v58 = vadd.f32 %v3764_v39, %v2448_v35 }
 0x4d1   :  { %v2123_v6 = vmul.f32 %v4876_v37, %v1991_v26 }
 0x4d2   :  { %v3013_v34 = vperm.slane %v2627_v58, %v3909_v63 }
 0x4d3   :  { %v2491_v21 = vsel %vm1085_vm1, %v2123_v6, 0.0 }
 0x4d4   :  { %v1850_v49 = vpop.f32.mrf.mxu2  ;;  %2492 = vadd.xlane.f32.xlu1 %v2491_v21  ;;  %v3014_v50 = vsel %vm2815_vm10, %v3013_v34, %v3012_v53 }
 0x4d5   :  { %v1851_v31 = vadd.f32 %v4867_v40, %v1850_v49 }
 0x4d7   :  { %v1992_v41 = vmax.f32 %v1851_v31, 0.0  ;;  %v2451_v32 = vpop.xlane.xlu1 %2450 }
 0x4d8   :  { %v2628_v7 = vadd.f32 %v3764_v39, %v2451_v32 }
 0x4d9   :  { %v2124_v59 = vmul.f32 %v4876_v37, %v1992_v41 }
 0x4da   :  { %v3015_v43 = vperm.slane %v2628_v7, %v3924_v15 }
 0x4db   :  { %v2494_v54 = vsel %vm1085_vm1, %v2124_v59, 0.0 }
 0x4dc   :  { %v3016_v38 = vsel %vm2819_vm11, %v3015_v43, %v3014_v50  ;;  %v1853_v17 = vpop.f32.mrf.mxu2  ;;  %2495 = vadd.xlane.f32.xlu2 %v2494_v54 }
 0x4dd   :  { %v1854_v14 = vadd.f32 %v4867_v40, %v1853_v17 }
 0x4df   :  { %v1993_v52 = vmax.f32 %v1854_v14, 0.0  ;;  %v2454_v20 = vpop.xlane.xlu2 %2453 }
 0x4e0   :  { %v2629_v0 = vadd.f32 %v3764_v39, %v2454_v20 }
 0x4e1   :  { %v2125_v23 = vmul.f32 %v4876_v37, %v1993_v52 }
 0x4e2   :  { %v3017_v61 = vperm.slane %v2629_v0, %v3939_v33 }
 0x4e3   :  { %v2497_v2 = vsel %vm1085_vm1, %v2125_v23, 0.0 }
 0x4e4   :  { %v3018_v30 = vsel %vm2823_vm12, %v3017_v61, %v3016_v38  ;;  %v1856_v55 = vpop.f32.mrf.mxu2  ;;  %2465 = vadd.xlane.f32.xlu2 %v2464_v1  ;;  %2498 = vadd.xlane.f32.xlu0 %v2497_v2 }
 0x4e5   :  { %v1857_v4 = vadd.f32 %v4867_v40, %v1856_v55 }
 0x4e7   :  { %v1994_v12 = vmax.f32 %v1857_v4, 0.0  ;;  %v2457_v17 = vpop.xlane.xlu0 %2456 }
 0x4e8   :  { %v2630_v20 = vadd.f32 %v3764_v39, %v2457_v17 }
 0x4e9   :  { %v2126_v48 = vmul.f32 %v4876_v37, %v1994_v12 }
 0x4ea   :  { %v3019_v3 = vperm.slane %v2630_v20, %v3954_v51 }
 0x4eb   :  { %v2500_v19 = vsel %vm1085_vm1, %v2126_v48, 0.0 }
 0x4ec   :  { %v1859_v22 = vpop.f32.mrf.mxu2  ;;  %2501 = vadd.xlane.f32.xlu1 %v2500_v19 }
 0x4ed   :  { %v1860_v36 = vadd.f32 %v4867_v40, %v1859_v22 }
 0x4ef   :  { %v1995_v16 = vmax.f32 %v1860_v36, 0.0  ;;  %v2460_v59 = vpop.xlane.xlu1 %2459 }
 0x4f1   :  { %v2127_v9 = vmul.f32 %v4876_v37, %v1995_v16 }
 0x4f3   :  { %v2503_v56 = vsel %vm1085_vm1, %v2127_v9, 0.0 }
 0x4f4   :  { %v1862_v44 = vpop.f32.mrf.mxu2  ;;  %2504 = vadd.xlane.f32.xlu2 %v2503_v56 }
 0x4f5   :  { %v1863_v18 = vadd.f32 %v4867_v40, %v1862_v44 }
 0x4f7   :  { %v1996_v53 = vmax.f32 %v1863_v18, 0.0  ;;  %v2463_v32 = vpop.xlane.xlu2 %2462 }
 0x4f9   :  { %v2128_v10 = vmul.f32 %v4876_v37, %v1996_v53 }
 0x4fb   :  { %v2506_v8 = vsel %vm1085_vm1, %v2128_v10, 0.0 }
 0x4fc   :  { %v1865_v26 = vpop.f32.mrf.mxu2  ;;  %2507 = vadd.xlane.f32.xlu1 %v2506_v8 }
 0x4fd   :  { %v1866_v35 = vadd.f32 %v4867_v40, %v1865_v26 }
 0x4ff   :  { %v1997_v6 = vmax.f32 %v1866_v35, 0.0 }
 0x501   :  { %v2129_v58 = vmul.f32 %v4876_v37, %v1997_v6 }
 0x503   :  { %v2509_v21 = vsel %vm1085_vm1, %v2129_v58, 0.0 }
 0x504   :  { %v1868_v49 = vpop.f32.mrf.mxu2  ;;  %2510 = vadd.xlane.f32.xlu1 %v2509_v21 }
 0x505   :  { %v1869_v31 = vadd.f32 %v4867_v40, %v1868_v49  ;;  %v2631_v40 = vadd.f32 %v3764_v39, %v2460_v59 }
 0x507   :  { %v1998_v25 = vmax.f32 %v1869_v31, 0.0  ;;  %v2469_v27 = vpop.xlane.xlu1 %2468  ;;  %v3021_v0 = vperm.slane %v2631_v40, %v3974_v5 }
 0x509   :  { %v2130_v34 = vmul.f32 %v4876_v37, %v1998_v25  ;;  %v2632_v37 = vadd.f32 %v3764_v39, %v2463_v32 }
 0x50b   :  { %v2512_v41 = vsel %vm1085_vm1, %v2130_v34, 0.0  ;;  %v3023_v23 = vperm.slane %v2632_v37, %v3993_v24  ;;  %vm5145_vm1 = vcmask 851712  }
 0x50c   :  { %2513 = vadd.xlane.f32.xlu2 %v2512_v41  ;;  %v3020_v55 = vsel %vm5145_vm1, %v3019_v3, %v3018_v30  ;;  %v2634_v30 = vadd.f32 %v3764_v39, %v2469_v27 }
 0x50d   :  { %v3022_v4 = vsel %vm5143_vm14, %v3021_v0, %v3020_v55 }
 0x50e   :  { %v3024_v48 = vsel %vm5146_vm13, %v3023_v23, %v3022_v4  ;;  %v3027_v35 = vperm.slane %v2634_v30, %v3782_v57 }
 0x50f   :  { %v2472_v7 = vpop.xlane.xlu2 %2471 }
 0x510   :  { %v2635_v9 = vadd.f32 %v3764_v39, %v2472_v7 }
 0x512   :  { %v3028_v10 = vperm.slane %v2635_v9, %v3788_v62 }
 0x514   :  { %v3029_v25 = vsel %vm2783_vm2, %v3028_v10, %v3027_v35  ;;  %vm5147_vm2 = vmmov %vm5145_vm1 }
 0x517   :  { %v2475_v54 = vpop.xlane.xlu1 %2474 }
 0x518   :  { %v2636_v56 = vadd.f32 %v3764_v39, %v2475_v54 }
 0x51a   :  { %v3030_v26 = vperm.slane %v2636_v56, %v3804_v13 }
 0x51c   :  { %v3031_v41 = vsel %vm2787_vm3, %v3030_v26, %v3029_v25  ;;  %vm5148_vm3 = vmmov %vm5143_vm14 }
 0x51f   :  { %v2478_v43 = vpop.xlane.xlu2 %2477 }
 0x520   :  { %v2637_v18 = vadd.f32 %v3764_v39, %v2478_v43 }
 0x522   :  { %v3032_v6 = vperm.slane %v2637_v18, %v3819_v29 }
 0x524   :  { %v3033_v32 = vsel %vm2791_vm4, %v3032_v6, %v3031_v41  ;;  %vm3070_vm4 = vcmask 1047559  }
 0x527   :  { %v2481_v14 = vpop.xlane.xlu1 %2480 }
 0x528   :  { %v2638_v53 = vadd.f32 %v3764_v39, %v2481_v14 }
 0x52a   :  { %v3034_v49 = vperm.slane %v2638_v53, %v3834_v45 }
 0x52c   :  { %v3035_v43 = vsel %vm2795_vm5, %v3034_v49, %v3033_v32  ;;  %vm5149_vm5 = vmmov %vm5146_vm13 }
 0x52f   :  { %v2484_v50 = vpop.xlane.xlu2 %2483 }
 0x530   :  { %v2639_v8 = vadd.f32 %v3764_v39, %v2484_v50 }
 0x532   :  { %v3036_v62 = vperm.slane %v2639_v8, %v3849_v60 }
 0x534   :  { %v3037_v50 = vsel %vm2799_vm6, %v3036_v62, %v3035_v43 }
 0x537   :  { %v2487_v61 = vpop.xlane.xlu1 %2486 }
 0x53f   :  { %v2490_v38 = vpop.xlane.xlu2 %2489 }
 0x540   :  { %v2641_v58 = vadd.f32 %v3764_v39, %v2490_v38 }
 0x542   :  { %v3040_v7 = vperm.slane %v2641_v58, %v3879_v28 }
 0x547   :  { %v2493_v36 = vpop.xlane.xlu1 %2492 }
 0x548   :  { %v2642_v31 = vadd.f32 %v3764_v39, %v2493_v36 }
 0x54a   :  { %v3042_v60 = vperm.slane %v2642_v31, %v3894_v46 }
 0x54f   :  { %v2496_v52 = vpop.xlane.xlu2 %2495 }
 0x550   :  { %v2643_v34 = vadd.f32 %v3764_v39, %v2496_v52 }
 0x552   :  { %v3044_v54 = vperm.slane %v2643_v34, %v3909_v63 }
 0x557   :  { %v2466_v1 = vpop.xlane.xlu2 %2465  ;;  %v2499_v21 = vpop.xlane.xlu0 %2498 }
 0x558   :  { %v2633_v2 = vadd.f32 %v3764_v39, %v2466_v1  ;;  %v2644_v29 = vadd.f32 %v3764_v39, %v2499_v21 }
 0x55a   :  { %v3025_v12 = vperm.slane %v2633_v2, %v4012_v47  ;;  %v3046_v17 = vperm.slane %v2644_v29, %v3924_v15 }
 0x55c   :  { %v3026_v19 = vsel %vm2839_vm15, %v3025_v12, %v3024_v48 }
 0x55d   :  { %v3069_v22 = vsel %vm3068_vm0, %v3026_v19, %v4972_v42  ;;  %v2640_v42 = vadd.f32 %v3764_v39, %v2487_v61 }
 0x55f   :  { %v2502_v16 = vpop.xlane.xlu1 %2501  ;;  %v3038_v57 = vperm.slane %v2640_v42, %v3864_v11 }
 0x560   :  { %v2645_v45 = vadd.f32 %v3764_v39, %v2502_v16 }
 0x561   :  { %v3039_v38 = vsel %vm2803_vm7, %v3038_v57, %v3037_v50 }
 0x562   :  { %v3041_v14 = vsel %vm2807_vm8, %v3040_v7, %v3039_v38  ;;  %v3048_v52 = vperm.slane %v2645_v45, %v3939_v33 }
 0x563   :  { %v3043_v46 = vsel %vm2811_vm9, %v3042_v60, %v3041_v14 }
 0x564   :  { %v3045_v40 = vsel %vm2815_vm10, %v3044_v54, %v3043_v46 }
 0x565   :  { %v3047_v37 = vsel %vm2819_vm11, %v3046_v17, %v3045_v40 }
 0x566   :  { %v3049_v15 = vsel %vm2823_vm12, %v3048_v52, %v3047_v37 }
 0x567   :  { %v2505_v13 = vpop.xlane.xlu2 %2504 }
 0x568   :  { %v2646_v27 = vadd.f32 %v3764_v39, %v2505_v13 }
 0x56a   :  { %v3050_v20 = vperm.slane %v2646_v27, %v3954_v51 }
 0x56c   :  { %v3051_v61 = vsel %vm5147_vm2, %v3050_v20, %v3049_v15 }
 0x56f   :  { %v2508_v44 = vpop.xlane.xlu1 %2507 }
 0x570   :  { %v2647_v11 = vadd.f32 %v3764_v39, %v2508_v44 }
 0x572   :  { %v3052_v63 = vperm.slane %v2647_v11, %v3974_v5 }
 0x574   :  { %v3053_v33 = vsel %vm5148_vm3, %v3052_v63, %v3051_v61 }
 0x577   :  { %v2511_v59 = vpop.xlane.xlu1 %2510 }
 0x578   :  { %v2648_v28 = vadd.f32 %v3764_v39, %v2511_v59 }
 0x57a   :  { %v3054_v3 = vperm.slane %v2648_v28, %v3993_v24 }
 0x57c   :  { %v3055_v5 = vsel %vm5149_vm5, %v3054_v3, %v3053_v33 }
 0x57f   :  { %v2514_v0 = vpop.xlane.xlu2 %2513 }
 0x580   :  { %v2649_v23 = vadd.f32 %v3764_v39, %v2514_v0 }
 0x582   :  { %v3056_v51 = vperm.slane %v2649_v23, %v4012_v47 }
 0x584   :  { %v3057_v24 = vsel %vm2839_vm15, %v3056_v51, %v3055_v5 }
 0x585   :  { %v3071_v39 = vsel %vm3070_vm4, %v3057_v24, %v3069_v22 }
 0x586   :  { %3073 = vst [vmem:[#allocation3] sm:$0xff] %v3071_v39 }
 0x587   :  { %3084 = dma.vmem_to_hbm [thread:$0]  %s3080_s5, 128, %s3082_s9, [#allocation4]  }
 0x588   :  { %3392 = dma.done.wait [#allocation4], 128  }
 0x589   :  { %3393 = vsyncadd [#allocation4], 4294967168 }
 0x58a   :  { %3089 = vsyncpa [#allocation4], 1 }

</bundles_post_ra>
